<compile_context>
chip_gen: v6e
topology: v6e:2x2x1
jax: 0.10.0
libtpu: 0.0.40
codegen_flags: <defaults>
</compile_context>

<pallas_src>
import functools

import jax
import jax.numpy as jnp
from jax.experimental import pallas as pl
from jax.experimental.pallas import tpu as pltpu


# ---------------------------------------------------------------------------
# fused kernel: conv(8x8,s4)+ReLU -> conv(4x4,s2)+ReLU -> conv(3x3,s1)
# ---------------------------------------------------------------------------
def _fused_rainbow_kernel(x_ref, w1_ref, w2_ref, w3_ref, b1_ref, b2_ref, b3_ref,
                          o_ref, l2_ref, y2_ref, *,
                          btile, oh2, oh3, n1, compute_dtype):
    f32 = jnp.float32
    B = btile

    # ---- layer 1: 8x8 stride 4 + ReLU.  One K-folded dot per H-row parity;
    #      parity slabs are written side-by-side (layer-2's K-folded LHS). ----
    for p in range(2):
        acc = jnp.dot(x_ref[0, p], w1_ref[...], preferred_element_type=f32)
        acc = jnp.maximum(acc + b1_ref[...], 0.0)
        l2_ref[:, p * n1:(p + 1) * n1] = acc.astype(compute_dtype)

    # ---- layer 2: 4x4 stride 2 + ReLU.  4 KH taps folded pairwise into K:
    #      two dots, both LHS slices start at multiples of B (tile aligned). --
    acc2 = jnp.dot(l2_ref[0:oh2 * B, :], w2_ref[0], preferred_element_type=f32)
    acc2 = acc2 + jnp.dot(l2_ref[B:(oh2 + 1) * B, :], w2_ref[1],
                          preferred_element_type=f32)
    y2_ref[...] = jnp.maximum(acc2 + b2_ref[...], 0.0).astype(compute_dtype)

    # ---- layer 3: 3x3 stride 1, no ReLU.  3 taps, aligned slices. ----------
    acc3 = jnp.dot(y2_ref[0:oh3 * B, :], w3_ref[0], preferred_element_type=f32)
    for i3 in range(1, 3):
        acc3 = acc3 + jnp.dot(y2_ref[i3 * B:(i3 + oh3) * B, :], w3_ref[i3],
                              preferred_element_type=f32)
    o_ref[0] = (acc3 + b3_ref[...]).astype(o_ref.dtype)


# ---------------------------------------------------------------------------
# wrapper-side one-time layout transforms
# ---------------------------------------------------------------------------
def _out_hw(h, k, s):
    return (h - k) // s + 1


def _band_weights(w_oihw, w_in, stride):
    """OIHW weights -> (KH, W_in*Cin, OW*Cout) banded matmul matrices.

    band[i][w*Cin + c, ow*Cout + co] = w[co, c, i, w - stride*ow] (0 if invalid).
    """
    cout, cin, kh, kw = w_oihw.shape
    ow = _out_hw(w_in, kw, stride)
    wi = jnp.arange(w_in)[:, None]
    oi = jnp.arange(ow)[None, :]
    k = wi - stride * oi                              # (W_in, OW)
    valid = (k >= 0) & (k < kw)
    kc = jnp.clip(k, 0, kw - 1)
    g = w_oihw[:, :, :, kc]                           # (Cout, Cin, KH, W_in, OW)
    g = jnp.where(valid[None, None, None], g, 0.0)
    g = jnp.transpose(g, (2, 3, 1, 4, 0))             # (KH, W_in, Cin, OW, Cout)
    return g.reshape(kh, w_in * cin, ow * cout)


def rainbow_body_forward(params, state, compute_dtype=jnp.bfloat16, b_tile=16):
    """state: (N, Cin, H, W) f32 -> (N, 64*OH3*OW3) f32 (NCHW flatten, as torch)."""
    (w1, b1), (w2, b2), (w3, b3) = params
    n, cin, h, w = state.shape
    oh1, ow1 = _out_hw(h, 8, 4), _out_hw(w, 8, 4)
    oh2, ow2 = _out_hw(oh1, 4, 2), _out_hw(ow1, 4, 2)
    oh3, ow3 = _out_hw(oh2, 3, 1), _out_hw(ow2, 3, 1)
    assert oh1 >= 8 and ow1 >= 8 and oh1 % 2 == 0, (
        f"conv1 output {oh1}x{ow1} must have even height >= 8 (use H=W=36 or 84)")
    assert b_tile % 16 == 0, "b_tile must be a multiple of 16 (bf16 sublane tile)"
    a1 = oh1 // 2

    wc = w * cin
    k1f = 8 * wc                                       # layer-1 K with KH folded in
    n1, n2, n3 = ow1 * 32, ow2 * 64, ow3 * 64

    # ---- weights: OIHW -> banded + K-folded bf16 matrices (one-time) --------
    w1f = _band_weights(w1, w, 4).reshape(k1f, n1).astype(compute_dtype)
    w2g = _band_weights(w2, ow1, 2).reshape(2, 2 * n1, n2).astype(compute_dtype)
    w3b = _band_weights(w3, ow2, 1).astype(compute_dtype)          # (3, n2, n3)
    b1t = jnp.tile(b1, ow1)[None, :].astype(jnp.float32)
    b2t = jnp.tile(b2, ow2)[None, :].astype(jnp.float32)
    b3t = jnp.tile(b3, ow3)[None, :].astype(jnp.float32)

    # ---- input prep: bf16 first, then NCHW->NHWC rows, H-only im2col with ---
    #      the 8 KH taps folded into K, parity split, and batch interleaved ---
    #      into the M dimension (row index = j*B_TILE + image). ---------------
    x = jnp.transpose(state.astype(compute_dtype), (0, 2, 3, 1)).reshape(n, h, wc)
    n_pad = ((n + b_tile - 1) // b_tile) * b_tile
    if n_pad != n:
        x = jnp.pad(x, ((0, n_pad - n), (0, 0), (0, 0)))
    t_grid = n_pad // b_tile

    par = []
    for p in range(2):
        taps = [x[:, 4 * p + i: 4 * p + i + 8 * (a1 - 1) + 1: 8, :]
                for i in range(8)]                      # each (n_pad, a1, wc)
        par.append(jnp.concatenate(taps, axis=-1))      # (n_pad, a1, k1f)
    xk = jnp.stack(par, axis=1)                         # (n_pad, 2, a1, k1f)
    xk = xk.reshape(t_grid, b_tile, 2, a1, k1f)
    xk = jnp.transpose(xk, (0, 2, 3, 1, 4)).reshape(t_grid, 2, a1 * b_tile, k1f)

    m1, m2, m3 = a1 * b_tile, oh2 * b_tile, oh3 * b_tile
    itemsz = jnp.dtype(compute_dtype).itemsize

    flops = 2 * t_grid * (2 * m1 * k1f * n1 + 2 * m2 * (2 * n1) * n2
                          + 3 * m3 * n2 * n3)
    weight_bytes = ((w1f.size + w2g.size + w3b.size) * itemsz
                    + (b1t.size + b2t.size + b3t.size) * 4)
    x_block_bytes = 2 * m1 * k1f * itemsz
    o_block_bytes = m3 * n3 * 4
    scratch_bytes = (m1 * 2 * n1 + m2 * n2) * itemsz
    acc_bytes = max(m1 * n1, m2 * n2, m3 * n3) * 4
    vmem_needed = (weight_bytes + 2 * x_block_bytes + 2 * o_block_bytes
                   + scratch_bytes + 2 * acc_bytes)
    vmem_limit = int(min(max(vmem_needed + (8 << 20), 24 << 20), 48 << 20))
    bytes_accessed = int(xk.size * itemsz + weight_bytes + n_pad * oh3 * n3 * 4)

    kernel = functools.partial(_fused_rainbow_kernel, btile=b_tile, oh2=oh2,
                               oh3=oh3, n1=n1, compute_dtype=compute_dtype)
    pinned = pl.Buffered(1)   # constant index_map -> single-buffer the weights

    y = pl.pallas_call(
        kernel,
        out_shape=jax.ShapeDtypeStruct((t_grid, oh3 * b_tile, n3), jnp.float32),
        grid=(t_grid,),
        in_specs=[
            pl.BlockSpec((1, 2, a1 * b_tile, k1f), lambda t: (t, 0, 0, 0)),
            pl.BlockSpec((k1f, n1), lambda t: (0, 0), pipeline_mode=pinned),
            pl.BlockSpec((2, 2 * n1, n2), lambda t: (0, 0, 0), pipeline_mode=pinned),
            pl.BlockSpec((3, n2, n3), lambda t: (0, 0, 0), pipeline_mode=pinned),
            pl.BlockSpec((1, n1), lambda t: (0, 0), pipeline_mode=pinned),
            pl.BlockSpec((1, n2), lambda t: (0, 0), pipeline_mode=pinned),
            pl.BlockSpec((1, n3), lambda t: (0, 0), pipeline_mode=pinned),
        ],
        out_specs=pl.BlockSpec((1, oh3 * b_tile, n3), lambda t: (t, 0, 0)),
        scratch_shapes=[
            pltpu.VMEM((a1 * b_tile, 2 * n1), compute_dtype),   # layer-2 K-folded LHS
            pltpu.VMEM((oh2 * b_tile, n2), compute_dtype),      # layer-3 LHS
        ],
        compiler_params=pltpu.CompilerParams(
            dimension_semantics=("parallel",),
            vmem_limit_bytes=vmem_limit),
        cost_estimate=pl.CostEstimate(flops=flops, transcendentals=0,
                                      bytes_accessed=bytes_accessed),
    )(xk, w1f, w2g, w3b, b1t, b2t, b3t)

    # single NHWC -> NCHW-flatten permutation, once, on the small final output
    y = y.reshape(t_grid, oh3, b_tile, ow3, 64)
    y = jnp.transpose(y, (0, 2, 4, 1, 3)).reshape(n_pad, 64 * oh3 * ow3)
    return y[:n]


# ---------------------------------------------------------------------------
# params (PyTorch default Conv2d init: U(+/- 1/sqrt(fan_in))) and reference
# ---------------------------------------------------------------------------
def init_rainbow_body_params(key, in_channels):
    shapes = [((32, in_channels, 8, 8), (32,)),
              ((64, 32, 4, 4), (64,)),
              ((64, 64, 3, 3), (64,))]
    params = []
    for w_shape, b_shape in shapes:
        key, k_w, k_b = jax.random.split(key, 3)
        fan_in = w_shape[1] * w_shape[2] * w_shape[3]
        bound = 1.0 / float(jnp.sqrt(fan_in))
        w = jax.random.uniform(k_w, w_shape, jnp.float32, -bound, bound)
        b = jax.random.uniform(k_b, b_shape, jnp.float32, -bound, bound)
        params.append((w, b))
    return params


def _reference_forward(params, state):
    """Pure-JAX f32 reference (lax.conv) for the correctness check."""
    x = state
    strides = [4, 2, 1]
    for idx, ((w, b), s) in enumerate(zip(params, strides)):
        x = jax.lax.conv_general_dilated(
            x, w, window_strides=(s, s), padding="VALID",
            dimension_numbers=("NCHW", "OIHW", "NCHW"))
        x = x + b.reshape(1, -1, 1, 1)
        if idx < 2:
            x = jnp.maximum(x, 0.0)
    return x.reshape(state.shape[0], -1)


if __name__ == "__main__":
    key = jax.random.PRNGKey(0)
    k_params, k_x = jax.random.split(key)

    # smallest spatial size admitted by the conv stack: 36 -> 8 -> 3 -> 1
    batch, in_ch, spatial = 2, 4, 36
    params = init_rainbow_body_params(k_params, in_ch)
    state = jax.random.normal(k_x, (batch, in_ch, spatial, spatial), jnp.float32)

    fwd = jax.jit(rainbow_body_forward)
    out = jax.block_until_ready(fwd(params, state))
    ref = _reference_forward(params, state)

    assert out.shape == (batch, 64), out.shape  # feature_dim = 64*1*1
    # bf16 MXU inputs / bf16 inter-layer activations with f32 accumulation
    # vs the f32 reference: tolerance ~5e-2 covers the compounded error.
    err = float(jnp.max(jnp.abs(out - ref)))
    assert jnp.allclose(out, ref, atol=5e-2, rtol=5e-2), err
    print("KERNEL_OK")
</pallas_src>

<mosaic_0001>
module attributes {stable_mosaic.version = 11 : i64} {
  func.func @_fused_rainbow_kernel(%arg0: i32, %arg1: memref<1x2x64x1152xbf16, #tpu.memory_space<vmem>>, %arg2: memref<1152x256xbf16, #tpu.memory_space<vmem>>, %arg3: memref<2x512x192xbf16, #tpu.memory_space<vmem>>, %arg4: memref<3x192x64xbf16, #tpu.memory_space<vmem>>, %arg5: memref<1x256xf32, #tpu.memory_space<vmem>>, %arg6: memref<1x192xf32, #tpu.memory_space<vmem>>, %arg7: memref<1x64xf32, #tpu.memory_space<vmem>>, %arg8: memref<1x16x64xf32, #tpu.memory_space<vmem>>, %arg9: memref<64x512xbf16, #tpu.memory_space<vmem>>, %arg10: memref<48x192xbf16, #tpu.memory_space<vmem>>) attributes {dimension_semantics = [#tpu.dimension_semantics<parallel>], iteration_bounds = array<i64: 1>, scalar_prefetch = 0 : i64, scratch_operands = 2 : i64, tpu.core_type = #tpu.core_type<tc>, window_params = [{transform_indices = @transform_0, window_bounds = array<i64: 1, 2, 64, 1152>}, {pipeline_mode = #tpu.pipeline_mode<synchronous>, transform_indices = @transform_1, window_bounds = array<i64: 1152, 256>}, {pipeline_mode = #tpu.pipeline_mode<synchronous>, transform_indices = @transform_2, window_bounds = array<i64: 2, 512, 192>}, {pipeline_mode = #tpu.pipeline_mode<synchronous>, transform_indices = @transform_3, window_bounds = array<i64: 3, 192, 64>}, {pipeline_mode = #tpu.pipeline_mode<synchronous>, transform_indices = @transform_4, window_bounds = array<i64: 1, 256>}, {pipeline_mode = #tpu.pipeline_mode<synchronous>, transform_indices = @transform_5, window_bounds = array<i64: 1, 192>}, {pipeline_mode = #tpu.pipeline_mode<synchronous>, transform_indices = @transform_6, window_bounds = array<i64: 1, 64>}, {transform_indices = @transform_7, window_bounds = array<i64: 1, 16, 64>}]} {
    %c0 = arith.constant 0 : index
    %c0_0 = arith.constant 0 : index
    %c0_1 = arith.constant 0 : index
    %c0_2 = arith.constant 0 : index
    %0 = vector.load %arg1[%c0, %c0_0, %c0_1, %c0_2] : memref<1x2x64x1152xbf16, #tpu.memory_space<vmem>>, vector<1x1x64x1152xbf16>
    %1 = vector.shape_cast %0 : vector<1x1x64x1152xbf16> to vector<64x1152xbf16>
    %c0_3 = arith.constant 0 : index
    %c0_4 = arith.constant 0 : index
    %2 = vector.load %arg2[%c0_3, %c0_4] : memref<1152x256xbf16, #tpu.memory_space<vmem>>, vector<1152x256xbf16>
    %cst = arith.constant dense<0.000000e+00> : vector<64x256xf32>
    %3 = tpu.matmul %1, %2, %cst {dimension_numbers = #tpu.dot_dimension_numbers<[1], [0], [0], [1], [0, 0, 1, 1], [], []>} : vector<64x1152xbf16>, vector<1152x256xbf16>, vector<64x256xf32> -> vector<64x256xf32>
    %c0_5 = arith.constant 0 : index
    %c0_6 = arith.constant 0 : index
    %4 = vector.load %arg5[%c0_5, %c0_6] : memref<1x256xf32, #tpu.memory_space<vmem>>, vector<1x256xf32>
    %5 = vector.broadcast %4 : vector<1x256xf32> to vector<64x256xf32>
    %6 = arith.addf %3, %5 : vector<64x256xf32>
    %cst_7 = arith.constant 0.000000e+00 : f32
    %7 = vector.broadcast %cst_7 : f32 to vector<64x256xf32>
    %8 = arith.maximumf %6, %7 : vector<64x256xf32>
    %9 = arith.truncf %8 : vector<64x256xf32> to vector<64x256xbf16>
    %c0_8 = arith.constant 0 : index
    %c0_9 = arith.constant 0 : index
    %10 = vector.load %arg9[%c0_8, %c0_9] : memref<64x512xbf16, #tpu.memory_space<vmem>>, vector<64x256xbf16>
    tpu.vector_store %arg9[%c0_8, %c0_9], %9 {strides = array<i32>} : memref<64x512xbf16, #tpu.memory_space<vmem>>, vector<64x256xbf16>,
    %c0_10 = arith.constant 0 : index
    %c1 = arith.constant 1 : index
    %c0_11 = arith.constant 0 : index
    %c0_12 = arith.constant 0 : index
    %11 = vector.load %arg1[%c0_10, %c1, %c0_11, %c0_12] : memref<1x2x64x1152xbf16, #tpu.memory_space<vmem>>, vector<1x1x64x1152xbf16>
    %12 = vector.shape_cast %11 : vector<1x1x64x1152xbf16> to vector<64x1152xbf16>
    %c0_13 = arith.constant 0 : index
    %c0_14 = arith.constant 0 : index
    %13 = vector.load %arg2[%c0_13, %c0_14] : memref<1152x256xbf16, #tpu.memory_space<vmem>>, vector<1152x256xbf16>
    %cst_15 = arith.constant dense<0.000000e+00> : vector<64x256xf32>
    %14 = tpu.matmul %12, %13, %cst_15 {dimension_numbers = #tpu.dot_dimension_numbers<[1], [0], [0], [1], [0, 0, 1, 1], [], []>} : vector<64x1152xbf16>, vector<1152x256xbf16>, vector<64x256xf32> -> vector<64x256xf32>
    %c0_16 = arith.constant 0 : index
    %c0_17 = arith.constant 0 : index
    %15 = vector.load %arg5[%c0_16, %c0_17] : memref<1x256xf32, #tpu.memory_space<vmem>>, vector<1x256xf32>
    %16 = vector.broadcast %15 : vector<1x256xf32> to vector<64x256xf32>
    %17 = arith.addf %14, %16 : vector<64x256xf32>
    %cst_18 = arith.constant 0.000000e+00 : f32
    %18 = vector.broadcast %cst_18 : f32 to vector<64x256xf32>
    %19 = arith.maximumf %17, %18 : vector<64x256xf32>
    %20 = arith.truncf %19 : vector<64x256xf32> to vector<64x256xbf16>
    %c0_19 = arith.constant 0 : index
    %c256 = arith.constant 256 : index
    %21 = vector.load %arg9[%c0_19, %c256] : memref<64x512xbf16, #tpu.memory_space<vmem>>, vector<64x256xbf16>
    tpu.vector_store %arg9[%c0_19, %c256], %20 {strides = array<i32>} : memref<64x512xbf16, #tpu.memory_space<vmem>>, vector<64x256xbf16>,
    %c0_20 = arith.constant 0 : index
    %c0_21 = arith.constant 0 : index
    %22 = vector.load %arg9[%c0_20, %c0_21] : memref<64x512xbf16, #tpu.memory_space<vmem>>, vector<48x512xbf16>
    %c0_22 = arith.constant 0 : index
    %c0_23 = arith.constant 0 : index
    %c0_24 = arith.constant 0 : index
    %23 = vector.load %arg3[%c0_22, %c0_23, %c0_24] : memref<2x512x192xbf16, #tpu.memory_space<vmem>>, vector<1x512x192xbf16>
    %24 = vector.shape_cast %23 : vector<1x512x192xbf16> to vector<512x192xbf16>
    %cst_25 = arith.constant dense<0.000000e+00> : vector<48x192xf32>
    %25 = tpu.matmul %22, %24, %cst_25 {dimension_numbers = #tpu.dot_dimension_numbers<[1], [0], [0], [1], [0, 0, 1, 1], [], []>} : vector<48x512xbf16>, vector<512x192xbf16>, vector<48x192xf32> -> vector<48x192xf32>
    %c16 = arith.constant 16 : index
    %c0_26 = arith.constant 0 : index
    %26 = vector.load %arg9[%c16, %c0_26] : memref<64x512xbf16, #tpu.memory_space<vmem>>, vector<48x512xbf16>
    %c1_27 = arith.constant 1 : index
    %c0_28 = arith.constant 0 : index
    %c0_29 = arith.constant 0 : index
    %27 = vector.load %arg3[%c1_27, %c0_28, %c0_29] : memref<2x512x192xbf16, #tpu.memory_space<vmem>>, vector<1x512x192xbf16>
    %28 = vector.shape_cast %27 : vector<1x512x192xbf16> to vector<512x192xbf16>
    %cst_30 = arith.constant dense<0.000000e+00> : vector<48x192xf32>
    %29 = tpu.matmul %26, %28, %cst_30 {dimension_numbers = #tpu.dot_dimension_numbers<[1], [0], [0], [1], [0, 0, 1, 1], [], []>} : vector<48x512xbf16>, vector<512x192xbf16>, vector<48x192xf32> -> vector<48x192xf32>
    %30 = arith.addf %25, %29 : vector<48x192xf32>
    %c0_31 = arith.constant 0 : index
    %c0_32 = arith.constant 0 : index
    %31 = vector.load %arg6[%c0_31, %c0_32] : memref<1x192xf32, #tpu.memory_space<vmem>>, vector<1x192xf32>
    %32 = vector.broadcast %31 : vector<1x192xf32> to vector<48x192xf32>
    %33 = arith.addf %30, %32 : vector<48x192xf32>
    %cst_33 = arith.constant 0.000000e+00 : f32
    %34 = vector.broadcast %cst_33 : f32 to vector<48x192xf32>
    %35 = arith.maximumf %33, %34 : vector<48x192xf32>
    %36 = arith.truncf %35 : vector<48x192xf32> to vector<48x192xbf16>
    %c0_34 = arith.constant 0 : index
    %c0_35 = arith.constant 0 : index
    %37 = vector.load %arg10[%c0_34, %c0_35] : memref<48x192xbf16, #tpu.memory_space<vmem>>, vector<48x192xbf16>
    tpu.vector_store %arg10[%c0_34, %c0_35], %36 {strides = array<i32>} : memref<48x192xbf16, #tpu.memory_space<vmem>>, vector<48x192xbf16>,
    %c0_36 = arith.constant 0 : index
    %c0_37 = arith.constant 0 : index
    %38 = vector.load %arg10[%c0_36, %c0_37] : memref<48x192xbf16, #tpu.memory_space<vmem>>, vector<16x192xbf16>
    %c0_38 = arith.constant 0 : index
    %c0_39 = arith.constant 0 : index
    %c0_40 = arith.constant 0 : index
    %39 = vector.load %arg4[%c0_38, %c0_39, %c0_40] : memref<3x192x64xbf16, #tpu.memory_space<vmem>>, vector<1x192x64xbf16>
    %40 = vector.shape_cast %39 : vector<1x192x64xbf16> to vector<192x64xbf16>
    %cst_41 = arith.constant dense<0.000000e+00> : vector<16x64xf32>
    %41 = tpu.matmul %38, %40, %cst_41 {dimension_numbers = #tpu.dot_dimension_numbers<[1], [0], [0], [1], [0, 0, 1, 1], [], []>} : vector<16x192xbf16>, vector<192x64xbf16>, vector<16x64xf32> -> vector<16x64xf32>
    %c16_42 = arith.constant 16 : index
    %c0_43 = arith.constant 0 : index
    %42 = vector.load %arg10[%c16_42, %c0_43] : memref<48x192xbf16, #tpu.memory_space<vmem>>, vector<16x192xbf16>
    %c1_44 = arith.constant 1 : index
    %c0_45 = arith.constant 0 : index
    %c0_46 = arith.constant 0 : index
    %43 = vector.load %arg4[%c1_44, %c0_45, %c0_46] : memref<3x192x64xbf16, #tpu.memory_space<vmem>>, vector<1x192x64xbf16>
    %44 = vector.shape_cast %43 : vector<1x192x64xbf16> to vector<192x64xbf16>
    %cst_47 = arith.constant dense<0.000000e+00> : vector<16x64xf32>
    %45 = tpu.matmul %42, %44, %cst_47 {dimension_numbers = #tpu.dot_dimension_numbers<[1], [0], [0], [1], [0, 0, 1, 1], [], []>} : vector<16x192xbf16>, vector<192x64xbf16>, vector<16x64xf32> -> vector<16x64xf32>
    %46 = arith.addf %41, %45 : vector<16x64xf32>
    %c32 = arith.constant 32 : index
    %c0_48 = arith.constant 0 : index
    %47 = vector.load %arg10[%c32, %c0_48] : memref<48x192xbf16, #tpu.memory_space<vmem>>, vector<16x192xbf16>
    %c2 = arith.constant 2 : index
    %c0_49 = arith.constant 0 : index
    %c0_50 = arith.constant 0 : index
    %48 = vector.load %arg4[%c2, %c0_49, %c0_50] : memref<3x192x64xbf16, #tpu.memory_space<vmem>>, vector<1x192x64xbf16>
    %49 = vector.shape_cast %48 : vector<1x192x64xbf16> to vector<192x64xbf16>
    %cst_51 = arith.constant dense<0.000000e+00> : vector<16x64xf32>
    %50 = tpu.matmul %47, %49, %cst_51 {dimension_numbers = #tpu.dot_dimension_numbers<[1], [0], [0], [1], [0, 0, 1, 1], [], []>} : vector<16x192xbf16>, vector<192x64xbf16>, vector<16x64xf32> -> vector<16x64xf32>
    %51 = arith.addf %46, %50 : vector<16x64xf32>
    %c0_52 = arith.constant 0 : index
    %c0_53 = arith.constant 0 : index
    %52 = vector.load %arg7[%c0_52, %c0_53] : memref<1x64xf32, #tpu.memory_space<vmem>>, vector<1x64xf32>
    %53 = vector.broadcast %52 : vector<1x64xf32> to vector<16x64xf32>
    %54 = arith.addf %51, %53 : vector<16x64xf32>
    %c0_54 = arith.constant 0 : index
    %c0_55 = arith.constant 0 : index
    %c0_56 = arith.constant 0 : index
    %55 = vector.load %arg8[%c0_54, %c0_55, %c0_56] : memref<1x16x64xf32, #tpu.memory_space<vmem>>, vector<1x16x64xf32>
    %56 = vector.shape_cast %55 : vector<1x16x64xf32> to vector<16x64xf32>
    %57 = vector.shape_cast %54 : vector<16x64xf32> to vector<1x16x64xf32>
    tpu.vector_store %arg8[%c0_54, %c0_55, %c0_56], %57 {strides = array<i32>} : memref<1x16x64xf32, #tpu.memory_space<vmem>>, vector<1x16x64xf32>,
    return
  }
  func.func @transform_0(%arg0: i32) -> (i32, i32, i32, i32) {
    %c0_i32 = arith.constant 0 : i32
    %c0_i32_0 = arith.constant 0 : i32
    %c0_i32_1 = arith.constant 0 : i32
    %c0_i32_2 = arith.constant 0 : i32
    return %arg0, %c0_i32, %c0_i32_0, %c0_i32_1 : i32, i32, i32, i32
  }
  func.func @transform_1(%arg0: i32) -> (i32, i32) {
    %c0_i32 = arith.constant 0 : i32
    %c0_i32_0 = arith.constant 0 : i32
    %c0_i32_1 = arith.constant 0 : i32
    return %c0_i32, %c0_i32_0 : i32, i32
  }
  func.func @transform_2(%arg0: i32) -> (i32, i32, i32) {
    %c0_i32 = arith.constant 0 : i32
    %c0_i32_0 = arith.constant 0 : i32
    %c0_i32_1 = arith.constant 0 : i32
    %c0_i32_2 = arith.constant 0 : i32
    return %c0_i32, %c0_i32_0, %c0_i32_1 : i32, i32, i32
  }
  func.func @transform_3(%arg0: i32) -> (i32, i32, i32) {
    %c0_i32 = arith.constant 0 : i32
    %c0_i32_0 = arith.constant 0 : i32
    %c0_i32_1 = arith.constant 0 : i32
    %c0_i32_2 = arith.constant 0 : i32
    return %c0_i32, %c0_i32_0, %c0_i32_1 : i32, i32, i32
  }
  func.func @transform_4(%arg0: i32) -> (i32, i32) {
    %c0_i32 = arith.constant 0 : i32
    %c0_i32_0 = arith.constant 0 : i32
    %c0_i32_1 = arith.constant 0 : i32
    return %c0_i32, %c0_i32_0 : i32, i32
  }
  func.func @transform_5(%arg0: i32) -> (i32, i32) {
    %c0_i32 = arith.constant 0 : i32
    %c0_i32_0 = arith.constant 0 : i32
    %c0_i32_1 = arith.constant 0 : i32
    return %c0_i32, %c0_i32_0 : i32, i32
  }
  func.func @transform_6(%arg0: i32) -> (i32, i32) {
    %c0_i32 = arith.constant 0 : i32
    %c0_i32_0 = arith.constant 0 : i32
    %c0_i32_1 = arith.constant 0 : i32
    return %c0_i32, %c0_i32_0 : i32, i32
  }
  func.func @transform_7(%arg0: i32) -> (i32, i32, i32) {
    %c0_i32 = arith.constant 0 : i32
    %c0_i32_0 = arith.constant 0 : i32
    %c0_i32_1 = arith.constant 0 : i32
    return %arg0, %c0_i32, %c0_i32_0 : i32, i32, i32
  }
}

</mosaic_0001>

<bundles_post_ra>
// kernel: tile.14
= control target key start
LH: loop header
LB: loop body
LE: loop exit
PB: predicated region body
PF: predicated region fallthrough
CT: control target
= control target key end

     0   :  { %s22_s0 = inlined_call_operand.vmem [shape: f32[32], index: 0, kind: input, shape index: {}]   ;;  %s23_s1 = inlined_call_operand.vmem [shape: f32[8,32], index: 1, kind: output, shape index: {}]  }
   0x1   :  { %v4_v0 = vld [vmem:[%s22_s0] ss:$0 sm:$0xff] }
   0x2   :  { %5 = vst [vmem:[%s23_s1] sm:$0xff] %v4_v0 }

// kernel: tile.15
= control target key start
LH: loop header
LB: loop body
LE: loop exit
PB: predicated region body
PF: predicated region fallthrough
CT: control target
= control target key end

     0   :  { %s7_s6 = smov 3  ;;  %s14_s9 = smov 3  ;;  %vm4_vm0 = vcmask 261120   ;;  %vm11_vm1 = vcmask 1048320   ;;  %vm18_vm2 = vcmask 785920   ;;  %vm25_vm3 = vcmask 523520   ;;  %s79_s0 = inlined_call_operand.vmem [shape: f32[8,32], index: 0, kind: input, shape index: {}]   ;;  %s80_s1 = inlined_call_operand.vmem [shape: f32[1,256], index: 1, kind: output, shape index: {}]  }
   0x1   :  { %v41_v0 = vld [vmem:[%s79_s0 + $0x3] ss:$4 sm:%s7_s6]   ;;  %s48_s10 = smov 96   ;;  %s21_s11 = smov 3  ;;  %v42_v1 = vld [vmem:[%s79_s0 + $0x2] ss:$4 sm:%s14_s9]  }
   0x2   :  { %9 = vrot.lane.b32.xlu0 %v41_v0, %s48_s10  ;;  %v43_v2 = vld [vmem:[%s79_s0 + $0x1] ss:$4 sm:%s21_s11]   ;;  %s2_s16 = smov 3  ;;  %s49_s17 = smov 32  }
   0x3   :  { %23 = vrot.lane.b32.xlu1 %v43_v2, %s49_s17  ;;  %v3_v3 = vld [vmem:[%s79_s0] ss:$4 sm:%s2_s16]   ;;  %s50_s0 = smov 64  }
   0x4   :  { %5 = vst.msk [vmem:[#allocation0] ss:$8 sm:$0x3] %vm4_vm0, %v3_v3  }
   0x6   :  { %16 = vrot.lane.b32.xlu0 %v42_v1, %s50_s0 }
  0x74   :  { %v10_v4 = vpop.permute.xlu0 %9  }
  0x75   :  { %12 = vst.msk [vmem:[#allocation0] ss:$8 sm:$0x3] %vm11_vm1, %v10_v4   ;;  %v24_v5 = vpop.permute.xlu1 %23  }
  0x78   :  { %v17_v6 = vpop.permute.xlu0 %16  }
  0x79   :  { %19 = vst.msk [vmem:[#allocation0] ss:$8 sm:$0x3] %vm18_vm2, %v17_v6  }
  0x7a   :  { %26 = vst.msk [vmem:[#allocation0] ss:$8 sm:$0x3] %vm25_vm3, %v24_v5  }
  0x81   :  { %v31_v7 = vld [vmem:[#allocation0] sm:$0x1]  ;;  %v36_v8 = vld [vmem:[#allocation0 + $0x8] sm:$0x1] }
  0x82   :  { %34 = vst [vmem:[%s80_s1] sm:$0x1] %v31_v7  ;;  %44 = vst [vmem:[%s80_s1 + $0x1] sm:$0x1] %v36_v8 }

// kernel: tile.19
= control target key start
LH: loop header
LB: loop body
LE: loop exit
PB: predicated region body
PF: predicated region fallthrough
CT: control target
= control target key end

     0   :  { %s22_s0 = inlined_call_operand.vmem [shape: f32[64], index: 0, kind: input, shape index: {}]   ;;  %s23_s1 = inlined_call_operand.vmem [shape: f32[3,64], index: 1, kind: output, shape index: {}]  }
   0x1   :  { %v4_v0 = vld [vmem:[%s22_s0] ss:$0 sm:$0xff] }
   0x2   :  { %5 = vst [vmem:[%s23_s1] sm:$0xf] %v4_v0 }

// kernel: tile.20
= control target key start
LH: loop header
LB: loop body
LE: loop exit
PB: predicated region body
PF: predicated region fallthrough
CT: control target
= control target key end

     0   :  { %vm9_vm0 = vcmask 523264   ;;  %s33_s8 = smov 64   ;;  %vm15_vm1 = vcmask 1048064   ;;  %s53_s0 = inlined_call_operand.vmem [shape: f32[3,64], index: 0, kind: input, shape index: {}]   ;;  %s54_s1 = inlined_call_operand.vmem [shape: f32[1,192], index: 1, kind: output, shape index: {}]  }
   0x1   :  { %v5_v0 = vld [vmem:[%s53_s0] sm:$0xf]  ;;  %s7_s0 = smov 3 }
   0x2   :  { %6 = vst [vmem:[#allocation1] sm:$0xf] %v5_v0 }
   0x9   :  { %v12_v1 = vld [vmem:[#allocation1 + $0x1] sm:$0x1]   ;;  %v8_v2 = vld [vmem:[#allocation1] ss:$2 sm:%s7_s0]  }
   0xa   :  { %13 = vrot.lane.b32.xlu0 %v12_v1, %s33_s8  ;;  %10 = vst.msk [vmem:[#allocation0] ss:$8 sm:$0x3] %vm9_vm0, %v8_v2  }
  0x11   :  { %v26_v3 = vld [vmem:[#allocation0 + $0x8] sm:$0x1] }
  0x12   :  { %31 = vst [vmem:[%s54_s1 + $0x1] sm:$0x1] %v26_v3 }
  0x7c   :  { %v14_v4 = vpop.permute.xlu0 %13  }
  0x7d   :  { %16 = vst.msk [vmem:[#allocation0] sm:$0x1] %vm15_vm1, %v14_v4  }
  0x84   :  { %v21_v5 = vld [vmem:[#allocation0] sm:$0x1] }
  0x85   :  { %24 = vst [vmem:[%s54_s1] sm:$0x1] %v21_v5 }

// kernel: rainbow_body_forward.1
= control target key start
LH: loop header
LB: loop body
LE: loop exit
PB: predicated region body
PF: predicated region fallthrough
CT: control target
= control target key end

     0   :  { %vm4339_vm0 = vcmask 1043456   ;;  %vm4340_vm1 = vcmask 523268   ;;  %vm4482_vm3 = vcmask 523264   ;;  %s8444_s1 = inlined_call_operand.vmem [shape: bf16[1152,256], index: 1, kind: input, shape index: {}]   ;;  %s8445_s0 = inlined_call_operand.vmem [shape: bf16[1,2,64,1152], index: 0, kind: input, shape index: {}]   ;;  %s8446_s2 = inlined_call_operand.vmem [shape: bf16[2,512,192], index: 2, kind: input, shape index: {}]   ;;  %s8447_s4 = inlined_call_operand.vmem [shape: f32[1,256], index: 4, kind: input, shape index: {}]   ;;  %s8448_s3 = inlined_call_operand.vmem [shape: bf16[3,192,64], index: 3, kind: input, shape index: {}]   ;;  %s8449_s5 = inlined_call_operand.vmem [shape: f32[1,192], index: 5, kind: input, shape index: {}]   ;;  %s8450_s6 = inlined_call_operand.vmem [shape: f32[1,64], index: 6, kind: input, shape index: {}]   ;;  %s8451_s7 = inlined_call_operand.vmem [shape: f32[1,16,64], index: 7, kind: output, shape index: {}]  }
   0x1   :  { %v5592_v0 = vld [vmem:[%s8444_s1 + $0x74] ss:$8 sps:$4 sm:$0xff]   ;;  %v5596_v2 = vld [vmem:[%s8444_s1 + $0x70] ss:$8 sps:$4 sm:$0xff]   ;;  %v5598_v4 = vld [vmem:[%s8444_s1 + $0x64] ss:$8 sps:$4 sm:$0xff]  }
   0x2   :  { %v5594_v1 = vld [vmem:[%s8444_s1 + $0x174] ss:$8 sps:$4 sm:$0xff]   ;;  %1127 = vmatprep.subr.bf16.mxu0 %v5592_v0  ;;  %v5597_v3 = vld [vmem:[%s8444_s1 + $0x170] ss:$8 sps:$4 sm:$0xff]   ;;  %v5600_v5 = vld [vmem:[%s8444_s1 + $0x164] ss:$8 sps:$4 sm:$0xff]  }
   0x3   :  { %1200 = vmatprep.subr.bf16.mxu1 %v5594_v1  ;;  %1128 = vmatpush1.bf16.msra.mxu0 %v5596_v2  ;;  %v5602_v6 = vld [vmem:[%s8444_s1 + $0x60] ss:$8 sps:$4 sm:$0xff]   ;;  %v5604_v8 = vld [vmem:[%s8444_s1 + $0x54] ss:$8 sps:$4 sm:$0xff]   ;;  %v5608_v10 = vld [vmem:[%s8444_s1 + $0x50] ss:$8 sps:$4 sm:$0xff]  }
   0x4   :  { %1201 = vmatpush1.bf16.msra.mxu1 %v5597_v3  ;;  %1129 = vmatprep.subr.bf16.mxu0 %v5598_v4  ;;  %v5603_v7 = vld [vmem:[%s8444_s1 + $0x160] ss:$8 sps:$4 sm:$0xff]   ;;  %v5606_v9 = vld [vmem:[%s8444_s1 + $0x154] ss:$8 sps:$4 sm:$0xff]   ;;  %v5609_v11 = vld [vmem:[%s8444_s1 + $0x150] ss:$8 sps:$4 sm:$0xff]  }
   0x5   :  { %1202 = vmatprep.subr.bf16.mxu1 %v5600_v5  ;;  %v5610_v12 = vld [vmem:[%s8444_s1 + $0x44] ss:$8 sps:$4 sm:$0xff]   ;;  %v5614_v14 = vld [vmem:[%s8444_s1 + $0x40] ss:$8 sps:$4 sm:$0xff]   ;;  %v5616_v16 = vld [vmem:[%s8444_s1 + $0x34] ss:$8 sps:$4 sm:$0xff]  }
   0x6   :  { %v5612_v13 = vld [vmem:[%s8444_s1 + $0x144] ss:$8 sps:$4 sm:$0xff]   ;;  %v5615_v15 = vld [vmem:[%s8444_s1 + $0x140] ss:$8 sps:$4 sm:$0xff]   ;;  %v5618_v17 = vld [vmem:[%s8444_s1 + $0x134] ss:$8 sps:$4 sm:$0xff]  }
   0x7   :  { %1130 = vmatpush1.bf16.msra.mxu0 %v5602_v6  ;;  %v5620_v18 = vld [vmem:[%s8444_s1 + $0x30] ss:$8 sps:$4 sm:$0xff]   ;;  %v5622_v20 = vld [vmem:[%s8444_s1 + $0x24] ss:$8 sps:$4 sm:$0xff]   ;;  %v5626_v22 = vld [vmem:[%s8444_s1 + $0x20] ss:$8 sps:$4 sm:$0xff]  }
   0x8   :  { %1203 = vmatpush1.bf16.msra.mxu1 %v5603_v7  ;;  %1131 = vmatprep.subr.bf16.mxu0 %v5604_v8  ;;  %v5621_v19 = vld [vmem:[%s8444_s1 + $0x130] ss:$8 sps:$4 sm:$0xff]   ;;  %v5624_v21 = vld [vmem:[%s8444_s1 + $0x124] ss:$8 sps:$4 sm:$0xff]   ;;  %v5627_v23 = vld [vmem:[%s8444_s1 + $0x120] ss:$8 sps:$4 sm:$0xff]  }
   0x9   :  { %1204 = vmatprep.subr.bf16.mxu1 %v5606_v9  ;;  %v5628_v24 = vld [vmem:[%s8444_s1 + $0x14] ss:$8 sps:$4 sm:$0xff]   ;;  %v5632_v26 = vld [vmem:[%s8444_s1 + $0x10] ss:$8 sps:$4 sm:$0xff]   ;;  %v5634_v28 = vld [vmem:[%s8444_s1 + $0x4] ss:$8 sps:$4 sm:$0xff]  }
   0xa   :  { %v5630_v25 = vld [vmem:[%s8444_s1 + $0x114] ss:$8 sps:$4 sm:$0xff]   ;;  %v5633_v27 = vld [vmem:[%s8444_s1 + $0x110] ss:$8 sps:$4 sm:$0xff]   ;;  %v5636_v29 = vld [vmem:[%s8444_s1 + $0x104] ss:$8 sps:$4 sm:$0xff]  }
   0xb   :  { %1132 = vmatpush1.bf16.msra.mxu0 %v5608_v10  ;;  %v5638_v30 = vld [vmem:[%s8444_s1] ss:$8 sps:$4 sm:$0xff]   ;;  %v5640_v32 = vld [vmem:[%s8444_s1 + $0xf4] ss:$8 sps:$4 sm:$0xff]   ;;  %v5644_v34 = vld [vmem:[%s8444_s1 + $0xf0] ss:$8 sps:$4 sm:$0xff]  }
   0xc   :  { %1205 = vmatpush1.bf16.msra.mxu1 %v5609_v11  ;;  %1133 = vmatprep.subr.bf16.mxu0 %v5610_v12  ;;  %v5639_v31 = vld [vmem:[%s8444_s1 + $0x100] ss:$8 sps:$4 sm:$0xff]   ;;  %v5642_v33 = vld [vmem:[%s8444_s1 + $0x1f4] ss:$8 sps:$4 sm:$0xff]   ;;  %v5645_v35 = vld [vmem:[%s8444_s1 + $0x1f0] ss:$8 sps:$4 sm:$0xff]  }
   0xd   :  { %1206 = vmatprep.subr.bf16.mxu1 %v5612_v13  ;;  %v5646_v36 = vld [vmem:[%s8444_s1 + $0xe4] ss:$8 sps:$4 sm:$0xff]   ;;  %v5650_v38 = vld [vmem:[%s8444_s1 + $0xe0] ss:$8 sps:$4 sm:$0xff]   ;;  %v5652_v40 = vld [vmem:[%s8444_s1 + $0xd4] ss:$8 sps:$4 sm:$0xff]  }
   0xe   :  { %v5648_v37 = vld [vmem:[%s8444_s1 + $0x1e4] ss:$8 sps:$4 sm:$0xff]   ;;  %v5651_v39 = vld [vmem:[%s8444_s1 + $0x1e0] ss:$8 sps:$4 sm:$0xff]   ;;  %v5654_v41 = vld [vmem:[%s8444_s1 + $0x1d4] ss:$8 sps:$4 sm:$0xff]  }
   0xf   :  { %1134 = vmatpush1.bf16.msra.mxu0 %v5614_v14  ;;  %v5656_v42 = vld [vmem:[%s8444_s1 + $0xd0] ss:$8 sps:$4 sm:$0xff]   ;;  %v5658_v44 = vld [vmem:[%s8444_s1 + $0xc4] ss:$8 sps:$4 sm:$0xff]   ;;  %v5662_v46 = vld [vmem:[%s8444_s1 + $0xc0] ss:$8 sps:$4 sm:$0xff]  }
  0x10   :  { %1207 = vmatpush1.bf16.msra.mxu1 %v5615_v15  ;;  %1135 = vmatprep.subr.bf16.mxu0 %v5616_v16  ;;  %v5657_v43 = vld [vmem:[%s8444_s1 + $0x1d0] ss:$8 sps:$4 sm:$0xff]   ;;  %v5660_v45 = vld [vmem:[%s8444_s1 + $0x1c4] ss:$8 sps:$4 sm:$0xff]   ;;  %v5663_v47 = vld [vmem:[%s8444_s1 + $0x1c0] ss:$8 sps:$4 sm:$0xff]  }
  0x11   :  { %1208 = vmatprep.subr.bf16.mxu1 %v5618_v17  ;;  %v5664_v48 = vld [vmem:[%s8444_s1 + $0xb4] ss:$8 sps:$4 sm:$0xff]   ;;  %v5690_v49 = vld [vmem:[%s8445_s0 + $0x4] ss:$36 sps:$4 sm:$0xff]   ;;  %v5693_v51 = vld [vmem:[%s8445_s0 + $0xc] ss:$36 sps:$4 sm:$0xff]  }
  0x12   :  { %v5666_v50 = vld [vmem:[%s8444_s1 + $0x1b4] ss:$8 sps:$4 sm:$0xff]   ;;  %1159 = vmatprep.mubr.bf16.mxu0 %v5690_v49  ;;  %v5668_v52 = vld [vmem:[%s8444_s1 + $0xb0] ss:$8 sps:$4 sm:$0xff]   ;;  %1232 = vmatprep.mubr.bf16.mxu1 %v5693_v51  ;;  %v5670_v54 = vld [vmem:[%s8444_s1 + $0xa4] ss:$8 sps:$4 sm:$0xff]  }
  0x13   :  { %1136 = vmatpush1.bf16.msra.mxu0 %v5620_v18  ;;  %v5669_v53 = vld [vmem:[%s8444_s1 + $0x1b0] ss:$8 sps:$4 sm:$0xff]   ;;  %v5672_v55 = vld [vmem:[%s8444_s1 + $0x1a4] ss:$8 sps:$4 sm:$0xff]   ;;  %v5674_v56 = vld [vmem:[%s8444_s1 + $0xa0] ss:$8 sps:$4 sm:$0xff]  }
  0x14   :  { %1209 = vmatpush1.bf16.msra.mxu1 %v5621_v19  ;;  %1137 = vmatprep.subr.bf16.mxu0 %v5622_v20  ;;  %v5675_v57 = vld [vmem:[%s8444_s1 + $0x1a0] ss:$8 sps:$4 sm:$0xff]   ;;  %v5676_v58 = vld [vmem:[%s8444_s1 + $0x94] ss:$8 sps:$4 sm:$0xff]   ;;  %v5680_v60 = vld [vmem:[%s8444_s1 + $0x90] ss:$8 sps:$4 sm:$0xff]  }
  0x15   :  { %1210 = vmatprep.subr.bf16.mxu1 %v5624_v21  ;;  %v5678_v59 = vld [vmem:[%s8444_s1 + $0x194] ss:$8 sps:$4 sm:$0xff]   ;;  %v5681_v61 = vld [vmem:[%s8444_s1 + $0x190] ss:$8 sps:$4 sm:$0xff]   ;;  %v5682_v62 = vld [vmem:[%s8444_s1 + $0x84] ss:$8 sps:$4 sm:$0xff]  }
  0x16   :  { %v5684_v63 = vld [vmem:[%s8444_s1 + $0x184] ss:$8 sps:$4 sm:$0xff]   ;;  %v5686_v0 = vld [vmem:[%s8444_s1 + $0x80] ss:$8 sps:$4 sm:$0xff]   ;;  %v5696_v2 = vld [vmem:[%s8444_s1 + $0x274] ss:$8 sps:$4 sm:$0xff]  }
  0x17   :  { %1138 = vmatpush1.bf16.msra.mxu0 %v5626_v22  ;;  %v5687_v1 = vld [vmem:[%s8444_s1 + $0x180] ss:$8 sps:$4 sm:$0xff]   ;;  %v5699_v3 = vld [vmem:[%s8444_s1 + $0x374] ss:$8 sps:$4 sm:$0xff]   ;;  %v5694_v6 = vld [vmem:[%s8444_s1 + $0x270] ss:$8 sps:$4 sm:$0xff]  }
  0x18   :  { %1211 = vmatpush1.bf16.msra.mxu1 %v5627_v23  ;;  %1139 = vmatprep.subr.bf16.mxu0 %v5628_v24  ;;  %v5688_v4 = vld [vmem:[%s8445_s0] ss:$36 sps:$4 sm:$0xff]   ;;  %v5691_v5 = vld [vmem:[%s8445_s0 + $0x8] ss:$36 sps:$4 sm:$0xff]   ;;  %v5697_v7 = vld [vmem:[%s8444_s1 + $0x370] ss:$8 sps:$4 sm:$0xff]  }
  0x19   :  { %1212 = vmatprep.subr.bf16.mxu1 %v5630_v25  ;;  %v5702_v8 = vld [vmem:[%s8444_s1 + $0x264] ss:$8 sps:$4 sm:$0xff]   ;;  %v5700_v10 = vld [vmem:[%s8444_s1 + $0x260] ss:$8 sps:$4 sm:$0xff]   ;;  %v5708_v13 = vld [vmem:[%s8444_s1 + $0x254] ss:$8 sps:$4 sm:$0xff]  }
  0x1a   :  { %v5705_v9 = vld [vmem:[%s8444_s1 + $0x364] ss:$8 sps:$4 sm:$0xff]   ;;  %v5703_v12 = vld [vmem:[%s8444_s1 + $0x360] ss:$8 sps:$4 sm:$0xff]   ;;  %v5711_v14 = vld [vmem:[%s8444_s1 + $0x354] ss:$8 sps:$4 sm:$0xff]  }
  0x1b   :  { %1140 = vmatpush1.bf16.msra.mxu0 %v5632_v26  ;;  %v5742_v11 = vld [vmem:[%s8445_s0 + $0x4c] ss:$36 sps:$4 sm:$0xff]   ;;  %v5751_v18 = vld [vmem:[%s8445_s0 + $0x54] ss:$36 sps:$4 sm:$0xff]   ;;  %v5712_v22 = vld [vmem:[%s8444_s1 + $0x240] ss:$8 sps:$4 sm:$0xff]  }
  0x1c   :  { %1213 = vmatpush1.bf16.msra.mxu1 %v5633_v27  ;;  %1141 = vmatprep.subr.bf16.mxu0 %v5634_v28  ;;  %v5706_v15 = vld [vmem:[%s8444_s1 + $0x250] ss:$8 sps:$4 sm:$0xff]   ;;  %v5750_v17 = vld [vmem:[%s8445_s0 + $0x48] ss:$36 sps:$4 sm:$0xff]   ;;  %v5720_v25 = vld [vmem:[%s8444_s1 + $0x234] ss:$8 sps:$4 sm:$0xff]  }
  0x1d   :  { %1214 = vmatprep.subr.bf16.mxu1 %v5636_v29  ;;  %v5709_v16 = vld [vmem:[%s8444_s1 + $0x350] ss:$8 sps:$4 sm:$0xff]   ;;  %v5714_v20 = vld [vmem:[%s8444_s1 + $0x244] ss:$8 sps:$4 sm:$0xff]   ;;  %v5715_v24 = vld [vmem:[%s8444_s1 + $0x340] ss:$8 sps:$4 sm:$0xff]  }
  0x1e   :  { %v5753_v19 = vld [vmem:[%s8445_s0 + $0x50] ss:$36 sps:$4 sm:$0xff]   ;;  %v5717_v21 = vld [vmem:[%s8444_s1 + $0x344] ss:$8 sps:$4 sm:$0xff]   ;;  %vm8354_vm2 = vmor %vm4340_vm1, %vm4339_vm0 }
  0x1f   :  { %1142 = vmatpush1.bf16.msra.mxu0 %v5638_v30  ;;  %v5760_v23 = vld [vmem:[%s8445_s0 + $0x94] ss:$36 sps:$4 sm:$0xff]   ;;  %v5769_v30 = vld [vmem:[%s8445_s0 + $0x9c] ss:$36 sps:$4 sm:$0xff]  }
  0x20   :  { %1215 = vmatpush1.bf16.msra.mxu1 %v5639_v31  ;;  %1143 = vmatprep.subr.bf16.mxu0 %v5640_v32  ;;  %v5723_v26 = vld [vmem:[%s8444_s1 + $0x334] ss:$8 sps:$4 sm:$0xff]   ;;  %v5718_v27 = vld [vmem:[%s8444_s1 + $0x230] ss:$8 sps:$4 sm:$0xff]   ;;  %v5726_v32 = vld [vmem:[%s8444_s1 + $0x224] ss:$8 sps:$4 sm:$0xff]  }
  0x21   :  { %1216 = vmatprep.subr.bf16.mxu1 %v5642_v33  ;;  %v5721_v28 = vld [vmem:[%s8444_s1 + $0x330] ss:$8 sps:$4 sm:$0xff]   ;;  %v5729_v33 = vld [vmem:[%s8444_s1 + $0x324] ss:$8 sps:$4 sm:$0xff]   ;;  %v5749_v49 = vld [vmem:[%s8444_s1 + $0x3f4] ss:$8 sps:$4 sm:$0xff]  }
  0x22   :  { %v5768_v29 = vld [vmem:[%s8445_s0 + $0x90] ss:$36 sps:$4 sm:$0xff]   ;;  %v5771_v31 = vld [vmem:[%s8445_s0 + $0x98] ss:$36 sps:$4 sm:$0xff]  }
  0x23   :  { %1144 = vmatpush2.bf16.msra.mxu0 %v5644_v34  ;;  %v5724_v34 = vld [vmem:[%s8444_s1 + $0x220] ss:$8 sps:$4 sm:$0xff]   ;;  %v5747_v51 = vld [vmem:[%s8444_s1 + $0x3f0] ss:$8 sps:$4 sm:$0xff]  }
  0x24   :  { %1217 = vmatpush2.bf16.msra.mxu1 %v5645_v35  ;;  %1145 = vmatprep.subr.bf16.mxu0 %v5646_v36  ;;  %v5778_v35 = vld [vmem:[%s8445_s0 + $0xdc] ss:$36 sps:$4 sm:$0xff]  }
  0x25   :  { %1218 = vmatprep.subr.bf16.mxu1 %v5648_v37  ;;  %v5727_v36 = vld [vmem:[%s8444_s1 + $0x320] ss:$8 sps:$4 sm:$0xff]   ;;  %v5732_v37 = vld [vmem:[%s8444_s1 + $0x214] ss:$8 sps:$4 sm:$0xff]  }
  0x27   :  { %1146 = vmatpush2.bf16.msra.mxu0 %v5650_v38  ;;  %v5735_v38 = vld [vmem:[%s8444_s1 + $0x314] ss:$8 sps:$4 sm:$0xff]  }
  0x28   :  { %1219 = vmatpush2.bf16.msra.mxu1 %v5651_v39  ;;  %1147 = vmatprep.subr.bf16.mxu0 %v5652_v40  ;;  %v5730_v39 = vld [vmem:[%s8444_s1 + $0x210] ss:$8 sps:$4 sm:$0xff]  }
  0x29   :  { %1220 = vmatprep.subr.bf16.mxu1 %v5654_v41  ;;  %v5733_v40 = vld [vmem:[%s8444_s1 + $0x310] ss:$8 sps:$4 sm:$0xff]  }
  0x2a   :  { %v5786_v41 = vld [vmem:[%s8445_s0 + $0xd8] ss:$36 sps:$4 sm:$0xff]  }
  0x2b   :  { %1148 = vmatpush2.bf16.msra.mxu0 %v5656_v42  ;;  %v5787_v42 = vld [vmem:[%s8445_s0 + $0xe4] ss:$36 sps:$4 sm:$0xff]  }
  0x2c   :  { %1221 = vmatpush2.bf16.msra.mxu1 %v5657_v43  ;;  %1149 = vmatprep.subr.bf16.mxu0 %v5658_v44  ;;  %v5789_v43 = vld [vmem:[%s8445_s0 + $0xe0] ss:$36 sps:$4 sm:$0xff]  }
  0x2d   :  { %1222 = vmatprep.subr.bf16.mxu1 %v5660_v45  ;;  %v5738_v44 = vld [vmem:[%s8444_s1 + $0x204] ss:$8 sps:$4 sm:$0xff]  }
  0x2e   :  { %v5741_v45 = vld [vmem:[%s8444_s1 + $0x304] ss:$8 sps:$4 sm:$0xff]  }
  0x2f   :  { %1150 = vmatpush2.bf16.msra.mxu0 %v5662_v46  ;;  %v5736_v46 = vld [vmem:[%s8444_s1 + $0x200] ss:$8 sps:$4 sm:$0xff]  }
  0x30   :  { %1223 = vmatpush2.bf16.msra.mxu1 %v5663_v47  ;;  %1151 = vmatprep.subr.bf16.mxu0 %v5664_v48  ;;  %v5739_v47 = vld [vmem:[%s8444_s1 + $0x300] ss:$8 sps:$4 sm:$0xff]   ;;  %v5746_v48 = vld [vmem:[%s8444_s1 + $0x2f4] ss:$8 sps:$4 sm:$0xff]  }
  0x31   :  { %1224 = vmatprep.subr.bf16.mxu1 %v5666_v50  ;;  %v5744_v50 = vld [vmem:[%s8444_s1 + $0x2f0] ss:$8 sps:$4 sm:$0xff]  }
  0x33   :  { %1152 = vmatpush2.bf16.msra.mxu0 %v5668_v52  ;;  %v5756_v52 = vld [vmem:[%s8444_s1 + $0x2e4] ss:$8 sps:$4 sm:$0xff]  }
  0x34   :  { %1225 = vmatpush2.bf16.msra.mxu1 %v5669_v53  ;;  %1153 = vmatprep.subr.bf16.mxu0 %v5670_v54  ;;  %v5759_v53 = vld [vmem:[%s8444_s1 + $0x3e4] ss:$8 sps:$4 sm:$0xff]   ;;  %v5810_v54 = vld [vmem:[%s8445_s0 + $0x14] ss:$36 sps:$4 sm:$0xff]  }
  0x35   :  { %1226 = vmatprep.subr.bf16.mxu1 %v5672_v55  ;;  %v5813_v55 = vld [vmem:[%s8445_s0 + $0x1c] ss:$36 sps:$4 sm:$0xff]  }
  0x37   :  { %1154 = vmatpush2.bf16.msra.mxu0 %v5674_v56  ;;  %v5754_v56 = vld [vmem:[%s8444_s1 + $0x2e0] ss:$8 sps:$4 sm:$0xff]  }
  0x38   :  { %1227 = vmatpush2.bf16.msra.mxu1 %v5675_v57  ;;  %1155 = vmatprep.subr.bf16.mxu0 %v5676_v58  ;;  %v5757_v57 = vld [vmem:[%s8444_s1 + $0x3e0] ss:$8 sps:$4 sm:$0xff]   ;;  %v5764_v58 = vld [vmem:[%s8444_s1 + $0x2d4] ss:$8 sps:$4 sm:$0xff]  }
  0x39   :  { %1228 = vmatprep.subr.bf16.mxu1 %v5678_v59  ;;  %v5767_v59 = vld [vmem:[%s8444_s1 + $0x3d4] ss:$8 sps:$4 sm:$0xff]  }
  0x3b   :  { %1156 = vmatpush2.bf16.msra.mxu0 %v5680_v60  ;;  %v5762_v60 = vld [vmem:[%s8444_s1 + $0x2d0] ss:$8 sps:$4 sm:$0xff]  }
  0x3c   :  { %1229 = vmatpush2.bf16.msra.mxu1 %v5681_v61  ;;  %1157 = vmatprep.subr.bf16.mxu0 %v5682_v62  ;;  %v5765_v61 = vld [vmem:[%s8444_s1 + $0x3d0] ss:$8 sps:$4 sm:$0xff]   ;;  %v5774_v62 = vld [vmem:[%s8444_s1 + $0x2c4] ss:$8 sps:$4 sm:$0xff]  }
  0x3d   :  { %1230 = vmatprep.subr.bf16.mxu1 %v5684_v63  ;;  %v5777_v63 = vld [vmem:[%s8444_s1 + $0x3c4] ss:$8 sps:$4 sm:$0xff]  }
  0x3f   :  { %1158 = vmatpush2.bf16.msra.mxu0 %v5686_v0  ;;  %v5772_v0 = vld [vmem:[%s8444_s1 + $0x2c0] ss:$8 sps:$4 sm:$0xff]  }
  0x40   :  { %1231 = vmatpush2.bf16.msra.mxu1 %v5687_v1  ;;  %1273 = vmatprep.subr.bf16.mxu0 %v5696_v2  ;;  %v5775_v1 = vld [vmem:[%s8444_s1 + $0x3c0] ss:$8 sps:$4 sm:$0xff]   ;;  %v5782_v2 = vld [vmem:[%s8444_s1 + $0x2b4] ss:$8 sps:$4 sm:$0xff]  }
  0x41   :  { %1346 = vmatprep.subr.bf16.mxu1 %v5699_v3  ;;  %v5785_v3 = vld [vmem:[%s8444_s1 + $0x3b4] ss:$8 sps:$4 sm:$0xff]  }
  0x42   :  { %1160 = vmatmul.mubr.bf16.vlgmr.msra.gmra.mxu0 %v5688_v4  ;;  %v5780_v4 = vld [vmem:[%s8444_s1 + $0x2b0] ss:$8 sps:$4 sm:$0xff]  }
  0x43   :  { %1233 = vmatmul.mubr.bf16.vlgmr.msra.gmra.mxu1 %v5691_v5  ;;  %1274 = vmatpush1.bf16.msra.mxu0 %v5694_v6  ;;  %v5783_v5 = vld [vmem:[%s8444_s1 + $0x3b0] ss:$8 sps:$4 sm:$0xff]   ;;  %v5792_v6 = vld [vmem:[%s8444_s1 + $0x2a4] ss:$8 sps:$4 sm:$0xff]  }
  0x44   :  { %1347 = vmatpush1.bf16.msra.mxu1 %v5697_v7  ;;  %1275 = vmatprep.subr.bf16.mxu0 %v5702_v8  ;;  %v5795_v7 = vld [vmem:[%s8444_s1 + $0x3a4] ss:$8 sps:$4 sm:$0xff]   ;;  %v5790_v8 = vld [vmem:[%s8444_s1 + $0x2a0] ss:$8 sps:$4 sm:$0xff]  }
  0x45   :  { %1348 = vmatprep.subr.bf16.mxu1 %v5705_v9  ;;  %1169 = vmatprep.mubr.bf16.mxu0 %v5742_v11  ;;  %v5793_v9 = vld [vmem:[%s8444_s1 + $0x3a0] ss:$8 sps:$4 sm:$0xff]   ;;  %v5801_v11 = vld [vmem:[%s8444_s1 + $0x394] ss:$8 sps:$4 sm:$0xff]  }
  0x46   :  { %1242 = vmatprep.mubr.bf16.mxu1 %v5751_v18  ;;  %v5816_v18 = vld [vmem:[%s8444_s1 + $0x474] ss:$8 sps:$4 sm:$0xff]  }
  0x47   :  { %1276 = vmatpush1.bf16.msra.mxu0 %v5700_v10  ;;  %v5798_v10 = vld [vmem:[%s8444_s1 + $0x294] ss:$8 sps:$4 sm:$0xff]  }
  0x48   :  { %1349 = vmatpush1.bf16.msra.mxu1 %v5703_v12  ;;  %1277 = vmatprep.subr.bf16.mxu0 %v5708_v13  ;;  %v5796_v12 = vld [vmem:[%s8444_s1 + $0x290] ss:$8 sps:$4 sm:$0xff]  }
  0x49   :  { %1350 = vmatprep.subr.bf16.mxu1 %v5711_v14  ;;  %v5799_v13 = vld [vmem:[%s8444_s1 + $0x390] ss:$8 sps:$4 sm:$0xff]   ;;  %v5804_v14 = vld [vmem:[%s8444_s1 + $0x284] ss:$8 sps:$4 sm:$0xff]  }
  0x4a   :  { %1170 = vmatmul.mubr.bf16.gmra.mxu0 %v5750_v17  ;;  %v5805_v17 = vld [vmem:[%s8444_s1 + $0x380] ss:$8 sps:$4 sm:$0xff]  }
  0x4b   :  { %1243 = vmatmul.mubr.bf16.gmra.mxu1 %v5753_v19  ;;  %1278 = vmatpush1.bf16.msra.mxu0 %v5706_v15  ;;  %v5807_v15 = vld [vmem:[%s8444_s1 + $0x384] ss:$8 sps:$4 sm:$0xff]   ;;  %v5862_v19 = vld [vmem:[%s8444_s1 + $0x174] ss:$8 sps:$4 sm:$0xff]  }
  0x4c   :  { %1351 = vmatpush1.bf16.msra.mxu1 %v5709_v16  ;;  %1279 = vmatprep.subr.bf16.mxu0 %v5714_v20  ;;  %v5802_v16 = vld [vmem:[%s8444_s1 + $0x280] ss:$8 sps:$4 sm:$0xff]   ;;  %v5808_v20 = vld [vmem:[%s8445_s0 + $0x10] ss:$36 sps:$4 sm:$0xff]  }
  0x4d   :  { %1352 = vmatprep.subr.bf16.mxu1 %v5717_v21  ;;  %1179 = vmatprep.mubr.bf16.mxu0 %v5760_v23  ;;  %v5811_v21 = vld [vmem:[%s8445_s0 + $0x18] ss:$36 sps:$4 sm:$0xff]  }
  0x4e   :  { %1252 = vmatprep.mubr.bf16.mxu1 %v5769_v30  ;;  %v5820_v23 = vld [vmem:[%s8445_s0 + $0x5c] ss:$36 sps:$4 sm:$0xff]  }
  0x4f   :  { %1280 = vmatpush1.bf16.msra.mxu0 %v5712_v22  ;;  %v5814_v22 = vld [vmem:[%s8444_s1 + $0x470] ss:$8 sps:$4 sm:$0xff]   ;;  %v5825_v30 = vld [vmem:[%s8445_s0 + $0x60] ss:$36 sps:$4 sm:$0xff]  }
  0x50   :  { %1353 = vmatpush1.bf16.msra.mxu1 %v5715_v24  ;;  %1281 = vmatprep.subr.bf16.mxu0 %v5720_v25  ;;  %v5819_v24 = vld [vmem:[%s8444_s1 + $0x464] ss:$8 sps:$4 sm:$0xff]  }
  0x51   :  { %1354 = vmatprep.subr.bf16.mxu1 %v5723_v26  ;;  %v5822_v25 = vld [vmem:[%s8445_s0 + $0x64] ss:$36 sps:$4 sm:$0xff]   ;;  %v5860_v26 = vld [vmem:[%s8444_s1 + $0x170] ss:$8 sps:$4 sm:$0xff]  }
  0x52   :  { %1180 = vmatmul.mubr.bf16.gmra.mxu0 %v5768_v29  ;;  %v5824_v29 = vld [vmem:[%s8445_s0 + $0x58] ss:$36 sps:$4 sm:$0xff]  }
  0x53   :  { %1253 = vmatmul.mubr.bf16.gmra.mxu1 %v5771_v31  ;;  %1282 = vmatpush1.bf16.msra.mxu0 %v5718_v27  ;;  %v5868_v27 = vld [vmem:[%s8444_s1 + $0x164] ss:$8 sps:$4 sm:$0xff]   ;;  %v5828_v31 = vld [vmem:[%s8444_s1 + $0x454] ss:$8 sps:$4 sm:$0xff]  }
  0x54   :  { %1355 = vmatpush1.bf16.msra.mxu1 %v5721_v28  ;;  %1283 = vmatprep.subr.bf16.mxu0 %v5726_v32  ;;  %v5817_v28 = vld [vmem:[%s8444_s1 + $0x460] ss:$8 sps:$4 sm:$0xff]   ;;  %v5826_v32 = vld [vmem:[%s8444_s1 + $0x450] ss:$8 sps:$4 sm:$0xff]  }
  0x55   :  { %1356 = vmatprep.subr.bf16.mxu1 %v5729_v33  ;;  %1189 = vmatprep.mubr.bf16.mxu0 %v5778_v35  ;;  %v5866_v33 = vld [vmem:[%s8444_s1 + $0x160] ss:$8 sps:$4 sm:$0xff]  }
  0x56   :  { %1262 = vmatprep.mubr.bf16.mxu1 %v5787_v42  ;;  %v5832_v35 = vld [vmem:[%s8445_s0 + $0xa4] ss:$36 sps:$4 sm:$0xff]  }
  0x57   :  { %1284 = vmatpush1.bf16.msra.mxu0 %v5724_v34  ;;  %v5831_v34 = vld [vmem:[%s8444_s1 + $0x444] ss:$8 sps:$4 sm:$0xff]  }
  0x58   :  { %1357 = vmatpush1.bf16.msra.mxu1 %v5727_v36  ;;  %1285 = vmatprep.subr.bf16.mxu0 %v5732_v37  ;;  %v5834_v36 = vld [vmem:[%s8445_s0 + $0xac] ss:$36 sps:$4 sm:$0xff]   ;;  %v5875_v37 = vld [vmem:[%s8444_s1 + $0x154] ss:$8 sps:$4 sm:$0xff]   ;;  %v5836_v42 = vld [vmem:[%s8445_s0 + $0xa0] ss:$36 sps:$4 sm:$0xff]  }
  0x59   :  { %1358 = vmatprep.subr.bf16.mxu1 %v5735_v38  ;;  %v5829_v38 = vld [vmem:[%s8444_s1 + $0x440] ss:$8 sps:$4 sm:$0xff]  }
  0x5a   :  { %1190 = vmatmul.mubr.bf16.gmra.mxu0 %v5786_v41  ;;  %v5840_v41 = vld [vmem:[%s8444_s1 + $0x434] ss:$8 sps:$4 sm:$0xff]  }
  0x5b   :  { %1263 = vmatmul.mubr.bf16.gmra.mxu1 %v5789_v43  ;;  %1286 = vmatpush1.bf16.msra.mxu0 %v5730_v39  ;;  %v5873_v39 = vld [vmem:[%s8444_s1 + $0x150] ss:$8 sps:$4 sm:$0xff]   ;;  %v5837_v43 = vld [vmem:[%s8445_s0 + $0xa8] ss:$36 sps:$4 sm:$0xff]  }
  0x5c   :  { %1359 = vmatpush1.bf16.msra.mxu1 %v5733_v40  ;;  %1287 = vmatprep.subr.bf16.mxu0 %v5738_v44  ;;  %v5881_v40 = vld [vmem:[%s8444_s1 + $0x144] ss:$8 sps:$4 sm:$0xff]   ;;  %v5838_v44 = vld [vmem:[%s8444_s1 + $0x430] ss:$8 sps:$4 sm:$0xff]  }
  0x5d   :  { %1360 = vmatprep.subr.bf16.mxu1 %v5741_v45  ;;  %1305 = vmatprep.mubr.bf16.mxu0 %v5810_v54  ;;  %v5843_v45 = vld [vmem:[%s8444_s1 + $0x424] ss:$8 sps:$4 sm:$0xff]   ;;  %v5849_v54 = vld [vmem:[%s8445_s0 + $0xf0] ss:$36 sps:$4 sm:$0xff]  }
  0x5e   :  { %1378 = vmatprep.mubr.bf16.mxu1 %v5813_v55  ;;  %v5850_v55 = vld [vmem:[%s8444_s1 + $0x410] ss:$8 sps:$4 sm:$0xff]  }
  0x5f   :  { %1288 = vmatpush1.bf16.msra.mxu0 %v5736_v46  ;;  %v5844_v46 = vld [vmem:[%s8445_s0 + $0xec] ss:$36 sps:$4 sm:$0xff]  }
  0x60   :  { %1361 = vmatpush1.bf16.msra.mxu1 %v5739_v47  ;;  %1289 = vmatprep.subr.bf16.mxu0 %v5746_v48  ;;  %v5846_v47 = vld [vmem:[%s8445_s0 + $0xf4] ss:$36 sps:$4 sm:$0xff]   ;;  %v5879_v48 = vld [vmem:[%s8444_s1 + $0x140] ss:$8 sps:$4 sm:$0xff]  }
  0x61   :  { %1362 = vmatprep.subr.bf16.mxu1 %v5749_v49  ;;  %v5888_v49 = vld [vmem:[%s8444_s1 + $0x134] ss:$8 sps:$4 sm:$0xff]  }
  0x63   :  { %1290 = vmatpush2.bf16.msra.mxu0 %v5744_v50  ;;  %v5841_v50 = vld [vmem:[%s8444_s1 + $0x420] ss:$8 sps:$4 sm:$0xff]  }
  0x64   :  { %1363 = vmatpush2.bf16.msra.mxu1 %v5747_v51  ;;  %1291 = vmatprep.subr.bf16.mxu0 %v5756_v52  ;;  %v5852_v51 = vld [vmem:[%s8444_s1 + $0x414] ss:$8 sps:$4 sm:$0xff]   ;;  %v5848_v52 = vld [vmem:[%s8445_s0 + $0xe8] ss:$36 sps:$4 sm:$0xff]  }
  0x65   :  { %1364 = vmatprep.subr.bf16.mxu1 %v5759_v53  ;;  %v5886_v53 = vld [vmem:[%s8444_s1 + $0x130] ss:$8 sps:$4 sm:$0xff]  }
  0x67   :  { %1292 = vmatpush2.bf16.msra.mxu0 %v5754_v56  ;;  %v5855_v56 = vld [vmem:[%s8444_s1 + $0x404] ss:$8 sps:$4 sm:$0xff]  }
  0x68   :  { %1365 = vmatpush2.bf16.msra.mxu1 %v5757_v57  ;;  %1293 = vmatprep.subr.bf16.mxu0 %v5764_v58  ;;  %v5894_v57 = vld [vmem:[%s8444_s1 + $0x124] ss:$8 sps:$4 sm:$0xff]   ;;  %v5892_v58 = vld [vmem:[%s8444_s1 + $0x120] ss:$8 sps:$4 sm:$0xff]  }
  0x69   :  { %1366 = vmatprep.subr.bf16.mxu1 %v5767_v59  ;;  %v5901_v59 = vld [vmem:[%s8444_s1 + $0x114] ss:$8 sps:$4 sm:$0xff]  }
  0x6b   :  { %1294 = vmatpush2.bf16.msra.mxu0 %v5762_v60  ;;  %v5853_v60 = vld [vmem:[%s8444_s1 + $0x400] ss:$8 sps:$4 sm:$0xff]  }
  0x6c   :  { %1367 = vmatpush2.bf16.msra.mxu1 %v5765_v61  ;;  %1295 = vmatprep.subr.bf16.mxu0 %v5774_v62  ;;  %v8452_v61 = vmov 0   ;;  %v5859_v62 = vld [vmem:[%s8444_s1 + $0x74] ss:$8 sps:$4 sm:$0xff]  }
  0x6d   :  { %1368 = vmatprep.subr.bf16.mxu1 %v5777_v63  ;;  %v5899_v63 = vld [vmem:[%s8444_s1 + $0x110] ss:$8 sps:$4 sm:$0xff]  }
  0x6f   :  { %1296 = vmatpush2.bf16.msra.mxu0 %v5772_v0  ;;  %v5856_v0 = vld [vmem:[%s8445_s0 + $0x20] ss:$36 sps:$4 sm:$0xff]  }
  0x70   :  { %1369 = vmatpush2.bf16.msra.mxu1 %v5775_v1  ;;  %1297 = vmatprep.subr.bf16.mxu0 %v5782_v2  ;;  %v5907_v1 = vld [vmem:[%s8444_s1 + $0x104] ss:$8 sps:$4 sm:$0xff]   ;;  %v5857_v2 = vld [vmem:[%s8444_s1 + $0x70] ss:$8 sps:$4 sm:$0xff]  }
  0x71   :  { %1370 = vmatprep.subr.bf16.mxu1 %v5785_v3  ;;  %v5865_v3 = vld [vmem:[%s8444_s1 + $0x64] ss:$8 sps:$4 sm:$0xff]  }
  0x73   :  { %1298 = vmatpush2.bf16.msra.mxu0 %v5780_v4  ;;  %v5905_v4 = vld [vmem:[%s8444_s1 + $0x100] ss:$8 sps:$4 sm:$0xff]  }
  0x74   :  { %1371 = vmatpush2.bf16.msra.mxu1 %v5783_v5  ;;  %1299 = vmatprep.subr.bf16.mxu0 %v5792_v6  ;;  %v5913_v5 = vld [vmem:[%s8444_s1 + $0x1f4] ss:$8 sps:$4 sm:$0xff]   ;;  %v5863_v6 = vld [vmem:[%s8444_s1 + $0x60] ss:$8 sps:$4 sm:$0xff]  }
  0x75   :  { %1372 = vmatprep.subr.bf16.mxu1 %v5795_v7  ;;  %v5872_v7 = vld [vmem:[%s8444_s1 + $0x54] ss:$8 sps:$4 sm:$0xff]  }
  0x77   :  { %1300 = vmatpush2.bf16.msra.mxu0 %v5790_v8  ;;  %v5869_v8 = vld [vmem:[%s8445_s0 + $0x68] ss:$36 sps:$4 sm:$0xff]  }
  0x78   :  { %1373 = vmatpush2.bf16.msra.mxu1 %v5793_v9  ;;  %1301 = vmatprep.subr.bf16.mxu0 %v5798_v10  ;;  %v5911_v9 = vld [vmem:[%s8444_s1 + $0x1f0] ss:$8 sps:$4 sm:$0xff]   ;;  %v5919_v10 = vld [vmem:[%s8444_s1 + $0x1e4] ss:$8 sps:$4 sm:$0xff]  }
  0x79   :  { %1374 = vmatprep.subr.bf16.mxu1 %v5801_v11  ;;  %v5964_v11 = vld [vmem:[%s8445_s0 + $0x12c] ss:$36 sps:$4 sm:$0xff]  }
  0x7b   :  { %1302 = vmatpush2.bf16.msra.mxu0 %v5796_v12  ;;  %v5870_v12 = vld [vmem:[%s8444_s1 + $0x50] ss:$8 sps:$4 sm:$0xff]  }
  0x7c   :  { %1375 = vmatpush2.bf16.msra.mxu1 %v5799_v13  ;;  %1303 = vmatprep.subr.bf16.mxu0 %v5804_v14  ;;  %v5878_v13 = vld [vmem:[%s8444_s1 + $0x44] ss:$8 sps:$4 sm:$0xff]   ;;  %v5917_v14 = vld [vmem:[%s8444_s1 + $0x1e0] ss:$8 sps:$4 sm:$0xff]  }
  0x7d   :  { %1376 = vmatprep.subr.bf16.mxu1 %v5807_v15  ;;  %v5925_v15 = vld [vmem:[%s8444_s1 + $0x1d4] ss:$8 sps:$4 sm:$0xff]  }
  0x7f   :  { %1304 = vmatpush2.bf16.msra.mxu0 %v5802_v16  ;;  %v5876_v16 = vld [vmem:[%s8444_s1 + $0x40] ss:$8 sps:$4 sm:$0xff]  }
  0x80   :  { %1377 = vmatpush2.bf16.msra.mxu1 %v5805_v17  ;;  %2738 = vmatprep.subr.bf16.mxu0 %v5862_v19  ;;  %v5885_v17 = vld [vmem:[%s8444_s1 + $0x34] ss:$8 sps:$4 sm:$0xff]  }
  0x81   :  { %1419 = vmatprep.subr.bf16.mxu1 %v5816_v18  ;;  %v5923_v18 = vld [vmem:[%s8444_s1 + $0x1d0] ss:$8 sps:$4 sm:$0xff]  }
  0x82   :  { %1306 = vmatmul.mubr.bf16.vlgmr.msra.gmra.mxu0 %v5808_v20  ;;  %v5882_v19 = vld [vmem:[%s8445_s0 + $0xb0] ss:$36 sps:$4 sm:$0xff]   ;;  %v5931_v20 = vld [vmem:[%s8444_s1 + $0x1c4] ss:$8 sps:$4 sm:$0xff]  }
  0x83   :  { %1379 = vmatmul.mubr.bf16.vlgmr.msra.gmra.mxu1 %v5811_v21  ;;  %1315 = vmatprep.mubr.bf16.mxu0 %v5820_v23  ;;  %v5883_v21 = vld [vmem:[%s8444_s1 + $0x30] ss:$8 sps:$4 sm:$0xff]   ;;  %v5929_v23 = vld [vmem:[%s8444_s1 + $0x1c0] ss:$8 sps:$4 sm:$0xff]  }
  0x84   :  { %1420 = vmatpush1.bf16.msra.mxu1 %v5814_v22  ;;  %1388 = vmatprep.mubr.bf16.mxu1 %v5822_v25  ;;  %v5891_v22 = vld [vmem:[%s8444_s1 + $0x24] ss:$8 sps:$4 sm:$0xff]   ;;  %v5889_v25 = vld [vmem:[%s8444_s1 + $0x20] ss:$8 sps:$4 sm:$0xff]  }
  0x85   :  { %1421 = vmatprep.subr.bf16.mxu1 %v5819_v24  ;;  %2739 = vmatpush1.bf16.msra.mxu0 %v5860_v26  ;;  %v5937_v24 = vld [vmem:[%s8444_s1 + $0x1b4] ss:$8 sps:$4 sm:$0xff]  }
  0x86   :  { %2740 = vmatprep.subr.bf16.mxu0 %v5868_v27  ;;  %v5898_v26 = vld [vmem:[%s8444_s1 + $0x14] ss:$8 sps:$4 sm:$0xff]  }
  0x87   :  { %v5895_v27 = vld [vmem:[%s8445_s0 + $0xf8] ss:$36 sps:$4 sm:$0xff]  }
  0x88   :  { %1422 = vmatpush1.bf16.msra.mxu1 %v5817_v28  ;;  %v5935_v28 = vld [vmem:[%s8444_s1 + $0x1b0] ss:$8 sps:$4 sm:$0xff]  }
  0x89   :  { %1423 = vmatprep.subr.bf16.mxu1 %v5828_v31  ;;  %2741 = vmatpush1.bf16.msra.mxu0 %v5866_v33  ;;  %v5958_v31 = vld [vmem:[%s8445_s0 + $0x124] ss:$36 sps:$4 sm:$0xff]  }
  0x8a   :  { %1316 = vmatmul.mubr.bf16.gmra.mxu0 %v5824_v29  ;;  %2742 = vmatprep.subr.bf16.mxu0 %v5875_v37  ;;  %v5896_v29 = vld [vmem:[%s8444_s1 + $0x10] ss:$8 sps:$4 sm:$0xff]   ;;  %v5941_v33 = vld [vmem:[%s8444_s1 + $0x1a0] ss:$8 sps:$4 sm:$0xff]  }
  0x8b   :  { %1389 = vmatmul.mubr.bf16.gmra.mxu1 %v5825_v30  ;;  %1325 = vmatprep.mubr.bf16.mxu0 %v5832_v35  ;;  %v5943_v30 = vld [vmem:[%s8444_s1 + $0x1a4] ss:$8 sps:$4 sm:$0xff]   ;;  %v5902_v35 = vld [vmem:[%s8444_s1] ss:$8 sps:$4 sm:$0xff]   ;;  %v5947_v37 = vld [vmem:[%s8444_s1 + $0x190] ss:$8 sps:$4 sm:$0xff]  }
  0x8c   :  { %1424 = vmatpush1.bf16.msra.mxu1 %v5826_v32  ;;  %1398 = vmatprep.mubr.bf16.mxu1 %v5834_v36  ;;  %v5904_v32 = vld [vmem:[%s8444_s1 + $0x4] ss:$8 sps:$4 sm:$0xff]   ;;  %v5910_v36 = vld [vmem:[%s8444_s1 + $0xf4] ss:$8 sps:$4 sm:$0xff]  }
  0x8d   :  { %1425 = vmatprep.subr.bf16.mxu1 %v5831_v34  ;;  %2743 = vmatpush1.bf16.msra.mxu0 %v5873_v39  ;;  %v5949_v34 = vld [vmem:[%s8444_s1 + $0x194] ss:$8 sps:$4 sm:$0xff]   ;;  %v5908_v39 = vld [vmem:[%s8444_s1 + $0xf0] ss:$8 sps:$4 sm:$0xff]  }
  0x8e   :  { %2744 = vmatprep.subr.bf16.mxu0 %v5881_v40  ;;  %v5916_v40 = vld [vmem:[%s8444_s1 + $0xe4] ss:$8 sps:$4 sm:$0xff]  }
  0x90   :  { %1426 = vmatpush1.bf16.msra.mxu1 %v5829_v38  ;;  %v5955_v38 = vld [vmem:[%s8444_s1 + $0x184] ss:$8 sps:$4 sm:$0xff]  }
  0x91   :  { %1427 = vmatprep.subr.bf16.mxu1 %v5840_v41  ;;  %2745 = vmatpush1.bf16.msra.mxu0 %v5879_v48  ;;  %v5914_v41 = vld [vmem:[%s8444_s1 + $0xe0] ss:$8 sps:$4 sm:$0xff]   ;;  %v5973_v48 = vld [vmem:[%s8444_s1 + $0x364] ss:$8 sps:$4 sm:$0xff]  }
  0x92   :  { %1326 = vmatmul.mubr.bf16.gmra.mxu0 %v5836_v42  ;;  %2746 = vmatprep.subr.bf16.mxu0 %v5888_v49  ;;  %v5953_v42 = vld [vmem:[%s8444_s1 + $0x180] ss:$8 sps:$4 sm:$0xff]   ;;  %v5920_v49 = vld [vmem:[%s8444_s1 + $0xd0] ss:$8 sps:$4 sm:$0xff]  }
  0x93   :  { %1399 = vmatmul.mubr.bf16.gmra.mxu1 %v5837_v43  ;;  %1335 = vmatprep.mubr.bf16.mxu0 %v5844_v46  ;;  %v5967_v43 = vld [vmem:[%s8444_s1 + $0x374] ss:$8 sps:$4 sm:$0xff]   ;;  %v5965_v46 = vld [vmem:[%s8444_s1 + $0x370] ss:$8 sps:$4 sm:$0xff]  }
  0x94   :  { %1428 = vmatpush1.bf16.msra.mxu1 %v5838_v44  ;;  %1408 = vmatprep.mubr.bf16.mxu1 %v5846_v47  ;;  %v5922_v44 = vld [vmem:[%s8444_s1 + $0xd4] ss:$8 sps:$4 sm:$0xff]  }
  0x95   :  { %1429 = vmatprep.subr.bf16.mxu1 %v5843_v45  ;;  %2747 = vmatpush1.bf16.msra.mxu0 %v5886_v53  ;;  %v5962_v45 = vld [vmem:[%s8445_s0 + $0x128] ss:$36 sps:$4 sm:$0xff]   ;;  %v6019_v47 = vld [vmem:[%s8445_s0 + $0x174] ss:$36 sps:$4 sm:$0xff]  }
  0x96   :  { %2748 = vmatprep.subr.bf16.mxu0 %v5894_v57  ;;  %v5979_v53 = vld [vmem:[%s8444_s1 + $0x354] ss:$8 sps:$4 sm:$0xff]  }
  0x97   :  { %v6037_v57 = vld [vmem:[%s8445_s0 + $0x1bc] ss:$36 sps:$4 sm:$0xff]  }
  0x98   :  { %1430 = vmatpush1.bf16.msra.mxu1 %v5841_v50  ;;  %v5928_v50 = vld [vmem:[%s8444_s1 + $0xc4] ss:$8 sps:$4 sm:$0xff]  }
  0x99   :  { %1431 = vmatprep.subr.bf16.mxu1 %v5852_v51  ;;  %2749 = vmatpush1.bf16.msra.mxu0 %v5892_v58  ;;  %v5926_v51 = vld [vmem:[%s8444_s1 + $0xc0] ss:$8 sps:$4 sm:$0xff]   ;;  %v5985_v58 = vld [vmem:[%s8444_s1 + $0x344] ss:$8 sps:$4 sm:$0xff]  }
  0x9a   :  { %1336 = vmatmul.mubr.bf16.gmra.mxu0 %v5848_v52  ;;  %2750 = vmatprep.subr.bf16.mxu0 %v5901_v59  ;;  %v5971_v52 = vld [vmem:[%s8444_s1 + $0x360] ss:$8 sps:$4 sm:$0xff]   ;;  %v5932_v59 = vld [vmem:[%s8444_s1 + $0xb0] ss:$8 sps:$4 sm:$0xff]  }
  0x9b   :  { %1409 = vmatmul.mubr.bf16.gmra.mxu1 %v5849_v54  ;;  %2770 = vmatprep.mubr.bf16.mxu0 %v5964_v11  ;;  %v5934_v54 = vld [vmem:[%s8444_s1 + $0xb4] ss:$8 sps:$4 sm:$0xff]   ;;  %v5956_v11 = vld [vmem:[%s8445_s0 + $0x120] ss:$36 sps:$4 sm:$0xff]  }
  0x9c   :  { %1432 = vmatpush1.bf16.msra.mxu1 %v5850_v55  ;;  %1451 = vmatprep.mubr.bf16.mxu1 %v8452_v61  ;;  %v5977_v55 = vld [vmem:[%s8444_s1 + $0x350] ss:$8 sps:$4 sm:$0xff]  }
  0x9d   :  { %1433 = vmatprep.subr.bf16.mxu1 %v5855_v56  ;;  %2751 = vmatpush1.bf16.msra.mxu0 %v5899_v63  ;;  %v6024_v56 = vld [vmem:[%s8445_s0 + $0x170] ss:$36 sps:$4 sm:$0xff]  }
  0x9e   :  { %2752 = vmatprep.subr.bf16.mxu0 %v5907_v1  ;;  %v5991_v63 = vld [vmem:[%s8444_s1 + $0x334] ss:$8 sps:$4 sm:$0xff]  }
  0x9f   :  { %v5946_v1 = vld [vmem:[%s8444_s1 + $0x94] ss:$8 sps:$4 sm:$0xff]  }
  0xa0   :  { %1434 = vmatpush1.bf16.msra.mxu1 %v5853_v60  ;;  %v5940_v60 = vld [vmem:[%s8444_s1 + $0xa4] ss:$8 sps:$4 sm:$0xff]  }
  0xa1   :  { %2665 = vmatprep.subr.bf16.mxu1 %v5859_v62  ;;  %2753 = vmatpush1.bf16.msra.mxu0 %v5905_v4  ;;  %v5983_v62 = vld [vmem:[%s8444_s1 + $0x340] ss:$8 sps:$4 sm:$0xff]  }
  0xa2   :  { %2754 = vmatprep.subr.bf16.mxu0 %v5913_v5  ;;  %v6055_v4 = vld [vmem:[%s8445_s0 + $0x204] ss:$36 sps:$4 sm:$0xff]  }
  0xa3   :  { %1452 = vmatmul.mubr.bf16.vlgmr.msra.gmra.mxu1 %v5856_v0  ;;  %v5938_v0 = vld [vmem:[%s8444_s1 + $0xa0] ss:$8 sps:$4 sm:$0xff]   ;;  %v5997_v5 = vld [vmem:[%s8444_s1 + $0x324] ss:$8 sps:$4 sm:$0xff]  }
  0xa4   :  { %2666 = vmatpush1.bf16.msra.mxu1 %v5857_v2  ;;  %1461 = vmatprep.mubr.bf16.mxu1 %v8452_v61  ;;  %v6042_v2 = vld [vmem:[%s8445_s0 + $0x1b8] ss:$36 sps:$4 sm:$0xff]  }
  0xa5   :  { %2667 = vmatprep.subr.bf16.mxu1 %v5865_v3  ;;  %2755 = vmatpush2.bf16.msra.mxu0 %v5911_v9  ;;  %v5989_v3 = vld [vmem:[%s8444_s1 + $0x330] ss:$8 sps:$4 sm:$0xff]   ;;  %v6003_v9 = vld [vmem:[%s8444_s1 + $0x314] ss:$8 sps:$4 sm:$0xff]  }
  0xa6   :  { %2756 = vmatprep.subr.bf16.mxu0 %v5919_v10  ;;  %v5950_v10 = vld [vmem:[%s8444_s1 + $0x80] ss:$8 sps:$4 sm:$0xff]  }
  0xa8   :  { %2668 = vmatpush1.bf16.msra.mxu1 %v5863_v6  ;;  %v5944_v6 = vld [vmem:[%s8444_s1 + $0x90] ss:$8 sps:$4 sm:$0xff]  }
  0xa9   :  { %2669 = vmatprep.subr.bf16.mxu1 %v5872_v7  ;;  %2757 = vmatpush2.bf16.msra.mxu0 %v5917_v14  ;;  %v5952_v7 = vld [vmem:[%s8444_s1 + $0x84] ss:$8 sps:$4 sm:$0xff]   ;;  %v5959_v14 = vld [vmem:[%s8444_s1 + $0x270] ss:$8 sps:$4 sm:$0xff]  }
  0xaa   :  { %2758 = vmatprep.subr.bf16.mxu0 %v5925_v15  ;;  %v6001_v15 = vld [vmem:[%s8444_s1 + $0x310] ss:$8 sps:$4 sm:$0xff]  }
  0xab   :  { %1462 = vmatmul.mubr.bf16.gmra.mxu1 %v5869_v8  ;;  %v5995_v8 = vld [vmem:[%s8444_s1 + $0x320] ss:$8 sps:$4 sm:$0xff]  }
  0xac   :  { %2670 = vmatpush1.bf16.msra.mxu1 %v5870_v12  ;;  %1471 = vmatprep.mubr.bf16.mxu1 %v8452_v61  ;;  %v5961_v12 = vld [vmem:[%s8444_s1 + $0x274] ss:$8 sps:$4 sm:$0xff]  }
  0xad   :  { %2671 = vmatprep.subr.bf16.mxu1 %v5878_v13  ;;  %2759 = vmatpush2.bf16.msra.mxu0 %v5923_v18  ;;  %v6060_v13 = vld [vmem:[%s8445_s0 + $0x200] ss:$36 sps:$4 sm:$0xff]   ;;  %v6013_v18 = vld [vmem:[%s8445_s0 + $0x16c] ss:$36 sps:$4 sm:$0xff]  }
  0xae   :  { %2760 = vmatprep.subr.bf16.mxu0 %v5931_v20  ;;  %v6007_v20 = vld [vmem:[%s8444_s1 + $0x300] ss:$8 sps:$4 sm:$0xff]  }
  0xb0   :  { %2672 = vmatpush1.bf16.msra.mxu1 %v5876_v16  ;;  %v6084_v16 = vld [vmem:[%s8445_s0 + $0x13c] ss:$36 sps:$4 sm:$0xff]  }
  0xb1   :  { %2673 = vmatprep.subr.bf16.mxu1 %v5885_v17  ;;  %2761 = vmatpush2.bf16.msra.mxu0 %v5929_v23  ;;  %v6009_v17 = vld [vmem:[%s8444_s1 + $0x304] ss:$8 sps:$4 sm:$0xff]   ;;  %v5976_v23 = vld [vmem:[%s8444_s1 + $0x254] ss:$8 sps:$4 sm:$0xff]  }
  0xb2   :  { %2762 = vmatprep.subr.bf16.mxu0 %v5937_v24  ;;  %v5974_v24 = vld [vmem:[%s8444_s1 + $0x250] ss:$8 sps:$4 sm:$0xff]  }
  0xb3   :  { %1472 = vmatmul.mubr.bf16.gmra.mxu1 %v5882_v19  ;;  %v5970_v19 = vld [vmem:[%s8444_s1 + $0x264] ss:$8 sps:$4 sm:$0xff]  }
  0xb4   :  { %2674 = vmatpush1.bf16.msra.mxu1 %v5883_v21  ;;  %1481 = vmatprep.mubr.bf16.mxu1 %v8452_v61  ;;  %v6017_v21 = vld [vmem:[%s8444_s1 + $0x3f4] ss:$8 sps:$4 sm:$0xff]  }
  0xb5   :  { %2675 = vmatprep.subr.bf16.mxu1 %v5891_v22  ;;  %2763 = vmatpush2.bf16.msra.mxu0 %v5935_v28  ;;  %v5968_v22 = vld [vmem:[%s8444_s1 + $0x260] ss:$8 sps:$4 sm:$0xff]   ;;  %v6031_v28 = vld [vmem:[%s8445_s0 + $0x1b4] ss:$36 sps:$4 sm:$0xff]  }
  0xb6   :  { %2764 = vmatprep.subr.bf16.mxu0 %v5943_v30  ;;  %v6025_v30 = vld [vmem:[%s8444_s1 + $0x3e0] ss:$8 sps:$4 sm:$0xff]  }
  0xb8   :  { %2676 = vmatpush1.bf16.msra.mxu1 %v5889_v25  ;;  %v6015_v25 = vld [vmem:[%s8444_s1 + $0x3f0] ss:$8 sps:$4 sm:$0xff]  }
  0xb9   :  { %2677 = vmatprep.subr.bf16.mxu1 %v5898_v26  ;;  %2765 = vmatpush2.bf16.msra.mxu0 %v5941_v33  ;;  %v6018_v26 = vld [vmem:[%s8445_s0 + $0x168] ss:$36 sps:$4 sm:$0xff]   ;;  %v5988_v33 = vld [vmem:[%s8444_s1 + $0x234] ss:$8 sps:$4 sm:$0xff]  }
  0xba   :  { %2766 = vmatprep.subr.bf16.mxu0 %v5949_v34  ;;  %v5986_v34 = vld [vmem:[%s8444_s1 + $0x230] ss:$8 sps:$4 sm:$0xff]  }
  0xbb   :  { %1482 = vmatmul.mubr.bf16.gmra.mxu1 %v5895_v27  ;;  %v6027_v27 = vld [vmem:[%s8444_s1 + $0x3e4] ss:$8 sps:$4 sm:$0xff]  }
  0xbc   :  { %2678 = vmatpush1.bf16.msra.mxu1 %v5896_v29  ;;  %2697 = vmatprep.mubr.bf16.mxu1 %v5958_v31  ;;  %v5982_v29 = vld [vmem:[%s8444_s1 + $0x244] ss:$8 sps:$4 sm:$0xff]   ;;  %v6035_v31 = vld [vmem:[%s8444_s1 + $0x3d4] ss:$8 sps:$4 sm:$0xff]  }
  0xbd   :  { %2679 = vmatprep.subr.bf16.mxu1 %v5904_v32  ;;  %2767 = vmatpush2.bf16.msra.mxu0 %v5947_v37  ;;  %v5980_v32 = vld [vmem:[%s8444_s1 + $0x240] ss:$8 sps:$4 sm:$0xff]   ;;  %v6045_v37 = vld [vmem:[%s8444_s1 + $0x3c4] ss:$8 sps:$4 sm:$0xff]  }
  0xbe   :  { %2768 = vmatprep.subr.bf16.mxu0 %v5955_v38  ;;  %v6049_v38 = vld [vmem:[%s8445_s0 + $0x1fc] ss:$36 sps:$4 sm:$0xff]  }
  0xc0   :  { %2680 = vmatpush1.bf16.msra.mxu1 %v5902_v35  ;;  %v6033_v35 = vld [vmem:[%s8444_s1 + $0x3d0] ss:$8 sps:$4 sm:$0xff]  }
  0xc1   :  { %2681 = vmatprep.subr.bf16.mxu1 %v5910_v36  ;;  %2769 = vmatpush2.bf16.msra.mxu0 %v5953_v42  ;;  %v6036_v36 = vld [vmem:[%s8445_s0 + $0x1b0] ss:$36 sps:$4 sm:$0xff]   ;;  %v5992_v42 = vld [vmem:[%s8444_s1 + $0x220] ss:$8 sps:$4 sm:$0xff]  }
  0xc2   :  { %2884 = vmatprep.subr.bf16.mxu0 %v5967_v43  ;;  %v213_v43 = vlaneseq }
  0xc4   :  { %2682 = vmatpush2.bf16.msra.mxu1 %v5908_v39  ;;  %2771 = vmatmul.mubr.bf16.vlgmr.msra.gmra.mxu0 %v5962_v45  ;;  %v5994_v39 = vld [vmem:[%s8444_s1 + $0x224] ss:$8 sps:$4 sm:$0xff]   ;;  %v6051_v45 = vld [vmem:[%s8444_s1 + $0x3b0] ss:$8 sps:$4 sm:$0xff]  }
  0xc5   :  { %2683 = vmatprep.subr.bf16.mxu1 %v5916_v40  ;;  %2885 = vmatpush1.bf16.msra.mxu0 %v5965_v46  ;;  %v6043_v40 = vld [vmem:[%s8444_s1 + $0x3c0] ss:$8 sps:$4 sm:$0xff]   ;;  %v6054_v46 = vld [vmem:[%s8445_s0 + $0x1f8] ss:$36 sps:$4 sm:$0xff]  }
  0xc6   :  { %2780 = vmatprep.mubr.bf16.mxu0 %v6019_v47  ;;  %2886 = vmatprep.subr.bf16.mxu0 %v5973_v48  ;;  %v6063_v47 = vld [vmem:[%s8444_s1 + $0x3a4] ss:$8 sps:$4 sm:$0xff]   ;;  %v5998_v48 = vld [vmem:[%s8444_s1 + $0x210] ss:$8 sps:$4 sm:$0xff]  }
  0xc8   :  { %2684 = vmatpush2.bf16.msra.mxu1 %v5914_v41  ;;  %v6053_v41 = vld [vmem:[%s8444_s1 + $0x3b4] ss:$8 sps:$4 sm:$0xff]  }
  0xc9   :  { %2685 = vmatprep.subr.bf16.mxu1 %v5922_v44  ;;  %2887 = vmatpush1.bf16.msra.mxu0 %v5971_v52  ;;  %v6000_v44 = vld [vmem:[%s8444_s1 + $0x214] ss:$8 sps:$4 sm:$0xff]   ;;  %v6061_v52 = vld [vmem:[%s8444_s1 + $0x3a0] ss:$8 sps:$4 sm:$0xff]  }
  0xca   :  { %2888 = vmatprep.subr.bf16.mxu0 %v5979_v53  ;;  %v6069_v53 = vld [vmem:[%s8444_s1 + $0x394] ss:$8 sps:$4 sm:$0xff]  }
  0xcc   :  { %2686 = vmatpush2.bf16.msra.mxu1 %v5920_v49  ;;  %2781 = vmatmul.mubr.bf16.gmra.mxu0 %v6024_v56  ;;  %v7316_v49 = vshrl.u32 %v213_v43, 7  ;;  %v7339_v56 = vld [vmem:[%s8447_s4] sm:$0x3]  ;;  %v6072_v43 = vld [vmem:[%s8444_s1 + $0x284] ss:$8 sps:$4 sm:$0xff]  }
  0xcd   :  { %2687 = vmatprep.subr.bf16.mxu1 %v5928_v50  ;;  %2889 = vmatpush1.bf16.msra.mxu0 %v5977_v55  ;;  %v6078_v50 = vld [vmem:[%s8445_s0 + $0x134] ss:$36 sps:$4 sm:$0xff]  }
  0xce   :  { %2790 = vmatprep.mubr.bf16.mxu0 %v6037_v57  ;;  %2890 = vmatprep.subr.bf16.mxu0 %v5985_v58  ;;  %v7334_v55 = vsub.s32 0, %v7316_v49  ;;  %v6012_v57 = vld [vmem:[%s8444_s1 + $0x2f4] ss:$8 sps:$4 sm:$0xff]   ;;  %v6067_v58 = vld [vmem:[%s8444_s1 + $0x390] ss:$8 sps:$4 sm:$0xff]  }
  0xd0   :  { %2688 = vmatpush2.bf16.msra.mxu1 %v5926_v51  ;;  %v6006_v51 = vld [vmem:[%s8444_s1 + $0x204] ss:$8 sps:$4 sm:$0xff]   ;;  %8458 = vst [vmem:[#allocation4_spill] sm:$0xff] %v7334_v55 }
  0xd1   :  { %2689 = vmatprep.subr.bf16.mxu1 %v5934_v54  ;;  %2891 = vmatpush1.bf16.msra.mxu0 %v5983_v62  ;;  %v6004_v54 = vld [vmem:[%s8444_s1 + $0x200] ss:$8 sps:$4 sm:$0xff]   ;;  %v6010_v62 = vld [vmem:[%s8444_s1 + $0x2f0] ss:$8 sps:$4 sm:$0xff]  }
  0xd2   :  { %2892 = vmatprep.subr.bf16.mxu0 %v5991_v63  ;;  %v6023_v63 = vld [vmem:[%s8444_s1 + $0x2e4] ss:$8 sps:$4 sm:$0xff]  }
  0xd4   :  { %2690 = vmatpush2.bf16.msra.mxu1 %v5932_v59  ;;  %2791 = vmatmul.mubr.bf16.gmra.mxu0 %v6042_v2  ;;  %v6075_v59 = vld [vmem:[%s8444_s1 + $0x384] ss:$8 sps:$4 sm:$0xff]  }
  0xd5   :  { %2691 = vmatprep.subr.bf16.mxu1 %v5940_v60  ;;  %2893 = vmatpush1.bf16.msra.mxu0 %v5989_v3  ;;  %v7352_v60 = vrot.slane %v7339_v56, %v7334_v55  ;;  %v6114_v3 = vld [vmem:[%s8446_s2 + $0x274] ss:$8 sps:$4 sm:$0xff]  }
  0xd6   :  { %2800 = vmatprep.mubr.bf16.mxu0 %v6055_v4  ;;  %2894 = vmatprep.subr.bf16.mxu0 %v5997_v5  ;;  %v6021_v5 = vld [vmem:[%s8444_s1 + $0x2e0] ss:$8 sps:$4 sm:$0xff]  }
  0xd8   :  { %2692 = vmatpush2.bf16.msra.mxu1 %v5938_v0  ;;  %v6073_v0 = vld [vmem:[%s8444_s1 + $0x380] ss:$8 sps:$4 sm:$0xff]  }
  0xd9   :  { %2693 = vmatprep.subr.bf16.mxu1 %v5946_v1  ;;  %2895 = vmatpush1.bf16.msra.mxu0 %v5995_v8  ;;  %v6030_v8 = vld [vmem:[%s8444_s1 + $0x2d4] ss:$8 sps:$4 sm:$0xff]  }
  0xda   :  { %2896 = vmatprep.subr.bf16.mxu0 %v6003_v9  ;;  %v6082_v9 = vld [vmem:[%s8445_s0 + $0x138] ss:$36 sps:$4 sm:$0xff]  }
  0xdc   :  { %2694 = vmatpush2.bf16.msra.mxu1 %v5944_v6  ;;  %2801 = vmatmul.mubr.bf16.gmra.mxu0 %v6060_v13 }
  0xdd   :  { %2695 = vmatprep.subr.bf16.mxu1 %v5952_v7  ;;  %2897 = vmatpush1.bf16.msra.mxu0 %v6001_v15 }
  0xde   :  { %2916 = vmatprep.mubr.bf16.mxu0 %v6084_v16  ;;  %2898 = vmatprep.subr.bf16.mxu0 %v6009_v17  ;;  %v6028_v16 = vld [vmem:[%s8444_s1 + $0x2d0] ss:$8 sps:$4 sm:$0xff]  }
  0xe0   :  { %2696 = vmatpush2.bf16.msra.mxu1 %v5950_v10 }
  0xe1   :  { %2811 = vmatprep.subr.bf16.mxu1 %v5961_v12  ;;  %2899 = vmatpush1.bf16.msra.mxu0 %v6007_v20  ;;  %v6112_v12 = vld [vmem:[%s8446_s2 + $0x270] ss:$8 sps:$4 sm:$0xff]   ;;  %v6123_v20 = vld [vmem:[%s8446_s2 + $0x260] ss:$8 sps:$4 sm:$0xff]  }
  0xe2   :  { %2900 = vmatprep.subr.bf16.mxu0 %v6017_v21  ;;  %v6132_v21 = vld [vmem:[%s8446_s2 + $0x254] ss:$8 sps:$4 sm:$0xff]  }
  0xe3   :  { %2698 = vmatmul.mubr.bf16.vlgmr.msra.gmra.mxu1 %v5956_v11  ;;  %v6094_v11 = vld [vmem:[%s8445_s0 + $0x184] ss:$36 sps:$4 sm:$0xff]  }
  0xe4   :  { %2812 = vmatpush1.bf16.msra.mxu1 %v5959_v14  ;;  %2707 = vmatprep.mubr.bf16.mxu1 %v6013_v18  ;;  %v6125_v14 = vld [vmem:[%s8446_s2 + $0x264] ss:$8 sps:$4 sm:$0xff]  }
  0xe5   :  { %2813 = vmatprep.subr.bf16.mxu1 %v5970_v19  ;;  %2901 = vmatpush2.bf16.msra.mxu0 %v6015_v25  ;;  %v6041_v18 = vld [vmem:[%s8444_s1 + $0x2c4] ss:$8 sps:$4 sm:$0xff]  }
  0xe6   :  { %2902 = vmatprep.subr.bf16.mxu0 %v6027_v27  ;;  %v6106_v25 = vld [vmem:[%s8445_s0 + $0x1cc] ss:$36 sps:$4 sm:$0xff]  }
  0xe7   :  { %v6136_v27 = vld [vmem:[%s8446_s2 + $0x244] ss:$8 sps:$4 sm:$0xff]  }
  0xe8   :  { %2814 = vmatpush1.bf16.msra.mxu1 %v5968_v22  ;;  %v6039_v22 = vld [vmem:[%s8444_s1 + $0x2c0] ss:$8 sps:$4 sm:$0xff]  }
  0xe9   :  { %2815 = vmatprep.subr.bf16.mxu1 %v5976_v23  ;;  %2903 = vmatpush2.bf16.msra.mxu0 %v6025_v30  ;;  %v6048_v23 = vld [vmem:[%s8444_s1 + $0x2b4] ss:$8 sps:$4 sm:$0xff]   ;;  %v6057_v30 = vld [vmem:[%s8444_s1 + $0x2a0] ss:$8 sps:$4 sm:$0xff]  }
  0xea   :  { %2904 = vmatprep.subr.bf16.mxu0 %v6035_v31  ;;  %v6134_v31 = vld [vmem:[%s8446_s2 + $0x240] ss:$8 sps:$4 sm:$0xff]  }
  0xeb   :  { %2708 = vmatmul.mubr.bf16.gmra.mxu1 %v6018_v26  ;;  %v6130_v26 = vld [vmem:[%s8446_s2 + $0x250] ss:$8 sps:$4 sm:$0xff]  }
  0xec   :  { %2816 = vmatpush1.bf16.msra.mxu1 %v5974_v24  ;;  %2717 = vmatprep.mubr.bf16.mxu1 %v6031_v28  ;;  %v6096_v24 = vld [vmem:[%s8445_s0 + $0x180] ss:$36 sps:$4 sm:$0xff]   ;;  %v6046_v28 = vld [vmem:[%s8444_s1 + $0x2b0] ss:$8 sps:$4 sm:$0xff]  }
  0xed   :  { %2817 = vmatprep.subr.bf16.mxu1 %v5982_v29  ;;  %2905 = vmatpush2.bf16.msra.mxu0 %v6033_v35  ;;  %v6059_v29 = vld [vmem:[%s8444_s1 + $0x2a4] ss:$8 sps:$4 sm:$0xff]   ;;  %v6066_v35 = vld [vmem:[%s8444_s1 + $0x294] ss:$8 sps:$4 sm:$0xff]  }
  0xee   :  { %2906 = vmatprep.subr.bf16.mxu0 %v6045_v37  ;;  %v6121_v37 = vld [vmem:[%s8445_s0 + $0x214] ss:$36 sps:$4 sm:$0xff]  }
  0xf0   :  { %2818 = vmatpush1.bf16.msra.mxu1 %v5980_v32  ;;  %v6139_v32 = vld [vmem:[%s8446_s2 + $0x234] ss:$8 sps:$4 sm:$0xff]  }
  0xf1   :  { %2819 = vmatprep.subr.bf16.mxu1 %v5988_v33  ;;  %2907 = vmatpush2.bf16.msra.mxu0 %v6043_v40  ;;  %v6064_v40 = vld [vmem:[%s8444_s1 + $0x290] ss:$8 sps:$4 sm:$0xff]  }
  0xf2   :  { %2908 = vmatprep.subr.bf16.mxu0 %v6053_v41  ;;  %v6137_v41 = vld [vmem:[%s8446_s2 + $0x230] ss:$8 sps:$4 sm:$0xff]  }
  0xf3   :  { %2718 = vmatmul.mubr.bf16.gmra.mxu1 %v6036_v36  ;;  %v6108_v36 = vld [vmem:[%s8445_s0 + $0x1c8] ss:$36 sps:$4 sm:$0xff]  }
  0xf4   :  { %2820 = vmatpush1.bf16.msra.mxu1 %v5986_v34  ;;  %2727 = vmatprep.mubr.bf16.mxu1 %v6049_v38 }
  0xf5   :  { %2821 = vmatprep.subr.bf16.mxu1 %v5994_v39  ;;  %2909 = vmatpush2.bf16.msra.mxu0 %v6051_v45 }
  0xf6   :  { %2910 = vmatprep.subr.bf16.mxu0 %v6063_v47  ;;  %v6141_v47 = vld [vmem:[%s8446_s2 + $0x220] ss:$8 sps:$4 sm:$0xff]  }
  0xf8   :  { %2822 = vmatpush1.bf16.msra.mxu1 %v5992_v42  ;;  %v6143_v42 = vld [vmem:[%s8446_s2 + $0x224] ss:$8 sps:$4 sm:$0xff]  }
  0xf9   :  { %2823 = vmatprep.subr.bf16.mxu1 %v6000_v44  ;;  %2911 = vmatpush2.bf16.msra.mxu0 %v6061_v52  ;;  %v6076_v52 = vld [vmem:[%s8445_s0 + $0x130] ss:$36 sps:$4 sm:$0xff]  }
  0xfa   :  { %2912 = vmatprep.subr.bf16.mxu0 %v6069_v53 }
  0xfb   :  { %2728 = vmatmul.mubr.bf16.gmra.mxu1 %v6054_v46  ;;  %v6070_v46 = vld [vmem:[%s8444_s1 + $0x280] ss:$8 sps:$4 sm:$0xff]  }
  0xfc   :  { %2824 = vmatpush1.bf16.msra.mxu1 %v5998_v48  ;;  %2843 = vmatprep.mubr.bf16.mxu1 %v6078_v50  ;;  %v6146_v48 = vld [vmem:[%s8446_s2 + $0x214] ss:$8 sps:$4 sm:$0xff]  }
  0xfd   :  { %2825 = vmatprep.subr.bf16.mxu1 %v6006_v51  ;;  %2913 = vmatpush2.bf16.msra.mxu0 %v6067_v58  ;;  %v6081_v50 = vld [vmem:[%s8444_s1 + $0x474] ss:$8 sps:$4 sm:$0xff]  }
  0xfe   :  { %2914 = vmatprep.subr.bf16.mxu0 %v6075_v59  ;;  %v6126_v51 = vld [vmem:[%s8445_s0 + $0x210] ss:$36 sps:$4 sm:$0xff]   ;;  %v6088_v58 = vld [vmem:[%s8445_s0 + $0x17c] ss:$36 sps:$4 sm:$0xff]  }
  0xff   :  { %v6144_v59 = vld [vmem:[%s8446_s2 + $0x210] ss:$8 sps:$4 sm:$0xff]  }
 0x100   :  { %2826 = vmatpush1.bf16.msra.mxu1 %v6004_v54 }
 0x101   :  { %2827 = vmatprep.subr.bf16.mxu1 %v6012_v57  ;;  %2915 = vmatpush2.bf16.msra.mxu0 %v6073_v0  ;;  %v6079_v57 = vld [vmem:[%s8444_s1 + $0x470] ss:$8 sps:$4 sm:$0xff]  }
 0x102   :  { %v1161_v1 = vpop.f32.mrf.mxu0  ;;  %3635 = vmatprep.subr.bf16.mxu0 %v6114_v3  ;;  %v6148_v3 = vld [vmem:[%s8446_s2 + $0x200] ss:$8 sps:$4 sm:$0xff]  }
 0x103   :  { %v1234_v2 = vpop.f32.mrf.mxu1  ;;  %v1162_v4 = vadd.f32 %v1161_v1, %v7352_v60 }
 0x104   :  { %2828 = vmatpush2.bf16.msra.mxu1 %v6010_v62  ;;  %v7370_v6 = vpop.f32.mrf.mxu0  ;;  %2917 = vmatmul.mubr.bf16.vlgmr.msra.gmra.mxu0 %v6082_v9  ;;  %v6150_v62 = vld [vmem:[%s8446_s2 + $0x204] ss:$8 sps:$4 sm:$0xff]   ;;  %v6090_v9 = vld [vmem:[%s8445_s0 + $0x178] ss:$36 sps:$4 sm:$0xff]  }
 0x105   :  { %v7372_v7 = vpop.f32.mrf.mxu1  ;;  %2829 = vmatprep.subr.bf16.mxu1 %v6023_v63  ;;  %v7380_v10 = vadd.f32 %v1234_v2, %v1162_v4  ;;  %2926 = vmatprep.mubr.bf16.mxu0 %v6094_v11  ;;  %v6087_v63 = vld [vmem:[%s8444_s1 + $0x464] ss:$8 sps:$4 sm:$0xff]   ;;  %v6085_v2 = vld [vmem:[%s8444_s1 + $0x460] ss:$8 sps:$4 sm:$0xff]   ;;  %v6093_v4 = vld [vmem:[%s8444_s1 + $0x454] ss:$8 sps:$4 sm:$0xff]  }
 0x106   :  { %v1165_v13 = vpop.f32.mrf.mxu0  ;;  %3636 = vmatpush1.bf16.msra.mxu0 %v6112_v12 }
 0x107   :  { %v1166_v15 = vadd.f32 %v1165_v13, %v7352_v60  ;;  %v1238_v17 = vpop.f32.mrf.mxu1  ;;  %3637 = vmatprep.subr.bf16.mxu0 %v6125_v14  ;;  %v6091_v13 = vld [vmem:[%s8444_s1 + $0x450] ss:$8 sps:$4 sm:$0xff]   ;;  %v6100_v14 = vld [vmem:[%s8445_s0 + $0x1c4] ss:$36 sps:$4 sm:$0xff]  }
 0x108   :  { %2830 = vmatpush2.bf16.msra.mxu1 %v6021_v5  ;;  %v7439_v33 = vpop.f32.mrf.mxu0  ;;  %v6153_v5 = vld [vmem:[%s8446_s2 + $0x2f4] ss:$8 sps:$4 sm:$0xff]  }
 0x109   :  { %2831 = vmatprep.subr.bf16.mxu1 %v6030_v8  ;;  %v7398_v19 = vadd.f32 %v1238_v17, %v1166_v15  ;;  %v7441_v34 = vpop.f32.mrf.mxu1  ;;  %v6151_v8 = vld [vmem:[%s8446_s2 + $0x2f0] ss:$8 sps:$4 sm:$0xff]   ;;  %v6099_v15 = vld [vmem:[%s8444_s1 + $0x444] ss:$8 sps:$4 sm:$0xff]   ;;  %v6155_v17 = vld [vmem:[%s8446_s2 + $0x2e0] ss:$8 sps:$4 sm:$0xff]  }
 0x10a   :  { %3638 = vmatpush1.bf16.msra.mxu0 %v6123_v20  ;;  %v7452_v38 = vpop.f32.mrf.mxu0 }
 0x10b   :  { %3639 = vmatprep.subr.bf16.mxu0 %v6132_v21  ;;  %v7454_v39 = vpop.f32.mrf.mxu1  ;;  %v6097_v21 = vld [vmem:[%s8444_s1 + $0x440] ss:$8 sps:$4 sm:$0xff]  }
 0x10c   :  { %2832 = vmatpush2.bf16.msra.mxu1 %v6028_v16  ;;  %2927 = vmatmul.mubr.bf16.gmra.mxu0 %v6096_v24  ;;  %v7468_v44 = vpop.f32.mrf.mxu0  ;;  %v6157_v16 = vld [vmem:[%s8446_s2 + $0x2e4] ss:$8 sps:$4 sm:$0xff]  }
 0x10d   :  { %2833 = vmatprep.subr.bf16.mxu1 %v6041_v18  ;;  %2936 = vmatprep.mubr.bf16.mxu0 %v6106_v25  ;;  %v7470_v45 = vpop.f32.mrf.mxu1 }
 0x10e   :  { %3640 = vmatpush1.bf16.msra.mxu0 %v6130_v26  ;;  %v7490_v53 = vpop.f32.mrf.mxu0  ;;  %v6102_v26 = vld [vmem:[%s8445_s0 + $0x1c0] ss:$36 sps:$4 sm:$0xff]  }
 0x10f   :  { %3641 = vmatprep.subr.bf16.mxu0 %v6136_v27  ;;  %v7492_v54 = vpop.f32.mrf.mxu1  ;;  %v6103_v27 = vld [vmem:[%s8444_s1 + $0x430] ss:$8 sps:$4 sm:$0xff]  }
 0x110   :  { %2834 = vmatpush2.bf16.msra.mxu1 %v6039_v22  ;;  %v7509_v0 = vpop.f32.mrf.mxu0  ;;  %v6160_v22 = vld [vmem:[%s8446_s2 + $0x2d4] ss:$8 sps:$4 sm:$0xff]  }
 0x111   :  { %2835 = vmatprep.subr.bf16.mxu1 %v6048_v23  ;;  %v7511_v1 = vpop.f32.mrf.mxu1  ;;  %v6105_v23 = vld [vmem:[%s8444_s1 + $0x434] ss:$8 sps:$4 sm:$0xff]  }
 0x112   :  { %3642 = vmatpush1.bf16.msra.mxu0 %v6134_v31  ;;  %v7531_v11 = vpop.f32.mrf.mxu0  ;;  %v6111_v31 = vld [vmem:[%s8444_s1 + $0x424] ss:$8 sps:$4 sm:$0xff]  }
 0x113   :  { %3643 = vmatprep.subr.bf16.mxu0 %v6139_v32  ;;  %v7533_v12 = vpop.f32.mrf.mxu1 }
 0x114   :  { %2836 = vmatpush2.bf16.msra.mxu1 %v6046_v28  ;;  %2937 = vmatmul.mubr.bf16.gmra.mxu0 %v6108_v36  ;;  %v7550_v18 = vpop.f32.mrf.mxu0  ;;  %v6115_v28 = vld [vmem:[%s8445_s0 + $0x20c] ss:$36 sps:$4 sm:$0xff]   ;;  %v6161_v36 = vld [vmem:[%s8446_s2 + $0x2c0] ss:$8 sps:$4 sm:$0xff]  }
 0x115   :  { %2837 = vmatprep.subr.bf16.mxu1 %v6059_v29  ;;  %2946 = vmatprep.mubr.bf16.mxu0 %v6121_v37  ;;  %v7552_v20 = vpop.f32.mrf.mxu1  ;;  %v6158_v29 = vld [vmem:[%s8446_s2 + $0x2d0] ss:$8 sps:$4 sm:$0xff]   ;;  %v6166_v37 = vld [vmem:[%s8446_s2 + $0x2b4] ss:$8 sps:$4 sm:$0xff]  }
 0x116   :  { %3644 = vmatpush1.bf16.msra.mxu0 %v6137_v41  ;;  %v7563_v24 = vpop.f32.mrf.mxu0 }
 0x117   :  { %3645 = vmatprep.subr.bf16.mxu0 %v6143_v42  ;;  %v7565_v25 = vpop.f32.mrf.mxu1 }
 0x118   :  { %2838 = vmatpush2.bf16.msra.mxu1 %v6057_v30  ;;  %v6163_v30 = vld [vmem:[%s8446_s2 + $0x2c4] ss:$8 sps:$4 sm:$0xff]   ;;  %v7585_v32 = vpop.f32.mrf.mxu0 }
 0x119   :  { %2839 = vmatprep.subr.bf16.mxu1 %v6066_v35  ;;  %v7587_v35 = vpop.f32.mrf.mxu1 }
 0x11a   :  { %3646 = vmatpush1.bf16.msra.mxu0 %v6141_v47  ;;  %v7598_v41 = vpop.f32.mrf.mxu0  ;;  %v6117_v47 = vld [vmem:[%s8445_s0 + $0x208] ss:$36 sps:$4 sm:$0xff]  }
 0x11b   :  { %3647 = vmatprep.subr.bf16.mxu0 %v6146_v48  ;;  %v7600_v42 = vpop.f32.mrf.mxu1  ;;  %v6169_v48 = vld [vmem:[%s8446_s2 + $0x2a4] ss:$8 sps:$4 sm:$0xff]  }
 0x11c   :  { %2840 = vmatpush2.bf16.msra.mxu1 %v6064_v40  ;;  %2947 = vmatmul.mubr.bf16.gmra.mxu0 %v6126_v51  ;;  %v6109_v40 = vld [vmem:[%s8444_s1 + $0x420] ss:$8 sps:$4 sm:$0xff]   ;;  %v7617_v51 = vpop.f32.mrf.mxu0 }
 0x11d   :  { %2841 = vmatprep.subr.bf16.mxu1 %v6072_v43  ;;  %v6120_v43 = vld [vmem:[%s8444_s1 + $0x414] ss:$8 sps:$4 sm:$0xff]  }
 0x11e   :  { %3648 = vmatpush1.bf16.msra.mxu0 %v6144_v59  ;;  %v6172_v59 = vld [vmem:[%s8446_s2 + $0x294] ss:$8 sps:$4 sm:$0xff]  }
 0x11f   :  { %3649 = vmatprep.subr.bf16.mxu0 %v6150_v62  ;;  %v6127_v62 = vld [vmem:[%s8444_s1 + $0x400] ss:$8 sps:$4 sm:$0xff]  }
 0x120   :  { %2842 = vmatpush2.bf16.msra.mxu1 %v6070_v46  ;;  %v6164_v46 = vld [vmem:[%s8446_s2 + $0x2b0] ss:$8 sps:$4 sm:$0xff]  }
 0x121   :  { %2957 = vmatprep.subr.bf16.mxu1 %v6081_v50  ;;  %v6118_v50 = vld [vmem:[%s8444_s1 + $0x410] ss:$8 sps:$4 sm:$0xff]  }
 0x122   :  { %3650 = vmatpush1.bf16.msra.mxu0 %v6148_v3  ;;  %v6170_v3 = vld [vmem:[%s8446_s2 + $0x290] ss:$8 sps:$4 sm:$0xff]  }
 0x123   :  { %2844 = vmatmul.mubr.bf16.vlgmr.msra.gmra.mxu1 %v6076_v52  ;;  %3651 = vmatprep.subr.bf16.mxu0 %v6153_v5  ;;  %v7619_v52 = vpop.f32.mrf.mxu1  ;;  %v6175_v5 = vld [vmem:[%s8446_s2 + $0x284] ss:$8 sps:$4 sm:$0xff]  }
 0x124   :  { %2958 = vmatpush1.bf16.msra.mxu1 %v6079_v57  ;;  %2853 = vmatprep.mubr.bf16.mxu1 %v6088_v58  ;;  %v6129_v57 = vld [vmem:[%s8444_s1 + $0x404] ss:$8 sps:$4 sm:$0xff]   ;;  %v6167_v58 = vld [vmem:[%s8446_s2 + $0x2a0] ss:$8 sps:$4 sm:$0xff]  }
 0x125   :  { %2959 = vmatprep.subr.bf16.mxu1 %v6087_v63  ;;  %v7634_v63 = vpop.f32.mrf.mxu0 }
 0x126   :  { %3652 = vmatpush2.bf16.msra.mxu0 %v6151_v8 }
 0x127   :  { %3653 = vmatprep.subr.bf16.mxu0 %v6157_v16  ;;  %v7647_v8 = vpop.f32.mrf.mxu0  ;;  %v6178_v16 = vld [vmem:[%s8446_s2 + $0x74] ss:$8 sps:$4 sm:$0xff]  }
 0x128   :  { %2960 = vmatpush1.bf16.msra.mxu1 %v6085_v2  ;;  %v7636_v2 = vpop.f32.mrf.mxu1 }
 0x129   :  { %2961 = vmatprep.subr.bf16.mxu1 %v6093_v4  ;;  %v6133_v4 = vld [vmem:[%s8445_s0 + $0x140] ss:$36 sps:$4 sm:$0xff]  }
 0x12a   :  { %3654 = vmatpush2.bf16.msra.mxu0 %v6155_v17 }
 0x12b   :  { %2854 = vmatmul.mubr.bf16.gmra.mxu1 %v6090_v9  ;;  %3655 = vmatprep.subr.bf16.mxu0 %v6160_v22  ;;  %v7649_v9 = vpop.f32.mrf.mxu1 }
 0x12c   :  { %2962 = vmatpush1.bf16.msra.mxu1 %v6091_v13  ;;  %2863 = vmatprep.mubr.bf16.mxu1 %v6100_v14  ;;  %v6173_v13 = vld [vmem:[%s8446_s2 + $0x280] ss:$8 sps:$4 sm:$0xff]  }
 0x12d   :  { %2963 = vmatprep.subr.bf16.mxu1 %v6099_v15 }
 0x12e   :  { %3656 = vmatpush2.bf16.msra.mxu0 %v6158_v29 }
 0x12f   :  { %3657 = vmatprep.subr.bf16.mxu0 %v6163_v30 }
 0x130   :  { %2964 = vmatpush1.bf16.msra.mxu1 %v6097_v21 }
 0x131   :  { %2965 = vmatprep.subr.bf16.mxu1 %v6105_v23 }
 0x132   :  { %3658 = vmatpush2.bf16.msra.mxu0 %v6161_v36  ;;  %v6226_v36 = vld [vmem:[%s8446_s2 + $0x374] ss:$8 sps:$4 sm:$0xff]  }
 0x133   :  { %2864 = vmatmul.mubr.bf16.gmra.mxu1 %v6102_v26  ;;  %3659 = vmatprep.subr.bf16.mxu0 %v6166_v37 }
 0x134   :  { %2966 = vmatpush1.bf16.msra.mxu1 %v6103_v27  ;;  %2873 = vmatprep.mubr.bf16.mxu1 %v6115_v28  ;;  %v6140_v28 = vld [vmem:[%s8445_s0 + $0x188] ss:$36 sps:$4 sm:$0xff]  }
 0x135   :  { %2967 = vmatprep.subr.bf16.mxu1 %v6111_v31  ;;  %v6224_v31 = vld [vmem:[%s8446_s2 + $0x370] ss:$8 sps:$4 sm:$0xff]  }
 0x136   :  { %3660 = vmatpush2.bf16.msra.mxu0 %v6164_v46 }
 0x137   :  { %3661 = vmatprep.subr.bf16.mxu0 %v6169_v48  ;;  %v6232_v48 = vld [vmem:[%s8446_s2 + $0x354] ss:$8 sps:$4 sm:$0xff]  }
 0x138   :  { %2968 = vmatpush1.bf16.msra.mxu1 %v6109_v40  ;;  %v6229_v40 = vld [vmem:[%s8446_s2 + $0x364] ss:$8 sps:$4 sm:$0xff]  }
 0x139   :  { %2969 = vmatprep.subr.bf16.mxu1 %v6120_v43 }
 0x13a   :  { %3662 = vmatpush2.bf16.msra.mxu0 %v6167_v58  ;;  %v6230_v58 = vld [vmem:[%s8446_s2 + $0x350] ss:$8 sps:$4 sm:$0xff]  }
 0x13b   :  { %2874 = vmatmul.mubr.bf16.gmra.mxu1 %v6117_v47  ;;  %3663 = vmatprep.subr.bf16.mxu0 %v6172_v59 }
 0x13c   :  { %2970 = vmatpush1.bf16.msra.mxu1 %v6118_v50  ;;  %2989 = vmatprep.mubr.bf16.mxu1 %v8452_v61 }
 0x13d   :  { %2971 = vmatprep.subr.bf16.mxu1 %v6129_v57  ;;  %v6147_v57 = vld [vmem:[%s8445_s0 + $0x1d0] ss:$36 sps:$4 sm:$0xff]  }
 0x13e   :  { %3664 = vmatpush2.bf16.msra.mxu0 %v6170_v3 }
 0x13f   :  { %3665 = vmatprep.subr.bf16.mxu0 %v6175_v5 }
 0x140   :  { %2972 = vmatpush1.bf16.msra.mxu1 %v6127_v62 }
 0x141   :  { %3698 = vmatprep.subr.bf16.mxu1 %v6226_v36 }
 0x142   :  { %v1307_v14 = vpop.f32.mrf.mxu0  ;;  %3666 = vmatpush2.bf16.msra.mxu0 %v6173_v13 }
 0x143   :  { %v1380_v15 = vpop.f32.mrf.mxu1  ;;  %2990 = vmatmul.mubr.bf16.vlgmr.msra.gmra.mxu1 %v6133_v4  ;;  %v1308_v17 = vadd.f32 %v1307_v14, %v7380_v10  ;;  %4141 = vmatprep.subr.bf16.mxu0 %v6178_v16  ;;  %v6154_v14 = vld [vmem:[%s8445_s0 + $0x218] ss:$36 sps:$4 sm:$0xff]  }
 0x144   :  { %2999 = vmatprep.mubr.bf16.mxu1 %v8452_v61  ;;  %v7659_v21 = vpop.f32.mrf.mxu0  ;;  %3699 = vmatpush1.bf16.msra.mxu1 %v6224_v31 }
 0x145   :  { %v7661_v22 = vpop.f32.mrf.mxu1  ;;  %v1381_v23 = vadd.f32 %v1380_v15, %v1308_v17  ;;  %3700 = vmatprep.subr.bf16.mxu1 %v6229_v40 }
 0x146   :  { %8459 = vst [vmem:[#allocation5_spill] sm:$0xff] %v7661_v22  ;;  %v1311_v26 = vpop.f32.mrf.mxu0 }
 0x147   :  { %v1384_v27 = vpop.f32.mrf.mxu1  ;;  %v1312_v29 = vadd.f32 %v1311_v26, %v7398_v19  ;;  %v6227_v19 = vld [vmem:[%s8446_s2 + $0x360] ss:$8 sps:$4 sm:$0xff]  }
 0x148   :  { %v7667_v30 = vpop.f32.mrf.mxu0  ;;  %3701 = vmatpush1.bf16.msra.mxu1 %v6227_v19 }
 0x149   :  { %v7669_v10 = vpop.f32.mrf.mxu1  ;;  %v1385_v37 = vadd.f32 %v1384_v27, %v1312_v29  ;;  %3702 = vmatprep.subr.bf16.mxu1 %v6232_v48  ;;  %v6235_v48 = vld [vmem:[%s8446_s2 + $0x344] ss:$8 sps:$4 sm:$0xff]  }
 0x14a   :  { %v1317_v46 = vpop.f32.mrf.mxu0 }
 0x14b   :  { %v7680_v43 = vpop.f32.mrf.mxu1  ;;  %3000 = vmatmul.mubr.bf16.gmra.mxu1 %v6140_v28  ;;  %v7720_v28 = vsub.s32 1, %v7316_v49  ;;  %v1176_v49 = vadd.f32 %v7490_v53, %v7352_v60  ;;  %v6238_v53 = vld [vmem:[%s8446_s2 + $0x334] ss:$8 sps:$4 sm:$0xff]  }
 0x14c   :  { %3009 = vmatprep.mubr.bf16.mxu1 %v8452_v61  ;;  %v1319_v59 = vpop.f32.mrf.mxu0  ;;  %3703 = vmatpush1.bf16.msra.mxu1 %v6230_v58 }
 0x14d   :  { %v7686_v47 = vpop.f32.mrf.mxu1  ;;  %8462 = vst [vmem:[#allocation8_spill] sm:$0xff] %v7720_v28  ;;  %v7730_v40 = vrot.slane %v7339_v56, %v7720_v28  ;;  %v1172_v56 = vadd.f32 %v7452_v38, %v7352_v60  ;;  %3704 = vmatprep.subr.bf16.mxu1 %v6235_v48  ;;  %v6236_v38 = vld [vmem:[%s8446_s2 + $0x330] ss:$8 sps:$4 sm:$0xff]  }
 0x14e   :  { %v1321_v4 = vpop.f32.mrf.mxu0 }
 0x14f   :  { %v7691_v50 = vpop.f32.mrf.mxu1 }
 0x150   :  { %v1323_v15 = vpop.f32.mrf.mxu0 }
 0x151   :  { %v7699_v62 = vpop.f32.mrf.mxu1 }
 0x152   :  { %v7715_v26 = vpop.f32.mrf.mxu0 }
 0x153   :  { %v7701_v3 = vpop.f32.mrf.mxu1  ;;  %3010 = vmatmul.mubr.bf16.gmra.mxu1 %v6147_v57  ;;  %v1174_v57 = vadd.f32 %v7468_v44, %v7730_v40 }
 0x154   :  { %3019 = vmatprep.mubr.bf16.mxu1 %v8452_v61  ;;  %v7724_v31 = vpop.f32.mrf.mxu0  ;;  %v1178_v61 = vadd.f32 %v7509_v0, %v7730_v40  ;;  %v1245_v0 = vadd.f32 %v7454_v39, %v1172_v56  ;;  %v6241_v39 = vld [vmem:[%s8446_s2 + $0x324] ss:$8 sps:$4 sm:$0xff]  }
 0x155   :  { %v7704_v5 = vpop.f32.mrf.mxu1 }
 0x156   :  { %v1331_v28 = vpop.f32.mrf.mxu0 }
 0x157   :  { %v7706_v13 = vpop.f32.mrf.mxu1 }
 0x158   :  { %v1333_v48 = vpop.f32.mrf.mxu0 }
 0x159   :  { %v7711_v16 = vpop.f32.mrf.mxu1 }
 0x15b   :  { %v7713_v17 = vpop.f32.mrf.mxu1  ;;  %3020 = vmatmul.mubr.bf16.gmra.mxu1 %v6154_v14  ;;  %v6233_v14 = vld [vmem:[%s8446_s2 + $0x340] ss:$8 sps:$4 sm:$0xff]  }
 0x15c   :  { %8460 = vst [vmem:[#allocation6_spill] sm:$0xff] %v7713_v17  ;;  %3705 = vmatpush1.bf16.msra.mxu1 %v6233_v14 }
 0x15d   :  { %v7717_v27 = vpop.f32.mrf.mxu1  ;;  %3706 = vmatprep.subr.bf16.mxu1 %v6238_v53 }
 0x15e   :  { %8461 = vst [vmem:[#allocation7_spill] sm:$0xff] %v7717_v27 }
 0x15f   :  { %v7722_v29 = vpop.f32.mrf.mxu1 }
 0x160   :  { %8463 = vst [vmem:[#allocation9_spill] sm:$0xff] %v7722_v29  ;;  %3707 = vmatpush1.bf16.msra.mxu1 %v6236_v38 }
 0x161   :  { %v7726_v36 = vpop.f32.mrf.mxu1  ;;  %3708 = vmatprep.subr.bf16.mxu1 %v6241_v39 }
 0x162   :  { %8464 = vst [vmem:[#allocation10_spill] sm:$0xff] %v7726_v36 }
 0x163   :  { %v1453_v19 = vpop.f32.mrf.mxu1 }
 0x164   :  { %v1454_v58 = vadd.f32 %v1453_v19, %v1381_v23  ;;  %v1247_v23 = vadd.f32 %v7470_v45, %v1174_v57  ;;  %v1249_v19 = vadd.f32 %v7492_v54, %v1176_v49  ;;  %v1184_v45 = vadd.f32 %v7550_v18, %v7730_v40  ;;  %v7774_v18 = vpop.f32.mrf.mxu0 }
 0x165   :  { %v7746_v55 = vpop.f32.mrf.mxu1  ;;  %v1318_v54 = vadd.f32 %v1317_v46, %v1245_v0  ;;  %v6247_v0 = vld [vmem:[%s8446_s2 + $0x304] ss:$8 sps:$4 sm:$0xff]  }
 0x166   :  { %8465 = vst [vmem:[#allocation11_spill] sm:$0xff] %v7746_v55  ;;  %v1251_v55 = vadd.f32 %v7511_v1, %v1178_v61  ;;  %v1320_v17 = vadd.f32 %v1319_v59, %v1247_v23  ;;  %v1322_v22 = vadd.f32 %v1321_v4, %v1249_v19  ;;  %v1492_v29 = vmax.f32 %v1454_v58, 0.0  ;;  %v6239_v59 = vld [vmem:[%s8446_s2 + $0x320] ss:$8 sps:$4 sm:$0xff]  }
 0x167   :  { %v1457_v44 = vpop.f32.mrf.mxu1  ;;  %v1186_v61 = vadd.f32 %v7563_v24, %v7352_v60  ;;  %v1182_v4 = vadd.f32 %v7531_v11, %v7352_v60  ;;  %3709 = vmatpush1.bf16.msra.mxu1 %v6239_v59  ;;  %v1257_v24 = vadd.f32 %v7552_v20, %v1184_v45  ;;  %v6244_v11 = vld [vmem:[%s8446_s2 + $0x314] ss:$8 sps:$4 sm:$0xff]   ;;  %v1164_v20 = vadd.f32 %v7370_v6, %v7730_v40 }
 0x168   :  { %v1458_v36 = vadd.f32 %v1457_v44, %v1385_v37  ;;  %v1324_v1 = vadd.f32 %v1323_v15, %v1251_v55  ;;  %v1393_v49 = vadd.f32 %v7686_v47, %v1320_v17  ;;  %v1395_v55 = vadd.f32 %v7691_v50, %v1322_v22  ;;  %v6242_v22 = vld [vmem:[%s8446_s2 + $0x310] ss:$8 sps:$4 sm:$0xff]   ;;  %v1339_v50 = vpop.f32.mrf.mxu0  ;;  %3710 = vmatprep.subr.bf16.mxu1 %v6244_v11  ;;  %v6179_v11 = vld [vmem:[%s8446_s2 + $0x60] ss:$8 sps:$4 sm:$0xff]  }
 0x169   :  { %v7758_v14 = vpop.f32.mrf.mxu1  ;;  %v1391_v15 = vadd.f32 %v7680_v43, %v1318_v54  ;;  %v1168_v43 = vadd.f32 %v7439_v33, %v7730_v40  ;;  %v1255_v47 = vadd.f32 %v7533_v12, %v1182_v4  ;;  %v1192_v19 = vadd.f32 %v7598_v41, %v7352_v60  ;;  %v6245_v41 = vld [vmem:[%s8446_s2 + $0x300] ss:$8 sps:$4 sm:$0xff]  }
 0x16a   :  { %v1494_v27 = vmax.f32 %v1458_v36, 0.0  ;;  %v1188_v36 = vadd.f32 %v7585_v32, %v7730_v40  ;;  %v1397_v58 = vadd.f32 %v7699_v62, %v1324_v1  ;;  %v1330_v62 = vadd.f32 %v7724_v31, %v1257_v24  ;;  %v1341_v54 = vpop.f32.mrf.mxu0  ;;  %v6176_v1 = vld [vmem:[%s8446_s2 + $0x70] ss:$8 sps:$4 sm:$0xff]  }
 0x16b   :  { %v1463_v37 = vpop.f32.mrf.mxu1  ;;  %3711 = vmatpush1.bf16.msra.mxu1 %v6242_v22  ;;  %v1194_v6 = vadd.f32 %v7617_v51, %v7730_v40  ;;  %v1328_v33 = vadd.f32 %v7715_v26, %v1255_v47  ;;  %v1237_v51 = vadd.f32 %v7372_v7, %v1164_v20  ;;  %v1198_v26 = vadd.f32 %v7647_v8, %v7730_v40 }
 0x16c   :  { %v7767_v57 = vpack.c.bf16 %v1494_v27, %v1492_v29  ;;  %v1259_v29 = vadd.f32 %v7565_v25, %v1186_v61  ;;  %v1464_v17 = vadd.f32 %v1463_v37, %v1391_v15  ;;  %v1261_v25 = vadd.f32 %v7587_v35, %v1188_v36  ;;  %3712 = vmatprep.subr.bf16.mxu1 %v6247_v0  ;;  %v6187_v0 = vld [vmem:[%s8446_s2 + $0x44] ss:$8 sps:$4 sm:$0xff]  }
 0x16d   :  { %v1465_v46 = vpop.f32.mrf.mxu1  ;;  %v1196_v35 = vadd.f32 %v7634_v63, %v7352_v60  ;;  %v1241_v61 = vadd.f32 %v7441_v34, %v1168_v43  ;;  %v1403_v60 = vadd.f32 %v7704_v5, %v1330_v62  ;;  %v1265_v7 = vadd.f32 %v7600_v42, %v1192_v19  ;;  %v6181_v5 = vld [vmem:[%s8446_s2 + $0x64] ss:$8 sps:$4 sm:$0xff]   ;;  %v8468_v19 = vld [vmem:[#allocation5_spill] sm:$0xff] }
 0x16e   :  { %v1466_v56 = vadd.f32 %v1465_v46, %v1393_v49  ;;  %v1332_v53 = vadd.f32 %v1331_v28, %v1259_v29  ;;  %v1334_v28 = vadd.f32 %v1333_v48, %v1261_v25  ;;  %v1496_v37 = vmax.f32 %v1464_v17, 0.0  ;;  %v8466_v17 = vld [vmem:[#allocation7_spill] sm:$0xff]  ;;  %v8467_v25 = vld [vmem:[#allocation9_spill] sm:$0xff] }
 0x16f   :  { %v1467_v27 = vpop.f32.mrf.mxu1  ;;  %3713 = vmatpush1.bf16.msra.mxu1 %v6245_v41  ;;  %v1267_v8 = vadd.f32 %v7619_v52, %v1194_v6  ;;  %v1401_v40 = vadd.f32 %v7701_v3, %v1328_v33  ;;  %v1269_v4 = vadd.f32 %v7636_v2, %v1196_v35  ;;  %v6248_v52 = vld [vmem:[%s8446_s2 + $0x3f0] ss:$8 sps:$4 sm:$0xff]   ;;  %v1271_v3 = vadd.f32 %v7649_v9, %v1198_v26  ;;  %v8469_v33 = vld [vmem:[#allocation6_spill] sm:$0xff]  ;;  %v6256_v35 = vld [vmem:[%s8446_s2 + $0x3d4] ss:$8 sps:$4 sm:$0xff]  }
 0x170   :  { %v1468_v32 = vadd.f32 %v1467_v27, %v1395_v55  ;;  %v1497_v31 = vmax.f32 %v1466_v56, 0.0  ;;  %v1405_v63 = vadd.f32 %v7706_v13, %v1332_v53  ;;  %v6250_v13 = vld [vmem:[%s8446_s2 + $0x3f4] ss:$8 sps:$4 sm:$0xff]   ;;  %v1407_v46 = vadd.f32 %v7711_v16, %v1334_v28  ;;  %v1343_v55 = vpop.f32.mrf.mxu0  ;;  %v8470_v28 = vld [vmem:[#allocation10_spill] sm:$0xff]  ;;  %v6254_v26 = vld [vmem:[%s8446_s2 + $0x3d0] ss:$8 sps:$4 sm:$0xff]  }
 0x171   :  { %v1469_v44 = vpop.f32.mrf.mxu1  ;;  %v1314_v49 = vadd.f32 %v7667_v30, %v1241_v61  ;;  %3714 = vmatprep.subr.bf16.mxu1 %v6250_v13  ;;  %v1340_v2 = vadd.f32 %v1339_v50, %v1267_v8  ;;  %v1342_v16 = vadd.f32 %v1341_v54, %v1269_v4  ;;  %v1310_v29 = vadd.f32 %v7659_v21, %v1237_v51  ;;  %v6184_v56 = vld [vmem:[%s8446_s2 + $0x54] ss:$8 sps:$4 sm:$0xff]   ;;  %v6251_v21 = vld [vmem:[%s8446_s2 + $0x3e0] ss:$8 sps:$4 sm:$0xff]  }
 0x172   :  { %v1470_v23 = vadd.f32 %v1469_v44, %v1397_v58  ;;  %v1498_v12 = vmax.f32 %v1468_v32, 0.0  ;;  %v1338_v9 = vadd.f32 %v7774_v18, %v1265_v7  ;;  %v6253_v32 = vld [vmem:[%s8446_s2 + $0x3e4] ss:$8 sps:$4 sm:$0xff]   ;;  %v1344_v22 = vadd.f32 %v1343_v55, %v1271_v3  ;;  %v6262_v3 = vld [vmem:[%s8446_s2 + $0x3b4] ss:$8 sps:$4 sm:$0xff]  }
 0x173   :  { %v1473_v38 = vpop.f32.mrf.mxu1  ;;  %3715 = vmatpush2.bf16.msra.mxu1 %v6248_v52  ;;  %v1387_v18 = vadd.f32 %v7669_v10, %v1314_v49  ;;  %v1413_v44 = vadd.f32 %v8466_v17, %v1340_v2  ;;  %v1415_v62 = vadd.f32 %v8467_v25, %v1342_v16  ;;  %v1383_v6 = vadd.f32 %v8468_v19, %v1310_v29  ;;  %v6259_v7 = vld [vmem:[%s8446_s2 + $0x3c4] ss:$8 sps:$4 sm:$0xff]   ;;  %v6260_v55 = vld [vmem:[%s8446_s2 + $0x3b0] ss:$8 sps:$4 sm:$0xff]   ;;  %v6263_v16 = vld [vmem:[%s8446_s2 + $0x3a0] ss:$8 sps:$4 sm:$0xff]  }
 0x174   :  { %v1499_v45 = vmax.f32 %v1470_v23, 0.0  ;;  %v7824_v59 = vpack.c.bf16 %v1498_v12, %v1496_v37  ;;  %v1474_v24 = vadd.f32 %v1473_v38, %v1401_v40  ;;  %3716 = vmatprep.subr.bf16.mxu1 %v6253_v32  ;;  %v6182_v23 = vld [vmem:[%s8446_s2 + $0x50] ss:$8 sps:$4 sm:$0xff]   ;;  %v1411_v12 = vadd.f32 %v8469_v33, %v1338_v9  ;;  %v6193_v52 = vld [vmem:[%s8446_s2 + $0x24] ss:$8 sps:$4 sm:$0xff]  }
 0x175   :  { %v1475_v39 = vpop.f32.mrf.mxu1  ;;  %v6265_v2 = vld [vmem:[%s8446_s2 + $0x3a4] ss:$8 sps:$4 sm:$0xff]   ;;  %v6268_v29 = vld [vmem:[%s8446_s2 + $0x394] ss:$8 sps:$4 sm:$0xff]   ;;  %v6266_v9 = vld [vmem:[%s8446_s2 + $0x390] ss:$8 sps:$4 sm:$0xff]  }
 0x176   :  { %v7816_v48 = vpack.c.bf16 %v1499_v45, %v1497_v31  ;;  %v1476_v42 = vadd.f32 %v1475_v39, %v1403_v60  ;;  %v1500_v47 = vmax.f32 %v1474_v24, 0.0  ;;  %v1417_v31 = vadd.f32 %v8470_v28, %v1344_v22  ;;  %v8471_v39 = vld [vmem:[#allocation11_spill] sm:$0xff]  ;;  %v6200_v22 = vld [vmem:[%s8446_s2 + $0xf0] ss:$8 sps:$4 sm:$0xff]   ;;  %v6214_v33 = vld [vmem:[%s8446_s2 + $0xb4] ss:$8 sps:$4 sm:$0xff]  }
 0x177   :  { %v1477_v34 = vpop.f32.mrf.mxu1  ;;  %3717 = vmatpush2.bf16.msra.mxu1 %v6251_v21  ;;  %v1460_v45 = vadd.f32 %v7758_v14, %v1387_v18  ;;  %v1456_v61 = vadd.f32 %v8471_v39, %v1383_v6  ;;  %v6185_v14 = vld [vmem:[%s8446_s2 + $0x40] ss:$8 sps:$4 sm:$0xff]   ;;  %v6208_v18 = vld [vmem:[%s8446_s2 + $0xd4] ss:$8 sps:$4 sm:$0xff]   ;;  %v6211_v17 = vld [vmem:[%s8446_s2 + $0xc4] ss:$8 sps:$4 sm:$0xff]  }
 0x178   :  { %v1478_v36 = vadd.f32 %v1477_v34, %v1405_v63  ;;  %3667 = vmatprep.mubr.bf16.mxu0 %v7816_v48  ;;  %v1501_v20 = vmax.f32 %v1476_v42, 0.0  ;;  %3718 = vmatprep.subr.bf16.mxu1 %v6256_v35  ;;  %v6188_v42 = vld [vmem:[%s8446_s2 + $0x30] ss:$8 sps:$4 sm:$0xff]   ;;  %v6191_v24 = vld [vmem:[%s8446_s2 + $0x20] ss:$8 sps:$4 sm:$0xff]  }
 0x179   :  { %v1479_v15 = vpop.f32.mrf.mxu1  ;;  %3668 = vmatmul.mubr.bf16.vlgmr.msra.gmra.mxu0 %v7824_v59  ;;  %v1495_v8 = vmax.f32 %v1460_v45, 0.0  ;;  %v1493_v4 = vmax.f32 %v1456_v61, 0.0  ;;  %v6269_v32 = vld [vmem:[%s8446_s2 + $0x380] ss:$8 sps:$4 sm:$0xff]   ;;  %v8472_v25 = vld [vmem:[#allocation4_spill] sm:$0xff] }
 0x17a   :  { %v1480_v27 = vadd.f32 %v1479_v15, %v1407_v46  ;;  %4142 = vmatpush1.bf16.msra.mxu0 %v6176_v1  ;;  %v1502_v30 = vmax.f32 %v1478_v36, 0.0  ;;  %v6190_v1 = vld [vmem:[%s8446_s2 + $0x34] ss:$8 sps:$4 sm:$0xff]   ;;  %v6203_v21 = vld [vmem:[%s8446_s2 + $0xe0] ss:$8 sps:$4 sm:$0xff]  }
 0x17b   :  { %v1483_v58 = vpop.f32.mrf.mxu1  ;;  %4143 = vmatprep.subr.bf16.mxu0 %v6181_v5  ;;  %3719 = vmatpush2.bf16.msra.mxu1 %v6254_v26  ;;  %v6257_v5 = vld [vmem:[%s8446_s2 + $0x3c0] ss:$8 sps:$4 sm:$0xff]   ;;  %v5588_v49 = vpack.c.bf16 %v1495_v8, %v1493_v4  ;;  %v6196_v15 = vld [vmem:[%s8446_s2 + $0x14] ss:$8 sps:$4 sm:$0xff]   ;;  %v6212_v35 = vld [vmem:[%s8446_s2 + $0xb0] ss:$8 sps:$4 sm:$0xff]  }
 0x17c   :  { %v1503_v43 = vmax.f32 %v1480_v27, 0.0  ;;  %v7865_v10 = vpack.c.bf16 %v1502_v30, %v1500_v47  ;;  %v1484_v54 = vadd.f32 %v1483_v58, %v1411_v12  ;;  %3720 = vmatprep.subr.bf16.mxu1 %v6259_v7  ;;  %v6194_v27 = vld [vmem:[%s8446_s2 + $0x10] ss:$8 sps:$4 sm:$0xff]   ;;  %v6197_v30 = vld [vmem:[%s8446_s2] ss:$8 sps:$4 sm:$0xff]   ;;  %v8473_v8 = vmov 0  }
 0x17d   :  { %v1485_v50 = vpop.f32.mrf.mxu1  ;;  %v6202_v58 = vld [vmem:[%s8446_s2 + $0xf4] ss:$8 sps:$4 sm:$0xff]   ;;  %v7959_v47 = vld [vmem:[%s8447_s4] sm:$0x3]  ;;  %v6217_v45 = vld [vmem:[%s8446_s2 + $0xa4] ss:$8 sps:$4 sm:$0xff]  }
 0x17e   :  { %v7858_v53 = vpack.c.bf16 %v1503_v43, %v1501_v20  ;;  %4144 = vmatpush1.bf16.msra.mxu0 %v6179_v11  ;;  %v1486_v41 = vadd.f32 %v1485_v50, %v1413_v44  ;;  %v1504_v13 = vmax.f32 %v1484_v54, 0.0  ;;  %v6199_v11 = vld [vmem:[%s8446_s2 + $0x4] ss:$8 sps:$4 sm:$0xff]   ;;  %v6274_v43 = vld [vmem:[%s8446_s2 + $0x174] ss:$8 sps:$4 sm:$0xff]  }
 0x17f   :  { %v1487_v38 = vpop.f32.mrf.mxu1  ;;  %4145 = vmatprep.subr.bf16.mxu0 %v6184_v56  ;;  %3721 = vmatpush2.bf16.msra.mxu1 %v6257_v5  ;;  %v6271_v56 = vld [vmem:[%s8446_s2 + $0x384] ss:$8 sps:$4 sm:$0xff]   ;;  %v6206_v50 = vld [vmem:[%s8446_s2 + $0xd0] ss:$8 sps:$4 sm:$0xff]   ;;  %v6215_v26 = vld [vmem:[%s8446_s2 + $0xa0] ss:$8 sps:$4 sm:$0xff]  }
 0x180   :  { %v1488_v51 = vadd.f32 %v1487_v38, %v1415_v62  ;;  %3677 = vmatprep.mubr.bf16.mxu0 %v7858_v53  ;;  %v1505_v40 = vmax.f32 %v1486_v41, 0.0  ;;  %3722 = vmatprep.subr.bf16.mxu1 %v6262_v3  ;;  %v6205_v20 = vld [vmem:[%s8446_s2 + $0xe4] ss:$8 sps:$4 sm:$0xff]   ;;  %v7969_v62 = vrot.slane %v7959_v47, %v8472_v25  ;;  %v6220_v54 = vld [vmem:[%s8446_s2 + $0x94] ss:$8 sps:$4 sm:$0xff]  }
 0x181   :  { %v1489_v37 = vpop.f32.mrf.mxu1  ;;  %3678 = vmatmul.mubr.bf16.gmra.mxu0 %v7865_v10  ;;  %v6223_v61 = vld [vmem:[%s8446_s2 + $0x84] ss:$8 sps:$4 sm:$0xff]  }
 0x182   :  { %v1490_v60 = vadd.f32 %v1489_v37, %v1417_v31  ;;  %4146 = vmatpush1.bf16.msra.mxu0 %v6182_v23  ;;  %v1506_v63 = vmax.f32 %v1488_v51, 0.0  ;;  %v6209_v23 = vld [vmem:[%s8446_s2 + $0xc0] ss:$8 sps:$4 sm:$0xff]   ;;  %v6218_v37 = vld [vmem:[%s8446_s2 + $0x90] ss:$8 sps:$4 sm:$0xff]  }
 0x183   :  { %4147 = vmatprep.subr.bf16.mxu0 %v6187_v0  ;;  %3723 = vmatpush2.bf16.msra.mxu1 %v6260_v55 }
 0x184   :  { %v1507_v34 = vmax.f32 %v1490_v60, 0.0  ;;  %v5583_v36 = vpack.c.bf16 %v1506_v63, %v1504_v13  ;;  %3724 = vmatprep.subr.bf16.mxu1 %v6265_v2  ;;  %v2772_v44 = vpop.f32.mrf.mxu0 }
 0x186   :  { %v5584_v46 = vpack.c.bf16 %v1507_v34, %v1505_v40  ;;  %4148 = vmatpush1.bf16.msra.mxu0 %v6185_v14  ;;  %v7974_v6 = vpop.f32.mrf.mxu0  ;;  %v6221_v14 = vld [vmem:[%s8446_s2 + $0x80] ss:$8 sps:$4 sm:$0xff]  }
 0x187   :  { %4149 = vmatprep.subr.bf16.mxu0 %v6190_v1  ;;  %3725 = vmatpush2.bf16.msra.mxu1 %v6263_v16 }
 0x188   :  { %3687 = vmatprep.mubr.bf16.mxu0 %v5584_v46  ;;  %3726 = vmatprep.subr.bf16.mxu1 %v6268_v29  ;;  %v2776_v31 = vpop.f32.mrf.mxu0 }
 0x189   :  { %3688 = vmatmul.mubr.bf16.gmra.mxu0 %v5583_v36 }
 0x18a   :  { %4150 = vmatpush1.bf16.msra.mxu0 %v6188_v42  ;;  %4173 = vmatprep.mubr.bf16.mxu0 %v5588_v49  ;;  %v7998_v39 = vpop.f32.mrf.mxu0 }
 0x18b   :  { %4151 = vmatprep.subr.bf16.mxu0 %v6193_v52  ;;  %3727 = vmatpush2.bf16.msra.mxu1 %v6266_v9 }
 0x18c   :  { %3728 = vmatprep.subr.bf16.mxu1 %v6271_v56  ;;  %v8003_v60 = vpop.f32.mrf.mxu0 }
 0x18e   :  { %4152 = vmatpush1.bf16.msra.mxu0 %v6191_v24  ;;  %v8010_v7 = vpop.f32.mrf.mxu0 }
 0x18f   :  { %4153 = vmatprep.subr.bf16.mxu0 %v6196_v15  ;;  %3729 = vmatpush2.bf16.msra.mxu1 %v6269_v32 }
 0x190   :  { %4204 = vmatprep.subr.bf16.mxu1 %v6274_v43  ;;  %v8014_v34 = vpop.f32.mrf.mxu0 }
 0x192   :  { %4154 = vmatpush1.bf16.msra.mxu0 %v6194_v27  ;;  %v8017_v13 = vpop.f32.mrf.mxu0 }
 0x193   :  { %4155 = vmatprep.subr.bf16.mxu0 %v6199_v11 }
 0x194   :  { %v8020_v46 = vpop.f32.mrf.mxu0 }
 0x196   :  { %4156 = vmatpush1.bf16.msra.mxu0 %v6197_v30  ;;  %v8025_v36 = vpop.f32.mrf.mxu0 }
 0x197   :  { %4157 = vmatprep.subr.bf16.mxu0 %v6202_v58 }
 0x198   :  { %v8030_v52 = vpop.f32.mrf.mxu0 }
 0x19a   :  { %4158 = vmatpush2.bf16.msra.mxu0 %v6200_v22  ;;  %v8034_v3 = vpop.f32.mrf.mxu0 }
 0x19b   :  { %4159 = vmatprep.subr.bf16.mxu0 %v6205_v20 }
 0x19c   :  { %v8038_v49 = vpop.f32.mrf.mxu0 }
 0x19e   :  { %4160 = vmatpush2.bf16.msra.mxu0 %v6203_v21 }
 0x19f   :  { %4161 = vmatprep.subr.bf16.mxu0 %v6208_v18 }
 0x1a2   :  { %4162 = vmatpush2.bf16.msra.mxu0 %v6206_v50 }
 0x1a3   :  { %v2699_v19 = vpop.f32.mrf.mxu1  ;;  %4163 = vmatprep.subr.bf16.mxu0 %v6211_v17 }
 0x1a4   :  { %v2700_v12 = vadd.f32 %v2699_v19, %v7969_v62 }
 0x1a5   :  { %v7980_v38 = vpop.f32.mrf.mxu1 }
 0x1a6   :  { %v2773_v0 = vadd.f32 %v2772_v44, %v2700_v12  ;;  %4164 = vmatpush2.bf16.msra.mxu0 %v6209_v23 }
 0x1a7   :  { %v2703_v28 = vpop.f32.mrf.mxu1  ;;  %4165 = vmatprep.subr.bf16.mxu0 %v6214_v33 }
 0x1a8   :  { %v2704_v41 = vadd.f32 %v2703_v28, %v7969_v62 }
 0x1a9   :  { %v2705_v63 = vpop.f32.mrf.mxu1 }
 0x1aa   :  { %v2777_v51 = vadd.f32 %v2776_v31, %v2704_v41  ;;  %4166 = vmatpush2.bf16.msra.mxu0 %v6212_v35 }
 0x1ab   :  { %4167 = vmatprep.subr.bf16.mxu0 %v6217_v45  ;;  %v8008_v1 = vpop.f32.mrf.mxu1 }
 0x1ad   :  { %v2711_v40 = vpop.f32.mrf.mxu1 }
 0x1ae   :  { %4168 = vmatpush2.bf16.msra.mxu0 %v6215_v26 }
 0x1af   :  { %4169 = vmatprep.subr.bf16.mxu0 %v6220_v54  ;;  %v2713_v5 = vpop.f32.mrf.mxu1 }
 0x1b1   :  { %v2715_v4 = vpop.f32.mrf.mxu1 }
 0x1b2   :  { %4170 = vmatpush2.bf16.msra.mxu0 %v6218_v37 }
 0x1b3   :  { %4171 = vmatprep.subr.bf16.mxu0 %v6223_v61  ;;  %v8023_v42 = vpop.f32.mrf.mxu1 }
 0x1b6   :  { %4172 = vmatpush2.bf16.msra.mxu0 %v6221_v14 }
 0x1b7   :  { %4486 = vmatprep.subr.bf16.mxu0 %v8473_v8 }
 0x1b9   :  { %4174 = vmatmul.mubr.bf16.vlgmr.msra.gmra.mxu0 %v7767_v57  ;;  %v8028_v57 = vpop.f32.mrf.mxu1 }
 0x1ba   :  { %4183 = vmatprep.mubr.bf16.mxu0 %v7816_v48 }
 0x1bb   :  { %v8032_v48 = vpop.f32.mrf.mxu1 }
 0x1c1   :  { %4184 = vmatmul.mubr.bf16.gmra.mxu0 %v7824_v59  ;;  %v8036_v59 = vpop.f32.mrf.mxu1 }
 0x1c2   :  { %4193 = vmatprep.mubr.bf16.mxu0 %v7858_v53  ;;  %v8042_v53 = vpop.f32.mrf.mxu0 }
 0x1c3   :  { %v8040_v55 = vpop.f32.mrf.mxu1 }
 0x1c4   :  { %v8046_v15 = vpop.f32.mrf.mxu0 }
 0x1c5   :  { %v8044_v24 = vpop.f32.mrf.mxu1 }
 0x1c6   :  { %v8050_v2 = vpop.f32.mrf.mxu0 }
 0x1c8   :  { %v2918_v16 = vpop.f32.mrf.mxu0 }
 0x1c9   :  { %4194 = vmatmul.mubr.bf16.gmra.mxu0 %v7865_v10  ;;  %v8048_v10 = vpop.f32.mrf.mxu1 }
 0x1ca   :  { %v2920_v29 = vpop.f32.mrf.mxu0 }
 0x1cb   :  { %v8052_v27 = vpop.f32.mrf.mxu1 }
 0x1cc   :  { %v2922_v32 = vpop.f32.mrf.mxu0 }
 0x1ce   :  { %v2924_v18 = vpop.f32.mrf.mxu0 }
 0x1d0   :  { %v2928_v44 = vpop.f32.mrf.mxu0 }
 0x1d2   :  { %v2930_v33 = vpop.f32.mrf.mxu0 }
 0x1d4   :  { %v2932_v31 = vpop.f32.mrf.mxu0 }
 0x1d6   :  { %v2934_v26 = vpop.f32.mrf.mxu0 }
 0x1e3   :  { %v2845_v11 = vpop.f32.mrf.mxu1 }
 0x1e4   :  { %v2846_v9 = vadd.f32 %v2845_v11, %v2773_v0  ;;  %v8474_v0 = vld [vmem:[#allocation8_spill] sm:$0xff] }
 0x1e5   :  { %v2847_v30 = vpop.f32.mrf.mxu1  ;;  %v8062_v28 = vrot.slane %v7959_v47, %v8474_v0 }
 0x1e6   :  { %v2919_v58 = vadd.f32 %v2918_v16, %v2846_v9  ;;  %v8076_v16 = vpop.f32.mrf.mxu0 }
 0x1e7   :  { %v2849_v56 = vpop.f32.mrf.mxu1  ;;  %v2706_v37 = vadd.f32 %v2705_v63, %v8062_v28  ;;  %v2710_v63 = vadd.f32 %v8008_v1, %v7969_v62  ;;  %v2716_v25 = vadd.f32 %v2715_v4, %v8062_v28 }
 0x1e8   :  { %v2850_v22 = vadd.f32 %v2849_v56, %v2777_v51  ;;  %v2702_v51 = vadd.f32 %v7980_v38, %v8062_v28  ;;  %v2712_v56 = vadd.f32 %v2711_v40, %v8062_v28  ;;  %v2714_v38 = vadd.f32 %v2713_v5, %v7969_v62 }
 0x1e9   :  { %v2851_v20 = vpop.f32.mrf.mxu1  ;;  %v2779_v11 = vadd.f32 %v7998_v39, %v2706_v37  ;;  %v2783_v5 = vadd.f32 %v8003_v60, %v2710_v63 }
 0x1ea   :  { %v2923_v43 = vadd.f32 %v2922_v32, %v2850_v22  ;;  %v2775_v14 = vadd.f32 %v7974_v6, %v2702_v51  ;;  %v2940_v6 = vpop.f32.mrf.mxu0  ;;  %v2787_v39 = vadd.f32 %v8014_v34, %v2714_v38  ;;  %v2724_v34 = vadd.f32 %v8032_v48, %v7969_v62 }
 0x1eb   :  { %v2855_v21 = vpop.f32.mrf.mxu1  ;;  %v2852_v22 = vadd.f32 %v2851_v20, %v2779_v11 }
 0x1ec   :  { %v2848_v9 = vadd.f32 %v2847_v30, %v2775_v14  ;;  %v2942_v14 = vpop.f32.mrf.mxu0 }
 0x1ed   :  { %v2857_v50 = vpop.f32.mrf.mxu1  ;;  %v2925_v30 = vadd.f32 %v2924_v18, %v2852_v22 }
 0x1ee   :  { %v2921_v8 = vadd.f32 %v2920_v29, %v2848_v9  ;;  %v2856_v29 = vadd.f32 %v2855_v21, %v2783_v5  ;;  %v2797_v9 = vadd.f32 %v8030_v52, %v2724_v34 }
 0x1ef   :  { %v2859_v17 = vpop.f32.mrf.mxu1 }
 0x1f0   :  { %v2860_v11 = vadd.f32 %v2859_v17, %v2787_v39  ;;  %v2929_v21 = vadd.f32 %v2928_v44, %v2856_v29 }
 0x1f1   :  { %v2861_v23 = vpop.f32.mrf.mxu1 }
 0x1f3   :  { %v8054_v19 = vpop.f32.mrf.mxu1 }
 0x1f5   :  { %v8056_v12 = vpop.f32.mrf.mxu1 }
 0x1f7   :  { %v8058_v35 = vpop.f32.mrf.mxu1 }
 0x1f9   :  { %v8064_v45 = vpop.f32.mrf.mxu1 }
 0x1fb   :  { %v8066_v41 = vpop.f32.mrf.mxu1 }
 0x1fc   :  { %8475 = vst [vmem:[#allocation7_spill] sm:$0xff] %v8066_v41 }
 0x1fd   :  { %v8070_v54 = vpop.f32.mrf.mxu1 }
 0x1ff   :  { %v8073_v61 = vpop.f32.mrf.mxu1 }
 0x200   :  { %8476 = vst [vmem:[#allocation9_spill] sm:$0xff] %v8073_v61 }
 0x201   :  { %v8078_v47 = vpop.f32.mrf.mxu1 }
 0x202   :  { %8477 = vst [vmem:[#allocation5_spill] sm:$0xff] %v8078_v47  ;;  %v2785_v47 = vadd.f32 %v8010_v7, %v2712_v56  ;;  %v2722_v7 = vadd.f32 %v8028_v57, %v8062_v28  ;;  %v2933_v57 = vadd.f32 %v2932_v31, %v2860_v11  ;;  %v2870_v31 = vadd.f32 %v8058_v35, %v2797_v9 }
 0x203   :  { %v2991_v32 = vpop.f32.mrf.mxu1 }
 0x204   :  { %v2992_v0 = vadd.f32 %v2991_v32, %v2919_v58  ;;  %v2789_v58 = vadd.f32 %v8017_v13, %v2716_v25  ;;  %v2858_v20 = vadd.f32 %v2857_v50, %v2785_v47  ;;  %v2720_v13 = vadd.f32 %v8023_v42, %v7969_v62  ;;  %v2944_v50 = vpop.f32.mrf.mxu0 }
 0x205   :  { %v2993_v51 = vpop.f32.mrf.mxu1  ;;  %v2795_v48 = vadd.f32 %v8025_v36, %v2722_v7  ;;  %v2732_v36 = vadd.f32 %v8044_v24, %v8062_v28  ;;  %v2736_v24 = vadd.f32 %v8052_v27, %v8062_v28 }
 0x206   :  { %v2994_v40 = vadd.f32 %v2993_v51, %v2921_v8  ;;  %v3030_v4 = vmax.f32 %v2992_v0, 0.0  ;;  %v2726_v0 = vadd.f32 %v8036_v59, %v8062_v28  ;;  %v2793_v42 = vadd.f32 %v8020_v46, %v2720_v13  ;;  %v2948_v22 = vpop.f32.mrf.mxu0 }
 0x207   :  { %v2995_v41 = vpop.f32.mrf.mxu1  ;;  %v2734_v46 = vadd.f32 %v8048_v10, %v7969_v62  ;;  %v6272_v10 = vld [vmem:[%s8446_s2 + $0x170] ss:$8 sps:$4 sm:$0xff]  }
 0x208   :  { %v2996_v37 = vadd.f32 %v2995_v41, %v2923_v43  ;;  %v2862_v43 = vadd.f32 %v2861_v23, %v2789_v58  ;;  %v3031_v18 = vmax.f32 %v2994_v40, 0.0  ;;  %v2931_v41 = vadd.f32 %v2930_v33, %v2858_v20  ;;  %v8478_v29 = vld [vmem:[#allocation9_spill] sm:$0xff] }
 0x209   :  { %v2997_v1 = vpop.f32.mrf.mxu1  ;;  %v2799_v59 = vadd.f32 %v8034_v3, %v2726_v0  ;;  %v2868_v33 = vadd.f32 %v8056_v12, %v2795_v48  ;;  %v2866_v52 = vadd.f32 %v8054_v19, %v2793_v42  ;;  %v2730_v3 = vadd.f32 %v8040_v55, %v7969_v62  ;;  %v2950_v12 = vpop.f32.mrf.mxu0  ;;  %v6277_v55 = vld [vmem:[%s8446_s2 + $0x164] ss:$8 sps:$4 sm:$0xff]  }
 0x20a   :  { %v3032_v32 = vmax.f32 %v2996_v37, 0.0  ;;  %v2998_v61 = vadd.f32 %v2997_v1, %v2925_v30  ;;  %v2935_v56 = vadd.f32 %v2934_v26, %v2862_v43  ;;  %v2943_v19 = vadd.f32 %v2942_v14, %v2870_v31 }
 0x20b   :  { %v3001_v8 = vpop.f32.mrf.mxu1  ;;  %v2872_v30 = vadd.f32 %v8064_v45, %v2799_v59  ;;  %v2941_v58 = vadd.f32 %v2940_v6, %v2868_v33  ;;  %v2805_v45 = vadd.f32 %v8042_v53, %v2732_v36  ;;  %v2939_v1 = vadd.f32 %v8076_v16, %v2866_v52 }
 0x20c   :  { %v8094_v60 = vpack.c.bf16 %v3032_v32, %v3030_v4  ;;  %v3033_v25 = vmax.f32 %v2998_v61, 0.0  ;;  %v3002_v63 = vadd.f32 %v3001_v8, %v2929_v21  ;;  %v2807_v27 = vadd.f32 %v8046_v15, %v2734_v46  ;;  %v2952_v32 = vpop.f32.mrf.mxu0  ;;  %v6275_v15 = vld [vmem:[%s8446_s2 + $0x160] ss:$8 sps:$4 sm:$0xff]  }
 0x20d   :  { %v3003_v17 = vpop.f32.mrf.mxu1  ;;  %v2945_v28 = vadd.f32 %v2944_v50, %v2872_v30  ;;  %v2803_v4 = vadd.f32 %v8038_v49, %v2730_v3  ;;  %v2809_v16 = vadd.f32 %v8050_v2, %v2736_v24  ;;  %v2878_v34 = vadd.f32 %v8070_v54, %v2805_v45  ;;  %v6280_v50 = vld [vmem:[%s8446_s2 + $0x154] ss:$8 sps:$4 sm:$0xff]   ;;  %v6290_v24 = vld [vmem:[%s8446_s2 + $0x110] ss:$8 sps:$4 sm:$0xff]   ;;  %v6301_v45 = vld [vmem:[%s8446_s2 + $0x1e4] ss:$8 sps:$4 sm:$0xff]  }
 0x20e   :  { %v8100_v47 = vpack.c.bf16 %v3033_v25, %v3031_v18  ;;  %v3004_v61 = vadd.f32 %v3003_v17, %v2931_v41  ;;  %v3034_v35 = vmax.f32 %v3002_v63, 0.0  ;;  %v2880_v8 = vadd.f32 %v8478_v29, %v2807_v27  ;;  %v8479_v18 = vld [vmem:[#allocation7_spill] sm:$0xff]  ;;  %v8480_v2 = vld [vmem:[#allocation5_spill] sm:$0xff]  ;;  %v2954_v41 = vpop.f32.mrf.mxu0 }
 0x20f   :  { %v3005_v23 = vpop.f32.mrf.mxu1  ;;  %v2876_v25 = vadd.f32 %v8479_v18, %v2803_v4  ;;  %v2882_v17 = vadd.f32 %v8480_v2, %v2809_v16  ;;  %v2951_v21 = vadd.f32 %v2950_v12, %v2878_v34  ;;  %v6283_v63 = vld [vmem:[%s8446_s2 + $0x144] ss:$8 sps:$4 sm:$0xff]   ;;  %v6317_v34 = vld [vmem:[%s8446_s2 + $0x180] ss:$8 sps:$4 sm:$0xff]   ;;  %v8481_v29 = vmov 0  }
 0x210   :  { %v3006_v38 = vadd.f32 %v3005_v23, %v2933_v57  ;;  %v3035_v40 = vmax.f32 %v3004_v61, 0.0  ;;  %v2953_v23 = vadd.f32 %v2952_v32, %v2880_v8  ;;  %v6289_v12 = vld [vmem:[%s8446_s2 + $0x124] ss:$8 sps:$4 sm:$0xff]   ;;  %v6311_v32 = vld [vmem:[%s8446_s2 + $0x1a0] ss:$8 sps:$4 sm:$0xff]   ;;  %v6320_v8 = vld [vmem:[%s8448_s3 + $0x38] sm:$0xff]  }
 0x211   :  { %v3007_v51 = vpop.f32.mrf.mxu1  ;;  %v2949_v61 = vadd.f32 %v2948_v22, %v2876_v25  ;;  %v6281_v22 = vld [vmem:[%s8446_s2 + $0x140] ss:$8 sps:$4 sm:$0xff]   ;;  %v6307_v27 = vld [vmem:[%s8446_s2 + $0x1c4] ss:$8 sps:$4 sm:$0xff]  }
 0x212   :  { %v3008_v39 = vadd.f32 %v3007_v51, %v2935_v56  ;;  %v3036_v44 = vmax.f32 %v3006_v38, 0.0  ;;  %v6278_v56 = vld [vmem:[%s8446_s2 + $0x150] ss:$8 sps:$4 sm:$0xff]   ;;  %v2955_v51 = vadd.f32 %v2954_v41, %v2882_v17  ;;  %v6313_v4 = vld [vmem:[%s8446_s2 + $0x1a4] ss:$8 sps:$4 sm:$0xff]  }
 0x213   :  { %v3011_v26 = vpop.f32.mrf.mxu1  ;;  %v6319_v16 = vld [vmem:[%s8446_s2 + $0x184] ss:$8 sps:$4 sm:$0xff]   ;;  %v6332_v17 = vld [vmem:[%s8448_s3 + $0x70] sm:$0xff]   ;;  %v6335_v41 = vld [vmem:[%s8448_s3 + $0x58] sm:$0xff]  }
 0x214   :  { %v3037_v37 = vmax.f32 %v3008_v39, 0.0  ;;  %v8125_v11 = vpack.c.bf16 %v3036_v44, %v3034_v35  ;;  %v3012_v53 = vadd.f32 %v3011_v26, %v2939_v1  ;;  %v6286_v44 = vld [vmem:[%s8446_s2 + $0x134] ss:$8 sps:$4 sm:$0xff]   ;;  %v6287_v35 = vld [vmem:[%s8446_s2 + $0x120] ss:$8 sps:$4 sm:$0xff]  }
 0x215   :  { %v3013_v5 = vpop.f32.mrf.mxu1  ;;  %v6299_v1 = vld [vmem:[%s8446_s2 + $0x1e0] ss:$8 sps:$4 sm:$0xff]  }
 0x216   :  { %v8118_v20 = vpack.c.bf16 %v3037_v37, %v3035_v40  ;;  %v3014_v6 = vadd.f32 %v3013_v5, %v2941_v58  ;;  %v3038_v57 = vmax.f32 %v3012_v53, 0.0  ;;  %v6284_v37 = vld [vmem:[%s8446_s2 + $0x130] ss:$8 sps:$4 sm:$0xff]   ;;  %v6292_v5 = vld [vmem:[%s8446_s2 + $0x114] ss:$8 sps:$4 sm:$0xff]   ;;  %v6325_v18 = vld [vmem:[%s8448_s3 + $0x20] sm:$0xff]  }
 0x217   :  { %v3015_v62 = vpop.f32.mrf.mxu1  ;;  %v6295_v58 = vld [vmem:[%s8446_s2 + $0x104] ss:$8 sps:$4 sm:$0xff]   ;;  %v6316_v53 = vld [vmem:[%s8446_s2 + $0x194] ss:$8 sps:$4 sm:$0xff]  }
 0x218   :  { %v3016_v14 = vadd.f32 %v3015_v62, %v2943_v19  ;;  %3730 = vmatprep.mubr.bf16.mxu1 %v8118_v20  ;;  %v3039_v54 = vmax.f32 %v3014_v6, 0.0  ;;  %v6298_v19 = vld [vmem:[%s8446_s2 + $0x1f4] ss:$8 sps:$4 sm:$0xff]   ;;  %v6328_v25 = vld [vmem:[%s8448_s3 + $0x80] sm:$0xff]   ;;  %v6331_v2 = vld [vmem:[%s8448_s3 + $0x8] sm:$0xff]  }
 0x219   :  { %v3017_v7 = vpop.f32.mrf.mxu1  ;;  %3731 = vmatmul.mubr.bf16.vlgmr.msra.gmra.mxu1 %v8125_v11  ;;  %v6304_v62 = vld [vmem:[%s8446_s2 + $0x1d4] ss:$8 sps:$4 sm:$0xff]  }
 0x21a   :  { %v3018_v43 = vadd.f32 %v3017_v7, %v2945_v28  ;;  %4205 = vmatpush1.bf16.msra.mxu1 %v6272_v10  ;;  %v3040_v49 = vmax.f32 %v3016_v14, 0.0  ;;  %v6296_v10 = vld [vmem:[%s8446_s2 + $0x1f0] ss:$8 sps:$4 sm:$0xff]   ;;  %v6305_v28 = vld [vmem:[%s8446_s2 + $0x1c0] ss:$8 sps:$4 sm:$0xff]  }
 0x21b   :  { %v3021_v13 = vpop.f32.mrf.mxu1  ;;  %4206 = vmatprep.subr.bf16.mxu1 %v6277_v55  ;;  %v6302_v55 = vld [vmem:[%s8446_s2 + $0x1d0] ss:$8 sps:$4 sm:$0xff]   ;;  %v6310_v6 = vld [vmem:[%s8446_s2 + $0x1b4] ss:$8 sps:$4 sm:$0xff]  }
 0x21c   :  { %v3041_v0 = vmax.f32 %v3018_v43, 0.0  ;;  %v8150_v38 = vpack.c.bf16 %v3040_v49, %v3038_v57  ;;  %v3022_v31 = vadd.f32 %v3021_v13, %v2949_v61  ;;  %v6308_v14 = vld [vmem:[%s8446_s2 + $0x1b0] ss:$8 sps:$4 sm:$0xff]   ;;  %v6336_v57 = vld [vmem:[%s8448_s3 + $0x60] sm:$0xff]   ;;  %v6345_v61 = vld [vmem:[%s8448_s3 + $0xa8] sm:$0xff]  }
 0x21d   :  { %v3023_v48 = vpop.f32.mrf.mxu1  ;;  %v6314_v7 = vld [vmem:[%s8446_s2 + $0x190] ss:$8 sps:$4 sm:$0xff]  }
 0x21e   :  { %v8145_v9 = vpack.c.bf16 %v3041_v0, %v3039_v54  ;;  %4207 = vmatpush1.bf16.msra.mxu1 %v6275_v15  ;;  %v3024_v59 = vadd.f32 %v3023_v48, %v2951_v21  ;;  %v3042_v30 = vmax.f32 %v3022_v31, 0.0  ;;  %v6321_v43 = vld [vmem:[%s8448_s3 + $0x30] sm:$0xff]   ;;  %v6326_v15 = vld [vmem:[%s8448_s3 + $0x88] sm:$0xff]   ;;  %v6327_v49 = vld [vmem:[%s8448_s3 + $0x18] sm:$0xff]  }
 0x21f   :  { %v3025_v42 = vpop.f32.mrf.mxu1  ;;  %4208 = vmatprep.subr.bf16.mxu1 %v6280_v50  ;;  %v6329_v13 = vld [vmem:[%s8448_s3 + $0x10] sm:$0xff]   ;;  %v6330_v50 = vld [vmem:[%s8448_s3 + $0x78] sm:$0xff]   ;;  %v6333_v54 = vld [vmem:[%s8448_s3] sm:$0xff]  }
 0x220   :  { %v3026_v33 = vadd.f32 %v3025_v42, %v2953_v23  ;;  %3740 = vmatprep.mubr.bf16.mxu1 %v8145_v9  ;;  %v3043_v26 = vmax.f32 %v3024_v59, 0.0  ;;  %v6334_v0 = vld [vmem:[%s8448_s3 + $0x68] sm:$0xff]   ;;  %v6337_v48 = vld [vmem:[%s8448_s3 + $0x50] sm:$0xff]   ;;  %v6338_v21 = vld [vmem:[%s8448_s3 + $0xb8] sm:$0xff]  }
 0x221   :  { %v3027_v39 = vpop.f32.mrf.mxu1  ;;  %3741 = vmatmul.mubr.bf16.gmra.mxu1 %v8150_v38  ;;  %v6339_v23 = vld [vmem:[%s8448_s3 + $0x48] sm:$0xff]  }
 0x222   :  { %v3028_v36 = vadd.f32 %v3027_v39, %v2955_v51  ;;  %4209 = vmatpush1.bf16.msra.mxu1 %v6278_v56  ;;  %v3044_v52 = vmax.f32 %v3026_v33, 0.0  ;;  %v6341_v56 = vld [vmem:[%s8448_s3 + $0x40] sm:$0xff]  }
 0x223   :  { %4210 = vmatprep.subr.bf16.mxu1 %v6283_v63 }
 0x224   :  { %v3045_v46 = vmax.f32 %v3028_v36, 0.0  ;;  %v5585_v3 = vpack.c.bf16 %v3044_v52, %v3042_v30 }
 0x226   :  { %v5586_v40 = vpack.c.bf16 %v3045_v46, %v3043_v26  ;;  %4211 = vmatpush1.bf16.msra.mxu1 %v6281_v22 }
 0x227   :  { %4212 = vmatprep.subr.bf16.mxu1 %v6286_v44 }
 0x228   :  { %3750 = vmatprep.mubr.bf16.mxu1 %v5586_v40 }
 0x229   :  { %3751 = vmatmul.mubr.bf16.gmra.mxu1 %v5585_v3 }
 0x22a   :  { %4213 = vmatpush1.bf16.msra.mxu1 %v6284_v37  ;;  %4236 = vmatprep.mubr.bf16.mxu1 %v8100_v47  ;;  %v6293_v47 = vld [vmem:[%s8446_s2 + $0x100] ss:$8 sps:$4 sm:$0xff]  }
 0x22b   :  { %4214 = vmatprep.subr.bf16.mxu1 %v6289_v12 }
 0x22e   :  { %4215 = vmatpush1.bf16.msra.mxu1 %v6287_v35 }
 0x22f   :  { %4216 = vmatprep.subr.bf16.mxu1 %v6292_v5 }
 0x232   :  { %4217 = vmatpush1.bf16.msra.mxu1 %v6290_v24 }
 0x233   :  { %4218 = vmatprep.subr.bf16.mxu1 %v6295_v58 }
 0x236   :  { %4219 = vmatpush1.bf16.msra.mxu1 %v6293_v47 }
 0x237   :  { %4220 = vmatprep.subr.bf16.mxu1 %v6298_v19 }
 0x239   :  { %v3669_v42 = vpop.f32.mrf.mxu0 }
 0x23a   :  { %4221 = vmatpush2.bf16.msra.mxu1 %v6296_v10 }
 0x23b   :  { %4222 = vmatprep.subr.bf16.mxu1 %v6301_v45  ;;  %v3671_v63 = vpop.f32.mrf.mxu0 }
 0x23d   :  { %v3673_v51 = vpop.f32.mrf.mxu0 }
 0x23e   :  { %4223 = vmatpush2.bf16.msra.mxu1 %v6299_v1 }
 0x23f   :  { %4224 = vmatprep.subr.bf16.mxu1 %v6304_v62  ;;  %v3675_v59 = vpop.f32.mrf.mxu0 }
 0x241   :  { %v3679_v33 = vpop.f32.mrf.mxu0 }
 0x242   :  { %4225 = vmatpush2.bf16.msra.mxu1 %v6302_v55 }
 0x243   :  { %4226 = vmatprep.subr.bf16.mxu1 %v6307_v27  ;;  %v3681_v31 = vpop.f32.mrf.mxu0 }
 0x245   :  { %v3683_v39 = vpop.f32.mrf.mxu0 }
 0x246   :  { %4227 = vmatpush2.bf16.msra.mxu1 %v6305_v28  ;;  %v4267_v28 = vld [vmem:[%s8449_s5] sm:$0x3] }
 0x247   :  { %4228 = vmatprep.subr.bf16.mxu1 %v6310_v6  ;;  %v3685_v22 = vpop.f32.mrf.mxu0 }
 0x249   :  { %v3689_v44 = vpop.f32.mrf.mxu0 }
 0x24a   :  { %4229 = vmatpush2.bf16.msra.mxu1 %v6308_v14 }
 0x24b   :  { %4230 = vmatprep.subr.bf16.mxu1 %v6313_v4  ;;  %v8334_v46 = vpop.f32.mrf.mxu0 }
 0x24d   :  { %v8336_v40 = vpop.f32.mrf.mxu0 }
 0x24e   :  { %4231 = vmatpush2.bf16.msra.mxu1 %v6311_v32 }
 0x24f   :  { %4232 = vmatprep.subr.bf16.mxu1 %v6316_v53  ;;  %v8338_v3 = vpop.f32.mrf.mxu0  ;;  %v8482_v53 = vld [vmem:[#allocation4_spill] sm:$0xff] }
 0x252   :  { %4233 = vmatpush2.bf16.msra.mxu1 %v6314_v7  ;;  %v8346_v7 = vrot.slane %v4267_v28, %v8482_v53 }
 0x253   :  { %4234 = vmatprep.subr.bf16.mxu1 %v6319_v16 }
 0x256   :  { %4235 = vmatpush2.bf16.msra.mxu1 %v6317_v34 }
 0x257   :  { %4611 = vmatprep.subr.bf16.mxu1 %v8481_v29 }
 0x259   :  { %4237 = vmatmul.mubr.bf16.vlgmr.msra.gmra.mxu1 %v8094_v60  ;;  %v6322_v60 = vld [vmem:[%s8448_s3 + $0x98] sm:$0xff]  }
 0x25a   :  { %4246 = vmatprep.mubr.bf16.mxu1 %v8118_v20  ;;  %4612 = vmatpush1.bf16.msra.mxu1 %v6320_v8  ;;  %v6324_v20 = vld [vmem:[%s8448_s3 + $0x90] sm:$0xff]  }
 0x25b   :  { %4613 = vmatprep.subr.bf16.mxu1 %v8481_v29  ;;  %4487 = vmatpush1.bf16.msra.mxu0 %v6322_v60 }
 0x25c   :  { %4488 = vmatprep.subr.bf16.mxu0 %v8481_v29 }
 0x25e   :  { %4614 = vmatpush1.bf16.msra.mxu1 %v6321_v43 }
 0x25f   :  { %4615 = vmatprep.subr.bf16.mxu1 %v8481_v29  ;;  %4489 = vmatpush1.bf16.msra.mxu0 %v6324_v20  ;;  %v8483_v20 = vld [vmem:[#allocation8_spill] sm:$0xff] }
 0x260   :  { %4490 = vmatprep.subr.bf16.mxu0 %v8481_v29 }
 0x261   :  { %4247 = vmatmul.mubr.bf16.gmra.mxu1 %v8125_v11  ;;  %v6323_v11 = vld [vmem:[%s8448_s3 + $0x28] sm:$0xff]  }
 0x262   :  { %4256 = vmatprep.mubr.bf16.mxu1 %v8145_v9  ;;  %4616 = vmatpush1.bf16.msra.mxu1 %v6323_v11  ;;  %v6340_v9 = vld [vmem:[%s8448_s3 + $0xb0] sm:$0xff]   ;;  %v8349_v11 = vrot.slane %v4267_v28, %v8483_v20 }
 0x263   :  { %4617 = vmatprep.subr.bf16.mxu1 %v8481_v29  ;;  %4491 = vmatpush1.bf16.msra.mxu0 %v6326_v15 }
 0x264   :  { %4492 = vmatprep.subr.bf16.mxu0 %v8481_v29 }
 0x266   :  { %4618 = vmatpush1.bf16.msra.mxu1 %v6325_v18 }
 0x267   :  { %4619 = vmatprep.subr.bf16.mxu1 %v8481_v29  ;;  %4493 = vmatpush1.bf16.msra.mxu0 %v6328_v25 }
 0x268   :  { %4494 = vmatprep.subr.bf16.mxu0 %v8481_v29 }
 0x269   :  { %4257 = vmatmul.mubr.bf16.gmra.mxu1 %v8150_v38  ;;  %v6346_v38 = vld [vmem:[%s8448_s3 + $0xa0] sm:$0xff]  }
 0x26a   :  { %4620 = vmatpush1.bf16.msra.mxu1 %v6327_v49 }
 0x26b   :  { %4621 = vmatprep.subr.bf16.mxu1 %v8481_v29  ;;  %4495 = vmatpush1.bf16.msra.mxu0 %v6330_v50 }
 0x26c   :  { %4496 = vmatprep.subr.bf16.mxu0 %v8481_v29 }
 0x26e   :  { %4622 = vmatpush1.bf16.msra.mxu1 %v6329_v13 }
 0x26f   :  { %4623 = vmatprep.subr.bf16.mxu1 %v8481_v29  ;;  %4497 = vmatpush1.bf16.msra.mxu0 %v6332_v17 }
 0x270   :  { %4498 = vmatprep.subr.bf16.mxu0 %v8481_v29 }
 0x272   :  { %4624 = vmatpush1.bf16.msra.mxu1 %v6331_v2 }
 0x273   :  { %4625 = vmatprep.subr.bf16.mxu1 %v8481_v29  ;;  %4499 = vmatpush1.bf16.msra.mxu0 %v6334_v0 }
 0x274   :  { %4500 = vmatprep.subr.bf16.mxu0 %v8481_v29 }
 0x276   :  { %4626 = vmatpush1.bf16.msra.mxu1 %v6333_v54 }
 0x277   :  { %4635 = vmatprep.subr.bf16.mxu1 %v8481_v29  ;;  %4501 = vmatpush1.bf16.msra.mxu0 %v6336_v57 }
 0x278   :  { %4510 = vmatprep.subr.bf16.mxu0 %v8481_v29 }
 0x279   :  { %v4175_v35 = vpop.f32.mrf.mxu0 }
 0x27a   :  { %4636 = vmatpush2.bf16.msra.mxu1 %v6335_v41 }
 0x27b   :  { %4637 = vmatprep.subr.bf16.mxu1 %v8481_v29  ;;  %4511 = vmatpush2.bf16.msra.mxu0 %v6338_v21  ;;  %v4177_v24 = vpop.f32.mrf.mxu0 }
 0x27c   :  { %4512 = vmatprep.subr.bf16.mxu0 %v8481_v29 }
 0x27d   :  { %v4179_v47 = vpop.f32.mrf.mxu0 }
 0x27e   :  { %4638 = vmatpush2.bf16.msra.mxu1 %v6337_v48 }
 0x27f   :  { %4639 = vmatprep.subr.bf16.mxu1 %v8481_v29  ;;  %4513 = vmatpush2.bf16.msra.mxu0 %v6340_v9  ;;  %v4181_v10 = vpop.f32.mrf.mxu0 }
 0x280   :  { %4514 = vmatprep.subr.bf16.mxu0 %v8481_v29 }
 0x281   :  { %v4185_v1 = vpop.f32.mrf.mxu0 }
 0x282   :  { %4640 = vmatpush2.bf16.msra.mxu1 %v6339_v23 }
 0x283   :  { %4641 = vmatprep.subr.bf16.mxu1 %v8481_v29  ;;  %4515 = vmatpush2.bf16.msra.mxu0 %v6345_v61  ;;  %v4187_v27 = vpop.f32.mrf.mxu0 }
 0x284   :  { %4516 = vmatprep.subr.bf16.mxu0 %v8481_v29 }
 0x285   :  { %v4189_v16 = vpop.f32.mrf.mxu0 }
 0x286   :  { %4642 = vmatpush2.bf16.msra.mxu1 %v6341_v56 }
 0x287   :  { %4517 = vmatpush2.bf16.msra.mxu0 %v6346_v38  ;;  %v4191_v50 = vpop.f32.mrf.mxu0 }
 0x288   :  { %4763 = vmatprep.subr.bf16.mxu0 %v8481_v29 }
 0x289   :  { %v4195_v38 = vpop.f32.mrf.mxu0 }
 0x2d9   :  { %v3732_v36 = vpop.f32.mrf.mxu1 }
 0x2da   :  { %v3733_v55 = vadd.f32 %v3732_v36, %v3669_v42  ;;  %v6355_v42 = vld [vmem:[%s8448_s3 + $0xe0] sm:$0xff]  }
 0x2db   :  { %v3734_v52 = vpop.f32.mrf.mxu1 }
 0x2dc   :  { %v3735_v6 = vadd.f32 %v3734_v52, %v3671_v63  ;;  %v4176_v32 = vadd.f32 %v4175_v35, %v3733_v55 }
 0x2dd   :  { %v3736_v26 = vpop.f32.mrf.mxu1 }
 0x2de   :  { %v3737_v4 = vadd.f32 %v3736_v26, %v3673_v51  ;;  %v4178_v60 = vadd.f32 %v4177_v24, %v3735_v6 }
 0x2df   :  { %v3738_v30 = vpop.f32.mrf.mxu1 }
 0x2e0   :  { %v3739_v8 = vadd.f32 %v3738_v30, %v3675_v59  ;;  %v4180_v13 = vadd.f32 %v4179_v47, %v3737_v4 }
 0x2e1   :  { %v3742_v37 = vpop.f32.mrf.mxu1 }
 0x2e2   :  { %v3743_v15 = vadd.f32 %v3742_v37, %v3679_v33  ;;  %v4182_v41 = vadd.f32 %v4181_v10, %v3739_v8 }
 0x2e3   :  { %v3744_v12 = vpop.f32.mrf.mxu1 }
 0x2e4   :  { %v3745_v2 = vadd.f32 %v3744_v12, %v3681_v31  ;;  %v4186_v21 = vadd.f32 %v4185_v1, %v3743_v15 }
 0x2e5   :  { %v3746_v5 = vpop.f32.mrf.mxu1 }
 0x2e6   :  { %v3747_v57 = vadd.f32 %v3746_v5, %v3683_v39  ;;  %v4188_v51 = vadd.f32 %v4187_v27, %v3745_v2  ;;  %v4197_v5 = vpop.f32.mrf.mxu0 }
 0x2e7   :  { %v3748_v58 = vpop.f32.mrf.mxu1 }
 0x2e8   :  { %v3749_v59 = vadd.f32 %v3748_v58, %v3685_v22  ;;  %v4190_v26 = vadd.f32 %v4189_v16, %v3747_v57 }
 0x2e9   :  { %v3752_v19 = vpop.f32.mrf.mxu1 }
 0x2ea   :  { %v3753_v39 = vadd.f32 %v3752_v19, %v3689_v44  ;;  %v4192_v1 = vadd.f32 %v4191_v50, %v3749_v59  ;;  %v6356_v59 = vld [vmem:[%s8448_s3 + $0xd8] sm:$0xff]  }
 0x2eb   :  { %v3754_v45 = vpop.f32.mrf.mxu1 }
 0x2ec   :  { %v3755_v24 = vadd.f32 %v3754_v45, %v8334_v46  ;;  %v4196_v55 = vadd.f32 %v4195_v38, %v3753_v39  ;;  %v6360_v39 = vld [vmem:[%s8448_s3 + $0x118] sm:$0xff]  }
 0x2ed   :  { %v3756_v62 = vpop.f32.mrf.mxu1 }
 0x2ee   :  { %v3757_v44 = vadd.f32 %v3756_v62, %v8336_v40  ;;  %v4198_v45 = vadd.f32 %v4197_v5, %v3755_v24 }
 0x2ef   :  { %v8343_v14 = vpop.f32.mrf.mxu1 }
 0x2f0   :  { %v3759_v53 = vadd.f32 %v8343_v14, %v8338_v3 }
 0x319   :  { %v4238_v34 = vpop.f32.mrf.mxu1 }
 0x31a   :  { %v4239_v43 = vadd.f32 %v4238_v34, %v4176_v32  ;;  %v4199_v32 = vpop.f32.mrf.mxu0 }
 0x31b   :  { %v4240_v18 = vpop.f32.mrf.mxu1  ;;  %v4200_v8 = vadd.f32 %v4199_v32, %v3757_v44 }
 0x31c   :  { %v4279_v25 = vadd.f32 %v8346_v7, %v4239_v43  ;;  %v4241_v49 = vadd.f32 %v4240_v18, %v4178_v60  ;;  %v4201_v18 = vpop.f32.mrf.mxu0 }
 0x31d   :  { %v4242_v17 = vpop.f32.mrf.mxu1 }
 0x31e   :  { %v4280_v54 = vadd.f32 %v8349_v11, %v4241_v49  ;;  %v4243_v0 = vadd.f32 %v4242_v17, %v4180_v13  ;;  %v4291_v23 = vmax.f32 %v4279_v25, 0.0  ;;  %v4202_v13 = vadd.f32 %v4201_v18, %v3759_v53 }
 0x31f   :  { %v4244_v48 = vpop.f32.mrf.mxu1 }
 0x320   :  { %v4292_v9 = vmax.f32 %v4280_v54, 0.0  ;;  %v4281_v56 = vadd.f32 %v8346_v7, %v4243_v0  ;;  %v4245_v61 = vadd.f32 %v4244_v48, %v4182_v41 }
 0x321   :  { %v4248_v63 = vpop.f32.mrf.mxu1 }
 0x322   :  { %v5569_v33 = vpack.c.bf16 %v4292_v9, %v4291_v23  ;;  %v4282_v31 = vadd.f32 %v8349_v11, %v4245_v61  ;;  %v4249_v36 = vadd.f32 %v4248_v63, %v4186_v21  ;;  %v4293_v30 = vmax.f32 %v4281_v56, 0.0  ;;  %v6350_v61 = vld [vmem:[%s8448_s3 + $0xf8] sm:$0xff]  }
 0x323   :  { %v4250_v52 = vpop.f32.mrf.mxu1 }
 0x324   :  { %4342 = vst.msk [vmem:[#allocation3] sm:$0xff] %vm8354_vm2, %v5569_v33  ;;  %v4294_v37 = vmax.f32 %v4282_v31, 0.0  ;;  %v4283_v12 = vadd.f32 %v8346_v7, %v4249_v36  ;;  %v4251_v35 = vadd.f32 %v4250_v52, %v4188_v51  ;;  %v6354_v51 = vld [vmem:[%s8448_s3 + $0xe8] sm:$0xff]   ;;  %v6357_v33 = vld [vmem:[%s8448_s3 + $0xd0] sm:$0xff]   ;;  %v6359_v36 = vld [vmem:[%s8448_s3 + $0xc0] sm:$0xff]  }
 0x325   :  { %v4252_v47 = vpop.f32.mrf.mxu1  ;;  %v6358_v31 = vld [vmem:[%s8448_s3 + $0xc8] sm:$0xff]   ;;  %v6361_v52 = vld [vmem:[%s8448_s3 + $0x110] sm:$0xff]  }
 0x326   :  { %v5570_v22 = vpack.c.bf16 %v4294_v37, %v4293_v30  ;;  %v4284_v58 = vadd.f32 %v8349_v11, %v4251_v35  ;;  %v4253_v10 = vadd.f32 %v4252_v47, %v4190_v26  ;;  %v4295_v27 = vmax.f32 %v4283_v12, 0.0  ;;  %v6362_v26 = vld [vmem:[%s8448_s3 + $0x108] sm:$0xff]   ;;  %v6363_v30 = vld [vmem:[%s8448_s3 + $0x100] sm:$0xff]  }
 0x327   :  { %v4254_v19 = vpop.f32.mrf.mxu1 }
 0x328   :  { %4343 = vst.msk [vmem:[#allocation3 + $0x8] sm:$0xff] %vm8354_vm2, %v5570_v22  ;;  %v4296_v28 = vmax.f32 %v4284_v58, 0.0  ;;  %v4285_v6 = vadd.f32 %v8346_v7, %v4253_v10  ;;  %v4255_v4 = vadd.f32 %v4254_v19, %v4192_v1  ;;  %v5552_v19 = vld [vmem:[%s8450_s6] ss:$0 sm:$0xff] }
 0x329   :  { %v4258_v46 = vpop.f32.mrf.mxu1 }
 0x32a   :  { %v5571_v16 = vpack.c.bf16 %v4296_v28, %v4295_v27  ;;  %v4286_v34 = vadd.f32 %v8349_v11, %v4255_v4  ;;  %v4259_v40 = vadd.f32 %v4258_v46, %v4196_v55  ;;  %v4297_v43 = vmax.f32 %v4285_v6, 0.0 }
 0x32b   :  { %v4260_v62 = vpop.f32.mrf.mxu1 }
 0x32c   :  { %4344 = vst.msk [vmem:[#allocation3 + $0x10] sm:$0xff] %vm8354_vm2, %v5571_v16  ;;  %v4298_v60 = vmax.f32 %v4286_v34, 0.0  ;;  %v4287_v20 = vadd.f32 %v8346_v7, %v4259_v40  ;;  %v4261_v15 = vadd.f32 %v4260_v62, %v4198_v45 }
 0x32d   :  { %v4262_v25 = vpop.f32.mrf.mxu1 }
 0x32e   :  { %v5572_v49 = vpack.c.bf16 %v4298_v60, %v4297_v43  ;;  %v4288_v3 = vadd.f32 %v8349_v11, %v4261_v15  ;;  %v4263_v14 = vadd.f32 %v4262_v25, %v4200_v8  ;;  %v4299_v54 = vmax.f32 %v4287_v20, 0.0 }
 0x32f   :  { %v4264_v50 = vpop.f32.mrf.mxu1  ;;  %v6342_v2 = vld [vmem:[#allocation3] ss:$8 sps:$4 sm:$0xff]   ;;  %v6344_v17 = vld [vmem:[#allocation3 + $0x4] ss:$8 sps:$4 sm:$0xff]  }
 0x330   :  { %4345 = vst.msk [vmem:[#allocation3 + $0x18] sm:$0xff] %vm8354_vm2, %v5572_v49  ;;  %v4300_v0 = vmax.f32 %v4288_v3, 0.0  ;;  %v4289_v41 = vadd.f32 %v8346_v7, %v4263_v14  ;;  %v4265_v57 = vadd.f32 %v4264_v50, %v4202_v13  ;;  %5512 = vmatprep.mubr.msk.bf16.mxu1 %vm4482_vm3, %v6344_v17  ;;  %v6351_v7 = vld [vmem:[%s8448_s3 + $0xf0] sm:$0xff]  }
 0x331   :  { %4644 = vmatmul.mubr.bf16.vlgmr.msra.gmra.mxu1 %v6342_v2 }
 0x332   :  { %v5573_v48 = vpack.c.bf16 %v4300_v0, %v4299_v54  ;;  %v4290_v21 = vadd.f32 %v8349_v11, %v4265_v57  ;;  %v4301_v23 = vmax.f32 %v4289_v41, 0.0 }
 0x334   :  { %4346 = vst.msk [vmem:[#allocation3 + $0x20] sm:$0xff] %vm8354_vm2, %v5573_v48  ;;  %v4302_v9 = vmax.f32 %v4290_v21, 0.0 }
 0x336   :  { %v5574_v56 = vpack.c.bf16 %v4302_v9, %v4301_v23 }
 0x337   :  { %v6347_v38 = vld [vmem:[#allocation3 + $0x10] ss:$8 sps:$4 sm:$0xff]   ;;  %v6349_v63 = vld [vmem:[#allocation3 + $0x14] ss:$8 sps:$4 sm:$0xff]  }
 0x338   :  { %4347 = vst.msk [vmem:[#allocation3 + $0x28] sm:$0xff] %vm8354_vm2, %v5574_v56  ;;  %5497 = vmatprep.mubr.msk.bf16.mxu0 %vm4482_vm3, %v6349_v63 }
 0x339   :  { %4519 = vmatmul.mubr.bf16.vlgmr.msra.gmra.mxu0 %v6347_v38 }
 0x33a   :  { %4764 = vmatpush1.bf16.msra.mxu0 %v6350_v61 }
 0x33b   :  { %4765 = vmatprep.subr.bf16.mxu0 %v8481_v29 }
 0x33e   :  { %4766 = vmatpush1.bf16.msra.mxu0 %v6351_v7 }
 0x33f   :  { %v6352_v11 = vld [vmem:[#allocation3 + $0x24] ss:$8 sps:$4 sm:$0xff]   ;;  %4767 = vmatprep.subr.bf16.mxu0 %v8481_v29  ;;  %v6364_v37 = vld [vmem:[#allocation3 + $0x20] ss:$8 sps:$4 sm:$0xff]  }
 0x340   :  { %5551 = vmatprep.mubr.msk.bf16.mxu0 %vm4482_vm3, %v6352_v11 }
 0x342   :  { %4768 = vmatpush1.bf16.msra.mxu0 %v6354_v51 }
 0x343   :  { %4769 = vmatprep.subr.bf16.mxu0 %v8481_v29 }
 0x346   :  { %4770 = vmatpush1.bf16.msra.mxu0 %v6355_v42 }
 0x347   :  { %4771 = vmatprep.subr.bf16.mxu0 %v8481_v29 }
 0x34a   :  { %4772 = vmatpush1.bf16.msra.mxu0 %v6356_v59 }
 0x34b   :  { %4773 = vmatprep.subr.bf16.mxu0 %v8481_v29 }
 0x34e   :  { %4774 = vmatpush1.bf16.msra.mxu0 %v6357_v33 }
 0x34f   :  { %4775 = vmatprep.subr.bf16.mxu0 %v8481_v29 }
 0x352   :  { %4776 = vmatpush1.bf16.msra.mxu0 %v6358_v31 }
 0x353   :  { %4777 = vmatprep.subr.bf16.mxu0 %v8481_v29 }
 0x356   :  { %4778 = vmatpush1.bf16.msra.mxu0 %v6359_v36 }
 0x357   :  { %4787 = vmatprep.subr.bf16.mxu0 %v8481_v29 }
 0x35a   :  { %4788 = vmatpush2.bf16.msra.mxu0 %v6360_v39 }
 0x35b   :  { %4789 = vmatprep.subr.bf16.mxu0 %v8481_v29 }
 0x35e   :  { %4790 = vmatpush2.bf16.msra.mxu0 %v6361_v52 }
 0x35f   :  { %4791 = vmatprep.subr.bf16.mxu0 %v8481_v29 }
 0x362   :  { %4792 = vmatpush2.bf16.msra.mxu0 %v6362_v26 }
 0x363   :  { %4793 = vmatprep.subr.bf16.mxu0 %v8481_v29 }
 0x366   :  { %4794 = vmatpush2.bf16.msra.mxu0 %v6363_v30 }
 0x369   :  { %4796 = vmatmul.mubr.bf16.vlgmr.msra.gmra.mxu0 %v6364_v37 }
 0x3f1   :  { %v4645_v12 = vpop.f32.mrf.mxu1 }
 0x3f3   :  { %v4647_v35 = vpop.f32.mrf.mxu1 }
 0x3f5   :  { %v4648_v5 = vpop.f32.mrf.mxu1 }
 0x3f7   :  { %v4650_v24 = vpop.f32.mrf.mxu1 }
 0x3f9   :  { %v4520_v47 = vpop.f32.mrf.mxu0 }
 0x3fa   :  { %v4646_v1 = vadd.f32 %v4645_v12, %v4520_v47 }
 0x3fb   :  { %v4522_v22 = vpop.f32.mrf.mxu0 }
 0x3fd   :  { %v4523_v58 = vpop.f32.mrf.mxu0 }
 0x3fe   :  { %v4649_v29 = vadd.f32 %v4648_v5, %v4523_v58 }
 0x3ff   :  { %v4525_v10 = vpop.f32.mrf.mxu0 }
 0x429   :  { %v4797_v44 = vpop.f32.mrf.mxu0 }
 0x42a   :  { %v4804_v55 = vadd.f32 %v4797_v44, %v4646_v1 }
 0x42b   :  { %v4799_v27 = vpop.f32.mrf.mxu0 }
 0x42c   :  { %v4813_v28 = vadd.f32 %v5552_v19, %v4804_v55 }
 0x42d   :  { %v4800_v6 = vpop.f32.mrf.mxu0 }
 0x42e   :  { %4815 = vst.msk [vmem:[%s8451_s7] sm:$0xff] %vm4482_vm3, %v4813_v28  ;;  %v4805_v4 = vadd.f32 %v4800_v6, %v4649_v29 }
 0x42f   :  { %v4802_v32 = vpop.f32.mrf.mxu0 }
 0x430   :  { %v4814_v46 = vadd.f32 %v5552_v19, %v4805_v4 }
 0x432   :  { %4816 = vst.msk [vmem:[%s8451_s7 + $0x8] sm:$0xff] %vm4482_vm3, %v4814_v46 }

</bundles_post_ra>
